<compile_context>
chip_gen: v5e
topology: v5e:2x2
jax: 0.10.0
libtpu: 0.0.40
codegen_flags: <defaults>
</compile_context>

<pallas_src>
import functools
import math

import jax
import jax.numpy as jnp
from jax.experimental import pallas as pl
from jax.experimental.pallas import tpu as pltpu


# ----------------------------------------------------------------------------
# Fused (conv3x3 -> BN -> ReLU) x 2 kernel: one (batch, row-tile) grid step.
# ----------------------------------------------------------------------------
def _double_conv_kernel(x_ref, w1_ref, b1_ref, w2_ref, b2_ref, o_ref,
                        xpad_ref, y1_ref, *, H, W, Cin, Cmid, Cout, TH):
    # x_ref   : (H, W, Cin)        bf16  full image, revisited across row tiles
    # w1_ref  : (9*Cin, Cmid)      bf16  BN1 scale folded in, VMEM-resident
    # b1_ref  : (1, Cmid)          f32
    # w2_ref  : (9*Cmid, Cout)     bf16  BN2 scale folded in, VMEM-resident
    # b2_ref  : (1, Cout)          f32
    # o_ref   : (Cout, TH*W)       f32   lane-dense channel-major output tile
    # xpad_ref: (H+4, W+2, Cin)    bf16  scratch, zero-padded input image
    # y1_ref  : (TH+2, W+2, Cmid)  bf16  scratch, conv1 tile incl. 1-row halo
    j = pl.program_id(1)
    last = pl.num_programs(1) - 1

    # Build the zero-padded input once per batch element (the x block is
    # revisited across the row-tile axis, so this is one VMEM copy per b).
    @pl.when(j == 0)
    def _():
        xpad_ref[...] = jnp.zeros_like(xpad_ref)
        xpad_ref[pl.ds(2, H), pl.ds(1, W), :] = x_ref[...]

    r0 = pl.multiple_of(j * TH, TH)

    # ---- conv1 + BN1 + ReLU on rows [r0-1, r0+TH+1) (1-row halo for conv2) --
    m1 = (TH + 2) * W
    taps = []
    for di in range(3):
        for dj in range(3):
            p = xpad_ref[pl.ds(r0 + di, TH + 2), pl.ds(dj, W), :]
            taps.append(p.reshape(m1, Cin))
    im2col1 = jnp.concatenate(taps, axis=-1)                    # (m1, 9*Cin)
    y1 = jnp.dot(im2col1, w1_ref[...], preferred_element_type=jnp.float32)
    y1 = jnp.maximum(y1 + b1_ref[...], 0.0)
    y1 = y1.reshape(TH + 2, W, Cmid).astype(y1_ref.dtype)

    # Stage conv1 into its padded VMEM scratch (zero the W-halo columns).
    y1_ref[:, pl.ds(0, 1), :] = jnp.zeros((TH + 2, 1, Cmid), y1_ref.dtype)
    y1_ref[:, pl.ds(W + 1, 1), :] = jnp.zeros((TH + 2, 1, Cmid), y1_ref.dtype)
    y1_ref[:, pl.ds(1, W), :] = y1

    # Rows that fall outside the image are conv2's zero padding (NOT conv1
    # applied to padded input) -> overwrite them with zeros at the borders.
    @pl.when(j == 0)
    def _():
        y1_ref[pl.ds(0, 1), :, :] = jnp.zeros((1, W + 2, Cmid), y1_ref.dtype)

    @pl.when(j == last)
    def _():
        y1_ref[pl.ds(TH + 1, 1), :, :] = jnp.zeros((1, W + 2, Cmid),
                                                   y1_ref.dtype)

    # ---- conv2 + BN2 + ReLU on the VMEM-resident conv1 tile -----------------
    m2 = TH * W
    taps = []
    for di in range(3):
        for dj in range(3):
            p = y1_ref[pl.ds(di, TH), pl.ds(dj, W), :]
            taps.append(p.reshape(m2, Cmid))
    im2col2 = jnp.concatenate(taps, axis=-1)                    # (m2, 9*Cmid)
    y2 = jnp.dot(im2col2, w2_ref[...], preferred_element_type=jnp.float32)
    y2 = jnp.maximum(y2 + b2_ref[...], 0.0)
    # Channel-major, lane-dense store: (Cout, TH*W), TH*W a multiple of 128.
    o_ref[...] = y2.T.astype(o_ref.dtype)


# ----------------------------------------------------------------------------
# Tiling / VMEM heuristics.
# ----------------------------------------------------------------------------
def _pick_row_tile(B, H, W, Cmid, *, operand_cap_bytes=2 << 20):
    """Row tile: divisor of H, sublane-aligned, lane-dense output (TH*W % 128
    == 0 or full), bounded im2col operand, and (when possible) >= 2 grid steps
    per TensorCore so the BlockSpec pipeline has something to overlap."""
    divisors = [t for t in range(1, H + 1) if H % t == 0]

    def fits(t):
        return t * W * 9 * Cmid * 2 <= operand_cap_bytes

    def lane_ok(t):
        return (t * W) % 128 == 0 or t == H

    aligned = [t for t in divisors
               if (t % 8 == 0 or t == H) and lane_ok(t) and fits(t)]
    if not aligned:
        aligned = [t for t in divisors if lane_ok(t) and fits(t)] or [H]
    pipelined = [t for t in aligned if B * (H // t) >= 4]
    return max(pipelined or aligned)


def _ceil_to(n, m):
    return ((n + m - 1) // m) * m


def _vmem_limit_bytes(H, W, Cin, Cmid, Cout, TH):
    """Rough padded-layout VMEM footprint, with margin, clamped for v7x."""
    def padded(shape, itemsize, sublane):
        *lead, s, l = shape
        n = 1
        for d in lead:
            n *= d
        return n * _ceil_to(s, sublane) * _ceil_to(l, 128) * itemsize

    est = 0
    est += 2 * padded((H, W, Cin), 2, 16)             # x block (double buf)
    est += 2 * padded((Cout, TH * W), 4, 8)           # output block
    est += 2 * padded((9 * Cin, Cmid), 2, 16)         # w1
    est += 2 * padded((9 * Cmid, Cout), 2, 16)        # w2
    est += padded((H + 4, W + 2, Cin), 2, 16)         # padded-input scratch
    est += padded((TH + 2, W + 2, Cmid), 2, 16)       # conv1 tile scratch
    est += padded(((TH + 2) * W, 9 * Cin), 2, 16)     # conv1 im2col operand
    est += padded((TH * W, 9 * Cmid), 2, 16)          # conv2 im2col operand
    est += padded(((TH + 2) * W, Cmid), 4, 8)         # conv1 f32 result
    est += padded((TH * W, Cout), 4, 8)               # conv2 f32 result
    return int(min(32 << 20, max(16 << 20, 4 * est)))


# ----------------------------------------------------------------------------
# DoubleConv forward (NCHW in / NCHW out, matching the PyTorch module).
# ----------------------------------------------------------------------------
def double_conv(x_nchw, params, eps=1e-5):
    B, Cin, H, W = x_nchw.shape
    w1, w2 = params["w1"], params["w2"]     # (3,3,Cin,Cmid), (3,3,Cmid,Cout)
    Cmid, Cout = w1.shape[-1], w2.shape[-1]

    # Fold BN (eval-mode running stats): scale goes into the conv weights
    # (exact, the conv is linear and bias-free); the shift stays as a bias.
    s1 = params["gamma1"] * jax.lax.rsqrt(params["var1"] + eps)
    b1 = params["beta1"] - params["mean1"] * s1
    s2 = params["gamma2"] * jax.lax.rsqrt(params["var2"] + eps)
    b2 = params["beta2"] - params["mean2"] * s2
    w1f = (w1 * s1).reshape(9 * Cin, Cmid).astype(jnp.bfloat16)
    w2f = (w2 * s2).reshape(9 * Cmid, Cout).astype(jnp.bfloat16)
    b1f = b1.reshape(1, Cmid).astype(jnp.float32)
    b2f = b2.reshape(1, Cout).astype(jnp.float32)

    # One small pass over the (Cin-channel, smallest) tensor to get channels
    # minor; the output needs no transpose at all (kernel emits channel-major).
    # TODO(synk): fold this NCHW->HWC relayout into the kernel to remove the
    # last extra HBM pass over the input.
    x_hwc = jnp.transpose(x_nchw, (0, 2, 3, 1)).astype(jnp.bfloat16)

    TH = _pick_row_tile(B, H, W, Cmid)
    assert H % TH == 0

    # TODO(synk): for very large H*W the full per-batch image block would not
    # fit VMEM; that case needs manual halo DMA (pl.ANY + make_async_copy).
    kernel = functools.partial(_double_conv_kernel, H=H, W=W, Cin=Cin,
                               Cmid=Cmid, Cout=Cout, TH=TH)

    flops = 2 * B * H * W * 9 * (Cin * Cmid + Cmid * Cout)
    bytes_accessed = int(x_hwc.size * 2 + w1f.size * 2 + w2f.size * 2
                         + B * Cout * H * W * 4)

    out_flat = pl.pallas_call(
        kernel,
        out_shape=jax.ShapeDtypeStruct((B, Cout, H * W), jnp.float32),
        grid_spec=pltpu.PrefetchScalarGridSpec(
            num_scalar_prefetch=0,
            grid=(B, H // TH),
            in_specs=[
                # Full image per batch element, revisited across row tiles
                # (constant index along j -> DMA'd once per batch element).
                pl.BlockSpec((None, H, W, Cin), lambda b, j: (b, 0, 0, 0)),
                # Weights / biases: constant index -> VMEM-resident, no re-DMA.
                pl.BlockSpec((9 * Cin, Cmid), lambda b, j: (0, 0)),
                pl.BlockSpec((1, Cmid), lambda b, j: (0, 0)),
                pl.BlockSpec((9 * Cmid, Cout), lambda b, j: (0, 0)),
                pl.BlockSpec((1, Cout), lambda b, j: (0, 0)),
            ],
            # Channel-major, lane-dense output tile.
            out_specs=pl.BlockSpec((None, Cout, TH * W),
                                   lambda b, j: (b, 0, j)),
            scratch_shapes=[
                pltpu.VMEM((H + 4, W + 2, Cin), jnp.bfloat16),
                pltpu.VMEM((TH + 2, W + 2, Cmid), jnp.bfloat16),
            ]),
        compiler_params=pltpu.CompilerParams(
            dimension_semantics=("parallel", "arbitrary"),
            vmem_limit_bytes=_vmem_limit_bytes(H, W, Cin, Cmid, Cout, TH)),
        cost_estimate=pl.CostEstimate(flops=flops, transcendentals=0,
                                      bytes_accessed=bytes_accessed),
    )(x_hwc, w1f, b1f, w2f, b2f)

    # (B, Cout, H*W) is already channel-major: just split the pixel axis.
    return out_flat.reshape(B, Cout, H, W)


# ----------------------------------------------------------------------------
# Pure-JAX reference (mirrors the kernel's bf16-operand / f32-accumulate math).
# ----------------------------------------------------------------------------
def _conv_ref(x_nhwc, w):
    return jax.lax.conv_general_dilated(
        x_nhwc, w, window_strides=(1, 1), padding=((1, 1), (1, 1)),
        dimension_numbers=("NHWC", "HWIO", "NHWC"),
        precision=jax.lax.Precision.HIGHEST)


def double_conv_ref(x_nchw, params, eps=1e-5):
    s1 = params["gamma1"] * jax.lax.rsqrt(params["var1"] + eps)
    b1 = params["beta1"] - params["mean1"] * s1
    s2 = params["gamma2"] * jax.lax.rsqrt(params["var2"] + eps)
    b2 = params["beta2"] - params["mean2"] * s2
    w1f = (params["w1"] * s1).astype(jnp.bfloat16).astype(jnp.float32)
    w2f = (params["w2"] * s2).astype(jnp.bfloat16).astype(jnp.float32)

    x = jnp.transpose(x_nchw, (0, 2, 3, 1))
    xb = x.astype(jnp.bfloat16).astype(jnp.float32)
    y = jnp.maximum(_conv_ref(xb, w1f) + b1, 0.0)
    yb = y.astype(jnp.bfloat16).astype(jnp.float32)
    y = jnp.maximum(_conv_ref(yb, w2f) + b2, 0.0)
    return jnp.transpose(y, (0, 3, 1, 2))


if __name__ == "__main__":
    B, Cin, H, W = 2, 4, 16, 16
    Cmid = Cout = 32   # mid_channels defaults to out_channels in DoubleConv

    keys = jax.random.split(jax.random.PRNGKey(0), 11)
    x = jax.random.normal(keys[0], (B, Cin, H, W), jnp.float32)
    params = {
        "w1": jax.random.normal(keys[1], (3, 3, Cin, Cmid), jnp.float32)
              / math.sqrt(9 * Cin),
        "w2": jax.random.normal(keys[2], (3, 3, Cmid, Cout), jnp.float32)
              / math.sqrt(9 * Cmid),
        "gamma1": 1.0 + 0.1 * jax.random.normal(keys[3], (Cmid,), jnp.float32),
        "beta1": 0.1 * jax.random.normal(keys[4], (Cmid,), jnp.float32),
        "mean1": 0.1 * jax.random.normal(keys[5], (Cmid,), jnp.float32),
        "var1": 1.0 + 0.1 * jnp.abs(
            jax.random.normal(keys[6], (Cmid,), jnp.float32)),
        "gamma2": 1.0 + 0.1 * jax.random.normal(keys[7], (Cout,), jnp.float32),
        "beta2": 0.1 * jax.random.normal(keys[8], (Cout,), jnp.float32),
        "mean2": 0.1 * jax.random.normal(keys[9], (Cout,), jnp.float32),
        "var2": 1.0 + 0.1 * jnp.abs(
            jax.random.normal(keys[10], (Cout,), jnp.float32)),
    }

    out = jax.jit(double_conv)(x, params)
    out = jax.block_until_ready(out)
    assert out.shape == (B, Cout, H, W), out.shape
    assert bool(jnp.all(jnp.isfinite(out)))

    ref = double_conv_ref(x, params)
    max_err = float(jnp.max(jnp.abs(out - ref)))
    assert bool(jnp.allclose(out, ref, atol=2e-2, rtol=2e-2)), max_err

    print("KERNEL_OK")
</pallas_src>

<mosaic_0001>
module attributes {stable_mosaic.version = 11 : i64} {
  func.func @_double_conv_kernel(%arg0: i32, %arg1: i32, %arg2: memref<1x16x16x4xbf16, #tpu.memory_space<vmem>>, %arg3: memref<36x32xbf16, #tpu.memory_space<vmem>>, %arg4: memref<1x32xf32, #tpu.memory_space<vmem>>, %arg5: memref<288x32xbf16, #tpu.memory_space<vmem>>, %arg6: memref<1x32xf32, #tpu.memory_space<vmem>>, %arg7: memref<1x32x128xf32, #tpu.memory_space<vmem>>, %arg8: memref<20x18x4xbf16, #tpu.memory_space<vmem>>, %arg9: memref<10x18x32xbf16, #tpu.memory_space<vmem>>) attributes {dimension_semantics = [#tpu.dimension_semantics<parallel>, #tpu.dimension_semantics<arbitrary>], iteration_bounds = array<i64: 2, 2>, scalar_prefetch = 0 : i64, scratch_operands = 2 : i64, tpu.core_type = #tpu.core_type<tc>, window_params = [{transform_indices = @transform_0, window_bounds = array<i64: 1, 16, 16, 4>}, {pipeline_mode = #tpu.pipeline_mode<synchronous>, transform_indices = @transform_1, window_bounds = array<i64: 36, 32>}, {pipeline_mode = #tpu.pipeline_mode<synchronous>, transform_indices = @transform_2, window_bounds = array<i64: 1, 32>}, {pipeline_mode = #tpu.pipeline_mode<synchronous>, transform_indices = @transform_3, window_bounds = array<i64: 288, 32>}, {pipeline_mode = #tpu.pipeline_mode<synchronous>, transform_indices = @transform_4, window_bounds = array<i64: 1, 32>}, {transform_indices = @transform_5, window_bounds = array<i64: 1, 32, 128>}]} {
    %c0_i32 = arith.constant 0 : i32
    %0 = arith.cmpi eq, %arg1, %c0_i32 : i32
    %1 = arith.extui %0 : i1 to i32
    %c0_i32_0 = arith.constant 0 : i32
    %2 = arith.cmpi ne, %1, %c0_i32_0 : i32
    scf.if %2 {
      %cst_78 = arith.constant 0.000000e+00 : bf16
      %92 = vector.broadcast %cst_78 : bf16 to vector<20x18x4xbf16>
      %c0_79 = arith.constant 0 : index
      %c0_80 = arith.constant 0 : index
      %c0_81 = arith.constant 0 : index
      %93 = vector.load %arg8[%c0_79, %c0_80, %c0_81] : memref<20x18x4xbf16, #tpu.memory_space<vmem>>, vector<20x18x4xbf16>
      tpu.vector_store %arg8[%c0_79, %c0_80, %c0_81], %92 {strides = array<i32>} : memref<20x18x4xbf16, #tpu.memory_space<vmem>>, vector<20x18x4xbf16>,
      %c0_82 = arith.constant 0 : index
      %c0_83 = arith.constant 0 : index
      %c0_84 = arith.constant 0 : index
      %c0_85 = arith.constant 0 : index
      %94 = vector.load %arg2[%c0_82, %c0_83, %c0_84, %c0_85] : memref<1x16x16x4xbf16, #tpu.memory_space<vmem>>, vector<1x16x16x4xbf16>
      %95 = vector.shape_cast %94 : vector<1x16x16x4xbf16> to vector<16x16x4xbf16>
      %c2_86 = arith.constant 2 : index
      %c1_87 = arith.constant 1 : index
      %c0_88 = arith.constant 0 : index
      %96 = vector.load %arg8[%c2_86, %c1_87, %c0_88] : memref<20x18x4xbf16, #tpu.memory_space<vmem>>, vector<16x16x4xbf16>
      tpu.vector_store %arg8[%c2_86, %c1_87, %c0_88], %95 {strides = array<i32>} : memref<20x18x4xbf16, #tpu.memory_space<vmem>>, vector<16x16x4xbf16>,
    } else {
    }
    %c8_i32 = arith.constant 8 : i32
    %3 = arith.muli %arg1, %c8_i32 : i32
    %4 = tpu.assume_multiple %3, 8 : i32
    %c0_i32_1 = arith.constant 0 : i32
    %5 = arith.addi %4, %c0_i32_1 : i32
    %6 = arith.index_cast %5 : i32 to index
    %c0 = arith.constant 0 : index
    %c0_2 = arith.constant 0 : index
    %7 = vector.load %arg8[%6, %c0, %c0_2] : memref<20x18x4xbf16, #tpu.memory_space<vmem>>, vector<10x16x4xbf16>
    %8 = vector.shape_cast %7 : vector<10x16x4xbf16> to vector<160x4xbf16>
    %c0_i32_3 = arith.constant 0 : i32
    %9 = arith.addi %4, %c0_i32_3 : i32
    %10 = arith.index_cast %9 : i32 to index
    %c1 = arith.constant 1 : index
    %c0_4 = arith.constant 0 : index
    %11 = vector.load %arg8[%10, %c1, %c0_4] : memref<20x18x4xbf16, #tpu.memory_space<vmem>>, vector<10x16x4xbf16>
    %12 = vector.shape_cast %11 : vector<10x16x4xbf16> to vector<160x4xbf16>
    %c0_i32_5 = arith.constant 0 : i32
    %13 = arith.addi %4, %c0_i32_5 : i32
    %14 = arith.index_cast %13 : i32 to index
    %c2 = arith.constant 2 : index
    %c0_6 = arith.constant 0 : index
    %15 = vector.load %arg8[%14, %c2, %c0_6] : memref<20x18x4xbf16, #tpu.memory_space<vmem>>, vector<10x16x4xbf16>
    %16 = vector.shape_cast %15 : vector<10x16x4xbf16> to vector<160x4xbf16>
    %c1_i32 = arith.constant 1 : i32
    %17 = arith.addi %4, %c1_i32 : i32
    %18 = arith.index_cast %17 : i32 to index
    %c0_7 = arith.constant 0 : index
    %c0_8 = arith.constant 0 : index
    %19 = vector.load %arg8[%18, %c0_7, %c0_8] : memref<20x18x4xbf16, #tpu.memory_space<vmem>>, vector<10x16x4xbf16>
    %20 = vector.shape_cast %19 : vector<10x16x4xbf16> to vector<160x4xbf16>
    %c1_i32_9 = arith.constant 1 : i32
    %21 = arith.addi %4, %c1_i32_9 : i32
    %22 = arith.index_cast %21 : i32 to index
    %c1_10 = arith.constant 1 : index
    %c0_11 = arith.constant 0 : index
    %23 = vector.load %arg8[%22, %c1_10, %c0_11] : memref<20x18x4xbf16, #tpu.memory_space<vmem>>, vector<10x16x4xbf16>
    %24 = vector.shape_cast %23 : vector<10x16x4xbf16> to vector<160x4xbf16>
    %c1_i32_12 = arith.constant 1 : i32
    %25 = arith.addi %4, %c1_i32_12 : i32
    %26 = arith.index_cast %25 : i32 to index
    %c2_13 = arith.constant 2 : index
    %c0_14 = arith.constant 0 : index
    %27 = vector.load %arg8[%26, %c2_13, %c0_14] : memref<20x18x4xbf16, #tpu.memory_space<vmem>>, vector<10x16x4xbf16>
    %28 = vector.shape_cast %27 : vector<10x16x4xbf16> to vector<160x4xbf16>
    %c2_i32 = arith.constant 2 : i32
    %29 = arith.addi %4, %c2_i32 : i32
    %30 = arith.index_cast %29 : i32 to index
    %c0_15 = arith.constant 0 : index
    %c0_16 = arith.constant 0 : index
    %31 = vector.load %arg8[%30, %c0_15, %c0_16] : memref<20x18x4xbf16, #tpu.memory_space<vmem>>, vector<10x16x4xbf16>
    %32 = vector.shape_cast %31 : vector<10x16x4xbf16> to vector<160x4xbf16>
    %c2_i32_17 = arith.constant 2 : i32
    %33 = arith.addi %4, %c2_i32_17 : i32
    %34 = arith.index_cast %33 : i32 to index
    %c1_18 = arith.constant 1 : index
    %c0_19 = arith.constant 0 : index
    %35 = vector.load %arg8[%34, %c1_18, %c0_19] : memref<20x18x4xbf16, #tpu.memory_space<vmem>>, vector<10x16x4xbf16>
    %36 = vector.shape_cast %35 : vector<10x16x4xbf16> to vector<160x4xbf16>
    %c2_i32_20 = arith.constant 2 : i32
    %37 = arith.addi %4, %c2_i32_20 : i32
    %38 = arith.index_cast %37 : i32 to index
    %c2_21 = arith.constant 2 : index
    %c0_22 = arith.constant 0 : index
    %39 = vector.load %arg8[%38, %c2_21, %c0_22] : memref<20x18x4xbf16, #tpu.memory_space<vmem>>, vector<10x16x4xbf16>
    %40 = vector.shape_cast %39 : vector<10x16x4xbf16> to vector<160x4xbf16>
    %41 = tpu.concatenate %8, %12, %16, %20, %24, %28, %32, %36, %40 in 1 : vector<160x4xbf16>, vector<160x4xbf16>, vector<160x4xbf16>, vector<160x4xbf16>, vector<160x4xbf16>, vector<160x4xbf16>, vector<160x4xbf16>, vector<160x4xbf16>, vector<160x4xbf16> -> vector<160x36xbf16>
    %c0_23 = arith.constant 0 : index
    %c0_24 = arith.constant 0 : index
    %42 = vector.load %arg3[%c0_23, %c0_24] : memref<36x32xbf16, #tpu.memory_space<vmem>>, vector<36x32xbf16>
    %cst = arith.constant dense<0.000000e+00> : vector<160x32xf32>
    %43 = tpu.matmul %41, %42, %cst {dimension_numbers = #tpu.dot_dimension_numbers<[1], [0], [0], [1], [0, 0, 1, 1], [], []>} : vector<160x36xbf16>, vector<36x32xbf16>, vector<160x32xf32> -> vector<160x32xf32>
    %c0_25 = arith.constant 0 : index
    %c0_26 = arith.constant 0 : index
    %44 = vector.load %arg4[%c0_25, %c0_26] : memref<1x32xf32, #tpu.memory_space<vmem>>, vector<1x32xf32>
    %45 = vector.broadcast %44 : vector<1x32xf32> to vector<160x32xf32>
    %46 = arith.addf %43, %45 : vector<160x32xf32>
    %cst_27 = arith.constant 0.000000e+00 : f32
    %47 = vector.broadcast %cst_27 : f32 to vector<160x32xf32>
    %48 = arith.maximumf %46, %47 : vector<160x32xf32>
    %49 = vector.shape_cast %48 : vector<160x32xf32> to vector<10x16x32xf32>
    %50 = arith.truncf %49 : vector<10x16x32xf32> to vector<10x16x32xbf16>
    %cst_28 = arith.constant 0.000000e+00 : bf16
    %51 = vector.broadcast %cst_28 : bf16 to vector<10x1x32xbf16>
    %c0_29 = arith.constant 0 : index
    %c0_30 = arith.constant 0 : index
    %c0_31 = arith.constant 0 : index
    %52 = vector.load %arg9[%c0_29, %c0_30, %c0_31] : memref<10x18x32xbf16, #tpu.memory_space<vmem>>, vector<10x1x32xbf16>
    tpu.vector_store %arg9[%c0_29, %c0_30, %c0_31], %51 {strides = array<i32>} : memref<10x18x32xbf16, #tpu.memory_space<vmem>>, vector<10x1x32xbf16>,
    %cst_32 = arith.constant 0.000000e+00 : bf16
    %53 = vector.broadcast %cst_32 : bf16 to vector<10x1x32xbf16>
    %c0_33 = arith.constant 0 : index
    %c17 = arith.constant 17 : index
    %c0_34 = arith.constant 0 : index
    %54 = vector.load %arg9[%c0_33, %c17, %c0_34] : memref<10x18x32xbf16, #tpu.memory_space<vmem>>, vector<10x1x32xbf16>
    tpu.vector_store %arg9[%c0_33, %c17, %c0_34], %53 {strides = array<i32>} : memref<10x18x32xbf16, #tpu.memory_space<vmem>>, vector<10x1x32xbf16>,
    %c0_35 = arith.constant 0 : index
    %c1_36 = arith.constant 1 : index
    %c0_37 = arith.constant 0 : index
    %55 = vector.load %arg9[%c0_35, %c1_36, %c0_37] : memref<10x18x32xbf16, #tpu.memory_space<vmem>>, vector<10x16x32xbf16>
    tpu.vector_store %arg9[%c0_35, %c1_36, %c0_37], %50 {strides = array<i32>} : memref<10x18x32xbf16, #tpu.memory_space<vmem>>, vector<10x16x32xbf16>,
    %c0_i32_38 = arith.constant 0 : i32
    %56 = arith.cmpi eq, %arg1, %c0_i32_38 : i32
    %57 = arith.extui %56 : i1 to i32
    %c0_i32_39 = arith.constant 0 : i32
    %58 = arith.cmpi ne, %57, %c0_i32_39 : i32
    scf.if %58 {
      %cst_78 = arith.constant 0.000000e+00 : bf16
      %92 = vector.broadcast %cst_78 : bf16 to vector<1x18x32xbf16>
      %c0_79 = arith.constant 0 : index
      %c0_80 = arith.constant 0 : index
      %c0_81 = arith.constant 0 : index
      %93 = vector.load %arg9[%c0_79, %c0_80, %c0_81] : memref<10x18x32xbf16, #tpu.memory_space<vmem>>, vector<1x18x32xbf16>
      tpu.vector_store %arg9[%c0_79, %c0_80, %c0_81], %92 {strides = array<i32>} : memref<10x18x32xbf16, #tpu.memory_space<vmem>>, vector<1x18x32xbf16>,
    } else {
    }
    %c1_i32_40 = arith.constant 1 : i32
    %59 = arith.cmpi eq, %arg1, %c1_i32_40 : i32
    %60 = arith.extui %59 : i1 to i32
    %c0_i32_41 = arith.constant 0 : i32
    %61 = arith.cmpi ne, %60, %c0_i32_41 : i32
    scf.if %61 {
      %cst_78 = arith.constant 0.000000e+00 : bf16
      %92 = vector.broadcast %cst_78 : bf16 to vector<1x18x32xbf16>
      %c9 = arith.constant 9 : index
      %c0_79 = arith.constant 0 : index
      %c0_80 = arith.constant 0 : index
      %93 = vector.load %arg9[%c9, %c0_79, %c0_80] : memref<10x18x32xbf16, #tpu.memory_space<vmem>>, vector<1x18x32xbf16>
      tpu.vector_store %arg9[%c9, %c0_79, %c0_80], %92 {strides = array<i32>} : memref<10x18x32xbf16, #tpu.memory_space<vmem>>, vector<1x18x32xbf16>,
    } else {
    }
    %c0_42 = arith.constant 0 : index
    %c0_43 = arith.constant 0 : index
    %c0_44 = arith.constant 0 : index
    %62 = vector.load %arg9[%c0_42, %c0_43, %c0_44] : memref<10x18x32xbf16, #tpu.memory_space<vmem>>, vector<8x16x32xbf16>
    %63 = vector.shape_cast %62 : vector<8x16x32xbf16> to vector<128x32xbf16>
    %c0_45 = arith.constant 0 : index
    %c1_46 = arith.constant 1 : index
    %c0_47 = arith.constant 0 : index
    %64 = vector.load %arg9[%c0_45, %c1_46, %c0_47] : memref<10x18x32xbf16, #tpu.memory_space<vmem>>, vector<8x16x32xbf16>
    %65 = vector.shape_cast %64 : vector<8x16x32xbf16> to vector<128x32xbf16>
    %c0_48 = arith.constant 0 : index
    %c2_49 = arith.constant 2 : index
    %c0_50 = arith.constant 0 : index
    %66 = vector.load %arg9[%c0_48, %c2_49, %c0_50] : memref<10x18x32xbf16, #tpu.memory_space<vmem>>, vector<8x16x32xbf16>
    %67 = vector.shape_cast %66 : vector<8x16x32xbf16> to vector<128x32xbf16>
    %c1_51 = arith.constant 1 : index
    %c0_52 = arith.constant 0 : index
    %c0_53 = arith.constant 0 : index
    %68 = vector.load %arg9[%c1_51, %c0_52, %c0_53] : memref<10x18x32xbf16, #tpu.memory_space<vmem>>, vector<8x16x32xbf16>
    %69 = vector.shape_cast %68 : vector<8x16x32xbf16> to vector<128x32xbf16>
    %c1_54 = arith.constant 1 : index
    %c1_55 = arith.constant 1 : index
    %c0_56 = arith.constant 0 : index
    %70 = vector.load %arg9[%c1_54, %c1_55, %c0_56] : memref<10x18x32xbf16, #tpu.memory_space<vmem>>, vector<8x16x32xbf16>
    %71 = vector.shape_cast %70 : vector<8x16x32xbf16> to vector<128x32xbf16>
    %c1_57 = arith.constant 1 : index
    %c2_58 = arith.constant 2 : index
    %c0_59 = arith.constant 0 : index
    %72 = vector.load %arg9[%c1_57, %c2_58, %c0_59] : memref<10x18x32xbf16, #tpu.memory_space<vmem>>, vector<8x16x32xbf16>
    %73 = vector.shape_cast %72 : vector<8x16x32xbf16> to vector<128x32xbf16>
    %c2_60 = arith.constant 2 : index
    %c0_61 = arith.constant 0 : index
    %c0_62 = arith.constant 0 : index
    %74 = vector.load %arg9[%c2_60, %c0_61, %c0_62] : memref<10x18x32xbf16, #tpu.memory_space<vmem>>, vector<8x16x32xbf16>
    %75 = vector.shape_cast %74 : vector<8x16x32xbf16> to vector<128x32xbf16>
    %c2_63 = arith.constant 2 : index
    %c1_64 = arith.constant 1 : index
    %c0_65 = arith.constant 0 : index
    %76 = vector.load %arg9[%c2_63, %c1_64, %c0_65] : memref<10x18x32xbf16, #tpu.memory_space<vmem>>, vector<8x16x32xbf16>
    %77 = vector.shape_cast %76 : vector<8x16x32xbf16> to vector<128x32xbf16>
    %c2_66 = arith.constant 2 : index
    %c2_67 = arith.constant 2 : index
    %c0_68 = arith.constant 0 : index
    %78 = vector.load %arg9[%c2_66, %c2_67, %c0_68] : memref<10x18x32xbf16, #tpu.memory_space<vmem>>, vector<8x16x32xbf16>
    %79 = vector.shape_cast %78 : vector<8x16x32xbf16> to vector<128x32xbf16>
    %80 = tpu.concatenate %63, %65, %67, %69, %71, %73, %75, %77, %79 in 1 : vector<128x32xbf16>, vector<128x32xbf16>, vector<128x32xbf16>, vector<128x32xbf16>, vector<128x32xbf16>, vector<128x32xbf16>, vector<128x32xbf16>, vector<128x32xbf16>, vector<128x32xbf16> -> vector<128x288xbf16>
    %c0_69 = arith.constant 0 : index
    %c0_70 = arith.constant 0 : index
    %81 = vector.load %arg5[%c0_69, %c0_70] : memref<288x32xbf16, #tpu.memory_space<vmem>>, vector<288x32xbf16>
    %cst_71 = arith.constant dense<0.000000e+00> : vector<128x32xf32>
    %82 = tpu.matmul %80, %81, %cst_71 {dimension_numbers = #tpu.dot_dimension_numbers<[1], [0], [0], [1], [0, 0, 1, 1], [], []>} : vector<128x288xbf16>, vector<288x32xbf16>, vector<128x32xf32> -> vector<128x32xf32>
    %c0_72 = arith.constant 0 : index
    %c0_73 = arith.constant 0 : index
    %83 = vector.load %arg6[%c0_72, %c0_73] : memref<1x32xf32, #tpu.memory_space<vmem>>, vector<1x32xf32>
    %84 = vector.broadcast %83 : vector<1x32xf32> to vector<128x32xf32>
    %85 = arith.addf %82, %84 : vector<128x32xf32>
    %cst_74 = arith.constant 0.000000e+00 : f32
    %86 = vector.broadcast %cst_74 : f32 to vector<128x32xf32>
    %87 = arith.maximumf %85, %86 : vector<128x32xf32>
    %88 = tpu.transpose %87, [1, 0] : vector<128x32xf32> -> vector<32x128xf32>
    %c0_75 = arith.constant 0 : index
    %c0_76 = arith.constant 0 : index
    %c0_77 = arith.constant 0 : index
    %89 = vector.load %arg7[%c0_75, %c0_76, %c0_77] : memref<1x32x128xf32, #tpu.memory_space<vmem>>, vector<1x32x128xf32>
    %90 = vector.shape_cast %89 : vector<1x32x128xf32> to vector<32x128xf32>
    %91 = vector.shape_cast %88 : vector<32x128xf32> to vector<1x32x128xf32>
    tpu.vector_store %arg7[%c0_75, %c0_76, %c0_77], %91 {strides = array<i32>} : memref<1x32x128xf32, #tpu.memory_space<vmem>>, vector<1x32x128xf32>,
    return
  }
  func.func @transform_0(%arg0: i32, %arg1: i32) -> (i32, i32, i32, i32) {
    %c0_i32 = arith.constant 0 : i32
    %c0_i32_0 = arith.constant 0 : i32
    %c0_i32_1 = arith.constant 0 : i32
    %c0_i32_2 = arith.constant 0 : i32
    return %arg0, %c0_i32, %c0_i32_0, %c0_i32_1 : i32, i32, i32, i32
  }
  func.func @transform_1(%arg0: i32, %arg1: i32) -> (i32, i32) {
    %c0_i32 = arith.constant 0 : i32
    %c0_i32_0 = arith.constant 0 : i32
    %c0_i32_1 = arith.constant 0 : i32
    return %c0_i32, %c0_i32_0 : i32, i32
  }
  func.func @transform_2(%arg0: i32, %arg1: i32) -> (i32, i32) {
    %c0_i32 = arith.constant 0 : i32
    %c0_i32_0 = arith.constant 0 : i32
    %c0_i32_1 = arith.constant 0 : i32
    return %c0_i32, %c0_i32_0 : i32, i32
  }
  func.func @transform_3(%arg0: i32, %arg1: i32) -> (i32, i32) {
    %c0_i32 = arith.constant 0 : i32
    %c0_i32_0 = arith.constant 0 : i32
    %c0_i32_1 = arith.constant 0 : i32
    return %c0_i32, %c0_i32_0 : i32, i32
  }
  func.func @transform_4(%arg0: i32, %arg1: i32) -> (i32, i32) {
    %c0_i32 = arith.constant 0 : i32
    %c0_i32_0 = arith.constant 0 : i32
    %c0_i32_1 = arith.constant 0 : i32
    return %c0_i32, %c0_i32_0 : i32, i32
  }
  func.func @transform_5(%arg0: i32, %arg1: i32) -> (i32, i32, i32) {
    %c0_i32 = arith.constant 0 : i32
    %c0_i32_0 = arith.constant 0 : i32
    return %arg0, %c0_i32, %arg1 : i32, i32, i32
  }
}

</mosaic_0001>

<bundles_post_ra>
// kernel: double_conv.1
= control target key start
LH: loop header
LB: loop body
LE: loop exit
PB: predicated region body
PF: predicated region fallthrough
CT: control target
= control target key end

     0   :  { %s5682_s18 = smov 0   ;;  %s5684_s19 = smov 0   ;;  %s7774_s0 = inlined_call_operand.vmem [shape: bf16[2,16,16,4], index: 0, kind: input, shape index: {}]   ;;  %s7775_s1 = inlined_call_operand.vmem [shape: bf16[36,32], index: 1, kind: input, shape index: {}]   ;;  %s7776_s2 = inlined_call_operand.vmem [shape: f32[1,32], index: 2, kind: input, shape index: {}]   ;;  %s7777_s3 = inlined_call_operand.vmem [shape: bf16[288,32], index: 3, kind: input, shape index: {}]   ;;  %s7778_s4 = inlined_call_operand.vmem [shape: f32[1,32], index: 4, kind: input, shape index: {}]   ;;  %s7779_s5 = inlined_call_operand.vmem [shape: f32[2,32,256], index: 5, kind: output, shape index: {}]  }
   0x1   :  { %s5686_s20 = smov 0   ;;  %s5688_s21 = smov 0  }
   0x2   :  { %s5690_s22 = smov 0   ;;  %s5692_s23 = smov 0  }
   0x3   :  { %s5694_s24 = smov 0  }
   0x4 LB: > { %s24_s25 = sadd.s32 1, %s5629_s22  ;;  %s27_s26 = sadd.s32 1, %s5633_s23  ;;  %s5637_s24 = sphi %s5694_s24, %s15_s24   ;;  %s5633_s23 = sphi %s5692_s23, %s7813_s23   ;;  %s5629_s22 = sphi %s5690_s22, %s7812_s22   ;;  %s5625_s21 = sphi %s5688_s21, %s7811_s21   ;;  %s5621_s20 = sphi %s5686_s20, %s7810_s20   ;;  %s5617_s19 = sphi %s5684_s19, %s7809_s19   ;;  %s5613_s18 = sphi %s5682_s18, %s7808_s18  }
   0x5   : > { %p25_p0 = scmp.ge.s32.totalorder %s24_s25, 2  ;;  %s4954_s27 = sadd.s32 4294967295, %s5637_s24  }
   0x6   : > { %p156_p1 = scmp.ne.s32.totalorder %s5617_s19, %s5613_s18  ;;  %p157_p2 = scmp.eq.s32.totalorder %s4954_s27, 3 }
   0x7   : > { %s7815_s25 = smov (%p25_p0, %s24_s25), 0  ;;  %s7817_s26 = smov (!%p25_p0, %s27_s26), %s5633_s23 }
   0x8   : > { %s142_s28 = ssub.s32 %s5629_s22, %s7815_s25  ;;  %p29_p3 = scmp.ge.s32.totalorder %s7817_s26, 2 }
   0x9   : > { %p4958_p4 = scmp.ge.s32.totalorder %s5637_s24, 1  ;;  %p5728_p5 = por %p157_p2, %p156_p1 }
   0xa   : > { %p201_p6 = scmp.lt.s32.totalorder %s5637_s24, 5  ;;  %s7819_s26 = smov (%p29_p3, %s7817_s26), 0 }
   0xb   : > { %s141_s30 = ssub.s32 %s5633_s23, %s7819_s26  ;;  %s146_s7 = sadd.s32 1, %s5617_s19 }
   0xc   : > { %p202_p7 = pnand %p4958_p4, %p201_p6  ;;  %s143_s6 = sor.u32 %s142_s28, %s141_s30 }
   0xd   : > { %p144_p8 = scmp.eq.s32.totalorder %s143_s6, 0  ;;  %s225_s9 = sand.u32 (!%p202_p7), 1, %s5613_s18  }
   0xe   : > { %205 = sbr.rel (%p202_p7) target bundleno = 1119 (0x45f), region = 40  ;;  %p228_p9 = scmp.lt.s32.totalorder (!%p202_p7), %s5625_s21, 1 }
   0xf   : > { %s5739_s8 = scalar_select %p144_p8, %s5617_s19, %s146_s7  }
  0x10   : > { %s4959_s10 = sshll.u32 (!%p202_p7), %s225_s9, 5  ;;  %p4962_p10 = scmp.ne.s32.totalorder (!%p202_p7), %s5621_s20, 0 }
  0x11   : > { %s5749_s16 = scalar_lea.vmem (!%p202_p7), [#allocation4], %s4959_s10 }
  0x13   : > { %s229_s11 = scalar_select %p228_p9, %s5625_s21, 1 }
  0x14   : > { %237 = sbr.rel (%p4962_p10) target bundleno = 134 (0x86), region = 44 }
  0x15   : > { %s5425_s12 = sshll.u32 %s229_s11, 7 }
  0x16   : > { %s5747_s15 = scalar_lea.vmem %s7774_s0, %s5425_s12 }
  0x19   : > { %vm238_vm0 = vcmask 27648   ;;  %v5639_v0 = vmov 0   ;;  %vm241_vm1 = vcmask 24576   ;;  %v300_v1 = vld [vmem:[%s5747_s15] sm:$0xf] }
  0x1a   : > { %246 = vst.msk [vmem:[#allocation2 + $0x18] sm:$0xf] %vm238_vm0, %v5639_v0  ;;  %v301_v2 = vld [vmem:[%s5747_s15 + $0x4] sm:$0xf]  ;;  %v302_v3 = vld [vmem:[%s5747_s15 + $0x8] sm:$0xf] }
  0x1b   : > { %239 = vst.msk [vmem:[#allocation2] sm:$0xf] %vm238_vm0, %v5639_v0  ;;  %v336_v4 = vshrl.u32 %v300_v1, 16  ;;  %v344_v5 = vshrl.u32 %v301_v2, 16  ;;  %v353_v6 = vshrl.u32 %v302_v3, 16  ;;  %v339_v14 = vshll.u32 %v300_v1, 16 }
  0x1c   : > { %240 = vst.msk [vmem:[#allocation2 + $0x4] sm:$0xf] %vm238_vm0, %v5639_v0  ;;  %v5846_v7 = vld [vmem:[%s5747_s15 + $0xc] sm:$0xf]  ;;  %v5849_v8 = vld [vmem:[%s5747_s15 + $0x10] sm:$0xf] }
  0x1d   : > { %243 = vst.msk [vmem:[#allocation2 + $0xc] sm:$0xf] %vm238_vm0, %v5639_v0  ;;  %v5854_v9 = vld [vmem:[%s5747_s15 + $0x14] sm:$0xf]  ;;  %v5857_v10 = vld [vmem:[%s5747_s15 + $0x18] sm:$0xf] }
  0x1e   : > { %244 = vst.msk [vmem:[#allocation2 + $0x10] sm:$0xf] %vm238_vm0, %v5639_v0  ;;  %v5861_v11 = vrot.slane %v336_v4, 7  ;;  %vm657_vm2 = vsmask.f32 7938  ;;  %v361_v12 = vshrl.u32 %v5846_v7, 16 }
  0x1f   : > { %247 = vst.msk [vmem:[#allocation2 + $0x1c] sm:$0xf] %vm238_vm0, %v5639_v0  ;;  %vm332_vm3 = vsmask.f32 256  ;;  %v370_v13 = vshrl.u32 %v5849_v8, 16  ;;  %v5869_v15 = vrot.slane %v344_v5, 7  ;;  %vm5921_vm5 = vmand %vm238_vm0, %vm657_vm2 }
  0x20   : > { %249 = vst.msk [vmem:[#allocation2 + $0x24] sm:$0xf] %vm238_vm0, %v5639_v0  ;;  %v378_v16 = vshrl.u32 %v5854_v9, 16  ;;  %v387_v17 = vshrl.u32 %v5857_v10, 16  ;;  %vm333_vm4 = vsmask.f32 4368  ;;  %v341_v30 = vor.u32 %v339_v14, %v5861_v11  ;;  %vm5945_vm7 = vmand %vm241_vm1, %vm332_vm3 }
  0x21   : > { %250 = vst.msk [vmem:[#allocation2 + $0x28] sm:$0xf] %vm238_vm0, %v5639_v0  ;;  %v347_v18 = vshll.u32 %v301_v2, 16  ;;  %v5875_v19 = vrot.slane %v353_v6, 7  ;;  %v342_v20 = vrot.slane %v5861_v11, 4  ;;  %v356_v21 = vshll.u32 %v302_v3, 16  ;;  %vm5933_vm6 = vmor %vm332_vm3, %vm333_vm4 }
  0x22   : > { %252 = vst.msk [vmem:[#allocation2 + $0x30] sm:$0xf] %vm238_vm0, %v5639_v0  ;;  %v5881_v22 = vld [vmem:[%s5747_s15 + $0x1c] sm:$0xf]  ;;  %v5885_v23 = vrot.slane %v361_v12, 7  ;;  %v5887_v24 = vrot.slane %v370_v13, 7 }
  0x23   : > { %253 = vst.msk [vmem:[#allocation2 + $0x34] sm:$0xf] %vm238_vm0, %v5639_v0  ;;  %v5890_v25 = vld [vmem:[%s5747_s15 + $0x20] sm:$0xf]  ;;  %v351_v26 = vrot.slane %v5869_v15, 4  ;;  %v364_v27 = vshll.u32 %v5846_v7, 16  ;;  %v349_v35 = vor.u32 %v347_v18, %v5869_v15  ;;  %v358_v36 = vor.u32 %v356_v21, %v5875_v19 }
  0x24   : > { %255 = vst.msk [vmem:[#allocation2 + $0x3c] sm:$0xf] %vm238_vm0, %v5639_v0  ;;  %v5896_v28 = vrot.slane %v378_v16, 7  ;;  %v5898_v29 = vrot.slane %v387_v17, 7  ;;  %v659_v31 = vld [vmem:[#allocation2 + $0x18] sm:$0xf] }
  0x25   : > { %256 = vst.msk [vmem:[#allocation2 + $0x40] sm:$0xf] %vm238_vm0, %v5639_v0  ;;  %v359_v32 = vrot.slane %v5875_v19, 4  ;;  %v395_v33 = vshrl.u32 %v5881_v22, 16  ;;  %v5906_v34 = vld [vmem:[%s5747_s15 + $0x24] sm:$0xf]  ;;  %v660_v55 = vsel %vm5921_vm5, %v341_v30, %v659_v31  ;;  %v366_v56 = vor.u32 %v364_v27, %v5885_v23 }
  0x26   : > { %258 = vst.msk [vmem:[#allocation2 + $0x48] sm:$0xf] %vm238_vm0, %v5639_v0  ;;  %v373_v38 = vshll.u32 %v5849_v8, 16  ;;  %v404_v39 = vshrl.u32 %v5890_v25, 16  ;;  %v5915_v40 = vld [vmem:[%s5747_s15 + $0x28] sm:$0xf]  ;;  %v350_v61 = vsel %vm5933_vm6, %v342_v20, %v349_v35 }
  0x27   : > { %259 = vst.msk [vmem:[#allocation2 + $0x4c] sm:$0xf] %vm238_vm0, %v5639_v0  ;;  %v668_v37 = vld [vmem:[#allocation2 + $0x24] sm:$0xf]  ;;  %v368_v42 = vrot.slane %v5885_v23, 4  ;;  %v376_v43 = vrot.slane %v5887_v24, 4  ;;  %v367_v13 = vsel %vm5933_vm6, %v359_v32, %v366_v56 }
  0x28   : > { %261 = vst.msk [vmem:[#allocation2 + $0x54] sm:$0xf] %vm238_vm0, %v5639_v0  ;;  %v381_v44 = vshll.u32 %v5854_v9, 16  ;;  %v390_v45 = vshll.u32 %v5857_v10, 16  ;;  %v385_v47 = vrot.slane %v5896_v28, 4  ;;  %v393_v48 = vrot.slane %v5898_v29, 4 }
  0x29   : > { %262 = vst.msk [vmem:[#allocation2 + $0x58] sm:$0xf] %vm238_vm0, %v5639_v0  ;;  %v398_v49 = vshll.u32 %v5881_v22, 16  ;;  %v412_v50 = vshrl.u32 %v5906_v34, 16  ;;  %v5949_v53 = vrot.slane %v395_v33, 7  ;;  %v421_v54 = vshrl.u32 %v5915_v40, 16 }
  0x2a   : > { %264 = vst.msk [vmem:[#allocation2 + $0x60] sm:$0xf] %vm238_vm0, %v5639_v0  ;;  %v675_v57 = vld [vmem:[#allocation2 + $0x30] sm:$0xf]  ;;  %v5957_v58 = vrot.slane %v404_v39, 7  ;;  %v407_v59 = vshll.u32 %v5890_v25, 16  ;;  %v669_v62 = vsel %vm5921_vm5, %v358_v36, %v668_v37  ;;  %v375_v63 = vor.u32 %v373_v38, %v5887_v24 }
  0x2b   : > { %265 = vst.msk [vmem:[#allocation2 + $0x64] sm:$0xf] %vm238_vm0, %v5639_v0  ;;  %v5961_v60 = vld [vmem:[%s5747_s15 + $0x2c] sm:$0xf]  ;;  %v383_v1 = vor.u32 %v381_v44, %v5896_v28  ;;  %v5972_v2 = vld [vmem:[%s5747_s15 + $0x30] sm:$0xf]  ;;  %v392_v6 = vor.u32 %v390_v45, %v5898_v29  ;;  %v400_v19 = vor.u32 %v398_v49, %v5949_v53 }
  0x2c   : > { %267 = vst.msk [vmem:[#allocation2 + $0x6c] sm:$0xf] %vm238_vm0, %v5639_v0  ;;  %v5975_v3 = vld [vmem:[%s5747_s15 + $0x34] sm:$0xf]  ;;  %v682_v7 = vld [vmem:[#allocation2 + $0x3c] sm:$0xf]  ;;  %v676_v18 = vsel %vm5921_vm5, %v375_v63, %v675_v57  ;;  %v409_v20 = vor.u32 %v407_v59, %v5957_v58 }
  0x2d   : > { %268 = vst.msk [vmem:[#allocation2 + $0x70] sm:$0xf] %vm238_vm0, %v5639_v0  ;;  %v5982_v8 = vrot.slane %v412_v50, 7  ;;  %v415_v9 = vshll.u32 %v5906_v34, 16  ;;  %v402_v10 = vrot.slane %v5949_v53, 4  ;;  %v5986_v11 = vrot.slane %v421_v54, 7 }
  0x2e   : > { %270 = vst.msk [vmem:[#allocation2 + $0x78] sm:$0xf] %vm238_vm0, %v5639_v0  ;;  %v429_v12 = vshrl.u32 %v5961_v60, 16  ;;  %v438_v15 = vshrl.u32 %v5972_v2, 16  ;;  %v446_v16 = vshrl.u32 %v5975_v3, 16  ;;  %v410_v24 = vrot.slane %v5957_v58, 4 }
  0x2f   : > { %271 = vst.msk [vmem:[#allocation2 + $0x7c] sm:$0xf] %vm238_vm0, %v5639_v0  ;;  %v689_v21 = vld [vmem:[#allocation2 + $0x48] sm:$0xf]  ;;  %v6002_v22 = vld [vmem:[%s5747_s15 + $0x38] sm:$0xf]  ;;  %v417_v25 = vor.u32 %v415_v9, %v5982_v8  ;;  %v384_v28 = vsel %vm5933_vm6, %v376_v43, %v383_v1  ;;  %v683_v30 = vsel %vm5921_vm5, %v392_v6, %v682_v7 }
  0x30   : > { %273 = vst.msk [vmem:[#allocation2 + $0x84] sm:$0xf] %vm238_vm0, %v5639_v0  ;;  %v6005_v23 = vld [vmem:[%s5747_s15 + $0x3c] sm:$0xf]  ;;  %v432_v27 = vshll.u32 %v5961_v60, 16  ;;  %v427_v32 = vrot.slane %v5986_v11, 4  ;;  %v690_v49 = vsel %vm5921_vm5, %v409_v20, %v689_v21 }
  0x31   : > { %274 = vst.msk [vmem:[#allocation2 + $0x88] sm:$0xf] %vm238_vm0, %v5639_v0  ;;  %v431_v33 = vrot.slane %v429_v12, 7  ;;  %v696_v37 = vld [vmem:[#allocation2 + $0x54] sm:$0xf]  ;;  %v455_v38 = vshrl.u32 %v6002_v22, 16  ;;  %v418_v50 = vsel %vm5933_vm6, %v410_v24, %v417_v25 }
  0x32   : > { %276 = vst.msk [vmem:[#allocation2 + $0x90] sm:$0xf] %vm238_vm0, %v5639_v0  ;;  %v463_v39 = vshrl.u32 %v6005_v23, 16  ;;  %v441_v43 = vshll.u32 %v5972_v2, 16  ;;  %v6026_v44 = vrot.slane %v446_v16, 7  ;;  %v449_v45 = vshll.u32 %v5975_v3, 16 }
  0x33   : > { %277 = vst.msk [vmem:[#allocation2 + $0x94] sm:$0xf] %vm238_vm0, %v5639_v0  ;;  %v6042_v53 = vld [vmem:[%s5747_s15 + $0x48] sm:$0xf]  ;;  %v436_v29 = vrot.slane %v431_v33, 4  ;;  %v457_v57 = vrot.slane %v455_v38, 7 }
  0x34   : > { %279 = vst.msk [vmem:[#allocation2 + $0x9c] sm:$0xf] %vm238_vm0, %v5639_v0  ;;  %v458_v58 = vshll.u32 %v6002_v22, 16  ;;  %v6048_v59 = vrot.slane %v463_v39, 7  ;;  %v466_v60 = vshll.u32 %v6005_v23, 16  ;;  %v489_v1 = vshrl.u32 %v6042_v53, 16 }
  0x35   : > { %280 = vst.msk [vmem:[#allocation2 + $0xa0] sm:$0xf] %vm238_vm0, %v5639_v0  ;;  %v319_v2 = vld [vmem:[%s5747_s15 + $0x4c] sm:$0xf]  ;;  %v451_v6 = vor.u32 %v449_v45, %v6026_v44  ;;  %v6066_v12 = vld [vmem:[%s5747_s15 + $0x50] sm:$0xf] }
  0x36   : > { %282 = vst.msk [vmem:[#allocation2 + $0xa8] sm:$0xf] %vm238_vm0, %v5639_v0  ;;  %v461_v16 = vrot.slane %v457_v57, 4  ;;  %v6072_v20 = vrot.slane %v489_v1, 7  ;;  %v492_v21 = vshll.u32 %v6042_v53, 16  ;;  %v470_v24 = vrot.slane %v6048_v59, 4 }
  0x37   : > { %283 = vst.msk [vmem:[#allocation2 + $0xac] sm:$0xf] %vm238_vm0, %v5639_v0  ;;  %v322_v39 = vld [vmem:[%s5747_s15 + $0x58] sm:$0xf]  ;;  %v509_v45 = vshll.u32 %v6066_v12, 16 }
  0x38   : > { %285 = vst.msk [vmem:[#allocation2 + $0xb4] sm:$0xf] %vm238_vm0, %v5639_v0 }
  0x39   : > { %286 = vst.msk [vmem:[#allocation2 + $0xb8] sm:$0xf] %vm238_vm0, %v5639_v0 }
  0x3a   : > { %288 = vst.msk [vmem:[#allocation2 + $0xc0] sm:$0xf] %vm238_vm0, %v5639_v0 }
  0x3b   : > { %289 = vst.msk [vmem:[#allocation2 + $0xc4] sm:$0xf] %vm238_vm0, %v5639_v0 }
  0x3c   : > { %291 = vst.msk [vmem:[#allocation2 + $0xcc] sm:$0xf] %vm238_vm0, %v5639_v0 }
  0x3d   : > { %292 = vst.msk [vmem:[#allocation2 + $0xd0] sm:$0xf] %vm238_vm0, %v5639_v0 }
  0x3e   : > { %294 = vst.msk [vmem:[#allocation2 + $0xd8] sm:$0xf] %vm238_vm0, %v5639_v0 }
  0x3f   : > { %295 = vst.msk [vmem:[#allocation2 + $0xdc] sm:$0xf] %vm238_vm0, %v5639_v0 }
  0x40   : > { %297 = vst.msk [vmem:[#allocation2 + $0xe4] sm:$0xf] %vm238_vm0, %v5639_v0 }
  0x41   : > { %298 = vst.msk [vmem:[#allocation2 + $0xe8] sm:$0xf] %vm238_vm0, %v5639_v0 }
  0x42   : > { %248 = vst.msk [vmem:[#allocation2 + $0x20] sm:$0x1] %vm241_vm1, %v5639_v0 }
  0x43   : > { %242 = vst.msk [vmem:[#allocation2 + $0x8] sm:$0x1] %vm241_vm1, %v5639_v0 }
  0x44   : > { %245 = vst.msk [vmem:[#allocation2 + $0x14] sm:$0x1] %vm241_vm1, %v5639_v0 }
  0x45   : > { %251 = vst.msk [vmem:[#allocation2 + $0x2c] sm:$0x1] %vm241_vm1, %v5639_v0 }
  0x46   : > { %254 = vst.msk [vmem:[#allocation2 + $0x38] sm:$0x1] %vm241_vm1, %v5639_v0 }
  0x47   : > { %257 = vst.msk [vmem:[#allocation2 + $0x44] sm:$0x1] %vm241_vm1, %v5639_v0 }
  0x48   : > { %260 = vst.msk [vmem:[#allocation2 + $0x50] sm:$0x1] %vm241_vm1, %v5639_v0 }
  0x49   : > { %263 = vst.msk [vmem:[#allocation2 + $0x5c] sm:$0x1] %vm241_vm1, %v5639_v0  ;;  %v665_v52 = vld [vmem:[#allocation2 + $0x20] sm:$0x1] }
  0x4a   : > { %266 = vst.msk [vmem:[#allocation2 + $0x68] sm:$0x1] %vm241_vm1, %v5639_v0  ;;  %v666_v4 = vsel %vm5945_vm7, %v351_v26, %v665_v52  ;;  %v419_v26 = vrot.slane %v5982_v8, 4  ;;  %v6039_v52 = vld [vmem:[%s5747_s15 + $0x44] sm:$0xf] }
  0x4b   : > { %269 = vst.msk [vmem:[#allocation2 + $0x74] sm:$0x1] %vm241_vm1, %v5639_v0  ;;  %v480_v63 = vshrl.u32 %v6039_v52, 16 }
  0x4c   : > { %272 = vst.msk [vmem:[#allocation2 + $0x80] sm:$0x1] %vm241_vm1, %v5639_v0  ;;  %v672_v5 = vld [vmem:[#allocation2 + $0x2c] sm:$0x1] }
  0x4d   : > { %275 = vst.msk [vmem:[#allocation2 + $0x8c] sm:$0x1] %vm241_vm1, %v5639_v0  ;;  %v679_v14 = vld [vmem:[#allocation2 + $0x38] sm:$0x1]  ;;  %v673_v17 = vsel %vm5945_vm7, %v368_v42, %v672_v5  ;;  %v440_v42 = vrot.slane %v438_v15, 7 }
  0x4e   : > { %278 = vst.msk [vmem:[#allocation2 + $0x98] sm:$0x1] %vm241_vm1, %v5639_v0  ;;  %v686_v31 = vld [vmem:[#allocation2 + $0x44] sm:$0x1]  ;;  %v680_v34 = vsel %vm5945_vm7, %v385_v47, %v679_v14  ;;  %v401_v47 = vsel %vm5933_vm6, %v393_v48, %v400_v19  ;;  %v460_v14 = vor.u32 %v458_v58, %v457_v57  ;;  %v710_v15 = vld [vmem:[#allocation2 + $0x6c] sm:$0xf] }
  0x4f   : > { %281 = vst.msk [vmem:[#allocation2 + $0xa4] sm:$0x1] %vm241_vm1, %v5639_v0  ;;  %v693_v35 = vld [vmem:[#allocation2 + $0x50] sm:$0x1]  ;;  %v687_v54 = vsel %vm5945_vm7, %v402_v10, %v686_v31  ;;  %v443_v3 = vor.u32 %v441_v43, %v440_v42  ;;  %v444_v5 = vrot.slane %v440_v42, 4  ;;  %v483_v19 = vshll.u32 %v6039_v52, 16 }
  0x50   : > { %284 = vst.msk [vmem:[#allocation2 + $0xb0] sm:$0x1] %vm241_vm1, %v5639_v0  ;;  %v700_v56 = vld [vmem:[#allocation2 + $0x5c] sm:$0x1]  ;;  %v494_v43 = vor.u32 %v492_v21, %v6072_v20  ;;  %v523_v52 = vshrl.u32 %v322_v39, 16 }
  0x51   : > { %287 = vst.msk [vmem:[#allocation2 + $0xbc] sm:$0x1] %vm241_vm1, %v5639_v0  ;;  %v701_v9 = vsel %vm5945_vm7, %v436_v29, %v700_v56  ;;  %v707_v10 = vld [vmem:[#allocation2 + $0x68] sm:$0x1]  ;;  %v452_v23 = vsel %vm5933_vm6, %v444_v5, %v451_v6 }
  0x52   : > { %290 = vst.msk [vmem:[#allocation2 + $0xc8] sm:$0x1] %vm241_vm1, %v5639_v0  ;;  %v714_v25 = vld [vmem:[#allocation2 + $0x74] sm:$0x1]  ;;  %v525_v58 = vrot.slane %v523_v52, 7 }
  0x53   : > { %293 = vst.msk [vmem:[#allocation2 + $0xd4] sm:$0x1] %vm241_vm1, %v5639_v0  ;;  %v721_v38 = vld [vmem:[#allocation2 + $0x80] sm:$0x1]  ;;  %v715_v53 = vsel %vm5945_vm7, %v470_v24, %v714_v25 }
  0x54   : > { %296 = vst.msk [vmem:[#allocation2 + $0xe0] sm:$0x1] %vm241_vm1, %v5639_v0  ;;  %v728_v56 = vld [vmem:[#allocation2 + $0x8c] sm:$0x1] }
  0x55   : > { %299 = vst.msk [vmem:[#allocation2 + $0xec] sm:$0x1] %vm241_vm1, %v5639_v0  ;;  %v424_v0 = vshll.u32 %v5915_v40, 16  ;;  %v6023_v40 = vld [vmem:[%s5747_s15 + $0x40] sm:$0xf] }
  0x56   : > { %661 = vst [vmem:[#allocation2 + $0x18] sm:$0xf] %v660_v55  ;;  %v434_v55 = vor.u32 %v432_v27, %v431_v33  ;;  %v472_v48 = vshrl.u32 %v6023_v40, 16  ;;  %v475_v7 = vshll.u32 %v6023_v40, 16  ;;  %v506_v27 = vshrl.u32 %v6066_v12, 16 }
  0x57   : > { %662 = vst.msk [vmem:[#allocation2 + $0x1c] sm:$0xf] %vm238_vm0, %v350_v61  ;;  %v426_v36 = vor.u32 %v424_v0, %v5986_v11  ;;  %v694_v61 = vsel %vm5945_vm7, %v419_v26, %v693_v35  ;;  %v497_v0 = vshrl.u32 %v319_v2, 16  ;;  %v717_v26 = vld [vmem:[#allocation2 + $0x78] sm:$0xf]  ;;  %v711_v35 = vsel %vm5921_vm5, %v460_v14, %v710_v15 }
  0x58   : > { %667 = vst [vmem:[#allocation2 + $0x20] sm:$0x1] %v666_v4  ;;  %v703_v4 = vld [vmem:[#allocation2 + $0x60] sm:$0xf]  ;;  %v435_v8 = vsel %vm5933_vm6, %v427_v32, %v434_v55  ;;  %v474_v11 = vrot.slane %v472_v48, 7  ;;  %v500_v32 = vshll.u32 %v319_v2, 16 }
  0x59   : > { %670 = vst [vmem:[#allocation2 + $0x24] sm:$0xf] %v669_v62  ;;  %v697_v62 = vsel %vm5921_vm5, %v426_v36, %v696_v37  ;;  %v704_v22 = vsel %vm5921_vm5, %v443_v3, %v703_v4  ;;  %v499_v31 = vrot.slane %v497_v0, 7  ;;  %v495_v55 = vrot.slane %v6072_v20, 4  ;;  %v323_v48 = vld [vmem:[%s5747_s15 + $0x5c] sm:$0xf] }
  0x5a   : > { %671 = vst.msk [vmem:[#allocation2 + $0x28] sm:$0xf] %vm238_vm0, %v367_v13  ;;  %v453_v13 = vrot.slane %v6026_v44, 4  ;;  %v478_v37 = vrot.slane %v474_v11, 4  ;;  %v724_v44 = vld [vmem:[#allocation2 + $0x84] sm:$0xf] }
  0x5b   : > { %674 = vst [vmem:[#allocation2 + $0x2c] sm:$0x1] %v673_v17  ;;  %v468_v17 = vor.u32 %v466_v60, %v6048_v59  ;;  %v502_v29 = vor.u32 %v500_v32, %v499_v31  ;;  %v504_v57 = vrot.slane %v499_v31, 4  ;;  %v526_v59 = vshll.u32 %v322_v39, 16  ;;  %v324_v2 = vld [vmem:[%s5747_s15 + $0x60] sm:$0xf] }
  0x5c   : > { %677 = vst [vmem:[#allocation2 + $0x30] sm:$0xf] %v676_v18  ;;  %v482_v18 = vrot.slane %v480_v63, 7  ;;  %v531_v60 = vshrl.u32 %v323_v48, 16  ;;  %v731_v63 = vld [vmem:[#allocation2 + $0x90] sm:$0xf]  ;;  %v725_v3 = vsel %vm5921_vm5, %v494_v43, %v724_v44 }
  0x5d   : > { %678 = vst.msk [vmem:[#allocation2 + $0x34] sm:$0xf] %vm238_vm0, %v384_v28  ;;  %v321_v28 = vld [vmem:[%s5747_s15 + $0x54] sm:$0xf]  ;;  %v469_v36 = vsel %vm5933_vm6, %v461_v16, %v468_v17  ;;  %v534_v1 = vshll.u32 %v323_v48, 16  ;;  %v503_v0 = vsel %vm5933_vm6, %v495_v55, %v502_v29  ;;  %v729_v12 = vsel %vm5945_vm7, %v504_v57, %v728_v56 }
  0x5e   : > { %681 = vst [vmem:[#allocation2 + $0x38] sm:$0x1] %v680_v34  ;;  %v514_v33 = vshrl.u32 %v321_v28, 16  ;;  %v708_v34 = vsel %vm5945_vm7, %v453_v13, %v707_v10  ;;  %v485_v40 = vor.u32 %v483_v19, %v482_v18  ;;  %v487_v42 = vrot.slane %v482_v18, 4  ;;  %v738_v14 = vld [vmem:[#allocation2 + $0x9c] sm:$0xf] }
  0x5f   : > { %684 = vst [vmem:[#allocation2 + $0x3c] sm:$0xf] %v683_v30  ;;  %v477_v30 = vor.u32 %v475_v7, %v474_v11  ;;  %v735_v7 = vld [vmem:[#allocation2 + $0x98] sm:$0x1]  ;;  %v540_v10 = vshrl.u32 %v324_v2, 16  ;;  %v543_v11 = vshll.u32 %v324_v2, 16  ;;  %v528_v13 = vor.u32 %v526_v59, %v525_v58 }
  0x60   : > { %685 = vst.msk [vmem:[#allocation2 + $0x40] sm:$0xf] %vm238_vm0, %v401_v47  ;;  %v508_v47 = vrot.slane %v506_v27, 7  ;;  %v325_v15 = vld [vmem:[%s5747_s15 + $0x64] sm:$0xf]  ;;  %v529_v16 = vrot.slane %v525_v58, 4 }
  0x61   : > { %688 = vst [vmem:[#allocation2 + $0x44] sm:$0x1] %v687_v54  ;;  %v718_v54 = vsel %vm5921_vm5, %v477_v30, %v717_v26  ;;  %v542_v18 = vrot.slane %v540_v10, 7  ;;  %v548_v19 = vshrl.u32 %v325_v15, 16  ;;  %v742_v21 = vld [vmem:[#allocation2 + $0xa4] sm:$0x1] }
  0x62   : > { %691 = vst [vmem:[#allocation2 + $0x48] sm:$0xf] %v690_v49  ;;  %v516_v49 = vrot.slane %v514_v33, 7  ;;  %v511_v4 = vor.u32 %v509_v45, %v508_v47  ;;  %v512_v5 = vrot.slane %v508_v47, 4  ;;  %v328_v47 = vld [vmem:[%s5747_s15 + $0x70] sm:$0xf] }
  0x63   : > { %692 = vst.msk [vmem:[#allocation2 + $0x4c] sm:$0xf] %vm238_vm0, %v418_v50  ;;  %v517_v50 = vshll.u32 %v321_v28, 16  ;;  %v545_v27 = vor.u32 %v543_v11, %v542_v18  ;;  %v745_v28 = vld [vmem:[#allocation2 + $0xa8] sm:$0xf]  ;;  %v546_v30 = vrot.slane %v542_v18, 4 }
  0x64   : > { %695 = vst [vmem:[#allocation2 + $0x50] sm:$0x1] %v694_v61  ;;  %v486_v61 = vsel %vm5933_vm6, %v478_v37, %v485_v40  ;;  %v732_v20 = vsel %vm5921_vm5, %v511_v4, %v731_v63  ;;  %v550_v31 = vrot.slane %v548_v19, 7  ;;  %v752_v37 = vld [vmem:[#allocation2 + $0xb4] sm:$0xf]  ;;  %v574_v29 = vshrl.u32 %v328_v47, 16 }
  0x65   : > { %698 = vst [vmem:[#allocation2 + $0x54] sm:$0xf] %v697_v62  ;;  %v722_v62 = vsel %vm5945_vm7, %v487_v42, %v721_v38  ;;  %v519_v6 = vor.u32 %v517_v50, %v516_v49  ;;  %v327_v38 = vld [vmem:[%s5747_s15 + $0x6c] sm:$0xf]  ;;  %v577_v56 = vshll.u32 %v328_v47, 16 }
  0x66   : > { %699 = vst.msk [vmem:[#allocation2 + $0x58] sm:$0xf] %vm238_vm0, %v435_v8  ;;  %v521_v8 = vrot.slane %v516_v49, 4  ;;  %v555_v40 = vrot.slane %v550_v31, 4  ;;  %v565_v43 = vshrl.u32 %v327_v38, 16  ;;  %v568_v45 = vshll.u32 %v327_v38, 16 }
  0x67   : > { %702 = vst [vmem:[#allocation2 + $0x5c] sm:$0x1] %v701_v9  ;;  %v533_v9 = vrot.slane %v531_v60, 7  ;;  %v520_v24 = vsel %vm5933_vm6, %v512_v5, %v519_v6  ;;  %v746_v49 = vsel %vm5921_vm5, %v545_v27, %v745_v28  ;;  %v759_v58 = vld [vmem:[#allocation2 + $0xc0] sm:$0xf] }
  0x68   : > { %705 = vst [vmem:[#allocation2 + $0x60] sm:$0xf] %v704_v22  ;;  %v551_v22 = vshll.u32 %v325_v15, 16  ;;  %v736_v25 = vsel %vm5945_vm7, %v521_v8, %v735_v7  ;;  %v567_v55 = vrot.slane %v565_v43, 7  ;;  %v329_v59 = vld [vmem:[%s5747_s15 + $0x74] sm:$0xf] }
  0x69   : > { %706 = vst.msk [vmem:[#allocation2 + $0x64] sm:$0xf] %vm238_vm0, %v452_v23  ;;  %v536_v17 = vor.u32 %v534_v1, %v533_v9  ;;  %v326_v23 = vld [vmem:[%s5747_s15 + $0x68] sm:$0xf]  ;;  %v538_v26 = vrot.slane %v533_v9, 4  ;;  %v582_v63 = vshrl.u32 %v329_v59, 16 }
  0x6a   : > { %709 = vst [vmem:[#allocation2 + $0x68] sm:$0x1] %v708_v34  ;;  %v557_v32 = vshrl.u32 %v326_v23, 16  ;;  %v560_v33 = vshll.u32 %v326_v23, 16  ;;  %v739_v34 = vsel %vm5921_vm5, %v528_v13, %v738_v14  ;;  %v553_v39 = vor.u32 %v551_v22, %v550_v31  ;;  %v330_v2 = vld [vmem:[%s5747_s15 + $0x78] sm:$0xf] }
  0x6b   : > { %712 = vst [vmem:[#allocation2 + $0x6c] sm:$0xf] %v711_v35  ;;  %v537_v35 = vsel %vm5933_vm6, %v529_v16, %v536_v17  ;;  %v743_v44 = vsel %vm5945_vm7, %v538_v26, %v742_v21  ;;  %v570_v60 = vor.u32 %v568_v45, %v567_v55  ;;  %v585_v1 = vshll.u32 %v329_v59, 16  ;;  %v763_v11 = vld [vmem:[#allocation2 + $0xc8] sm:$0x1] }
  0x6c   : > { %713 = vst.msk [vmem:[#allocation2 + $0x70] sm:$0xf] %vm238_vm0, %v469_v36  ;;  %v749_v36 = vld [vmem:[#allocation2 + $0xb0] sm:$0x1]  ;;  %v559_v42 = vrot.slane %v557_v32, 7  ;;  %v554_v50 = vsel %vm5933_vm6, %v546_v30, %v553_v39  ;;  %v584_v7 = vrot.slane %v582_v63, 7 }
  0x6d   : > { %716 = vst [vmem:[#allocation2 + $0x74] sm:$0x1] %v715_v53  ;;  %v756_v53 = vld [vmem:[#allocation2 + $0xbc] sm:$0x1]  ;;  %v750_v48 = vsel %vm5945_vm7, %v555_v40, %v749_v36  ;;  %v591_v8 = vshrl.u32 %v330_v2, 16  ;;  %v594_v9 = vshll.u32 %v330_v2, 16 }
  0x6e   : > { %719 = vst [vmem:[#allocation2 + $0x78] sm:$0xf] %v718_v54  ;;  %v562_v52 = vor.u32 %v560_v33, %v559_v42  ;;  %v563_v54 = vrot.slane %v559_v42, 4  ;;  %v589_v13 = vrot.slane %v584_v7, 4  ;;  %v766_v16 = vld [vmem:[#allocation2 + $0xcc] sm:$0xf] }
  0x6f   : > { %720 = vst.msk [vmem:[#allocation2 + $0x7c] sm:$0xf] %vm238_vm0, %v486_v61  ;;  %v572_v61 = vrot.slane %v567_v55, 4  ;;  %v593_v14 = vrot.slane %v591_v8, 7 }
  0x70   : > { %723 = vst [vmem:[#allocation2 + $0x80] sm:$0x1] %v722_v62  ;;  %v753_v57 = vsel %vm5921_vm5, %v562_v52, %v752_v37  ;;  %v576_v62 = vrot.slane %v574_v29, 7  ;;  %v764_v19 = vsel %vm5945_vm7, %v589_v13, %v763_v11 }
  0x71   : > { %726 = vst [vmem:[#allocation2 + $0x84] sm:$0xf] %v725_v3  ;;  %v571_v3 = vsel %vm5933_vm6, %v563_v54, %v570_v60  ;;  %v757_v4 = vsel %vm5945_vm7, %v572_v61, %v756_v53  ;;  %v597_v21 = vrot.slane %v593_v14, 4 }
  0x72   : > { %727 = vst.msk [vmem:[#allocation2 + $0x88] sm:$0xf] %vm238_vm0, %v503_v0  ;;  %v579_v5 = vor.u32 %v577_v56, %v576_v62  ;;  %v580_v6 = vrot.slane %v576_v62, 4  ;;  %v331_v0 = vld [vmem:[%s5747_s15 + $0x7c] sm:$0xf] }
  0x73   : > { %730 = vst [vmem:[#allocation2 + $0x8c] sm:$0x1] %v729_v12  ;;  %v587_v12 = vor.u32 %v585_v1, %v584_v7  ;;  %v599_v15 = vshrl.u32 %v331_v0, 16  ;;  %v602_v17 = vshll.u32 %v331_v0, 16 }
  0x74   : > { %733 = vst [vmem:[#allocation2 + $0x90] sm:$0xf] %v732_v20  ;;  %v760_v10 = vsel %vm5921_vm5, %v579_v5, %v759_v58  ;;  %v596_v20 = vor.u32 %v594_v9, %v593_v14 }
  0x75   : > { %734 = vst.msk [vmem:[#allocation2 + $0x94] sm:$0xf] %vm238_vm0, %v520_v24  ;;  %v588_v18 = vsel %vm5933_vm6, %v580_v6, %v587_v12  ;;  %v601_v22 = vrot.slane %v599_v15, 7  ;;  %v770_v24 = vld [vmem:[#allocation2 + $0xd4] sm:$0x1] }
  0x76   : > { %737 = vst [vmem:[#allocation2 + $0x98] sm:$0x1] %v736_v25  ;;  %v767_v23 = vsel %vm5921_vm5, %v596_v20, %v766_v16 }
  0x77   : > { %740 = vst [vmem:[#allocation2 + $0x9c] sm:$0xf] %v739_v34  ;;  %v604_v25 = vor.u32 %v602_v17, %v601_v22  ;;  %v606_v26 = vrot.slane %v601_v22, 4 }
  0x78   : > { %741 = vst.msk [vmem:[#allocation2 + $0xa0] sm:$0xf] %vm238_vm0, %v537_v35 }
  0x79   : > { %744 = vst [vmem:[#allocation2 + $0xa4] sm:$0x1] %v743_v44  ;;  %v605_v27 = vsel %vm5933_vm6, %v597_v21, %v604_v25  ;;  %v771_v28 = vsel %vm5945_vm7, %v606_v26, %v770_v24 }
  0x7a   : > { %747 = vst [vmem:[#allocation2 + $0xa8] sm:$0xf] %v746_v49 }
  0x7b   : > { %748 = vst.msk [vmem:[#allocation2 + $0xac] sm:$0xf] %vm238_vm0, %v554_v50 }
  0x7c   : > { %751 = vst [vmem:[#allocation2 + $0xb0] sm:$0x1] %v750_v48 }
  0x7d   : > { %754 = vst [vmem:[#allocation2 + $0xb4] sm:$0xf] %v753_v57 }
  0x7e   : > { %755 = vst.msk [vmem:[#allocation2 + $0xb8] sm:$0xf] %vm238_vm0, %v571_v3 }
  0x7f   : > { %758 = vst [vmem:[#allocation2 + $0xbc] sm:$0x1] %v757_v4 }
  0x80   : > { %761 = vst [vmem:[#allocation2 + $0xc0] sm:$0xf] %v760_v10 }
  0x81   : > { %762 = vst.msk [vmem:[#allocation2 + $0xc4] sm:$0xf] %vm238_vm0, %v588_v18 }
  0x82   : > { %765 = vst [vmem:[#allocation2 + $0xc8] sm:$0x1] %v764_v19 }
  0x83   : > { %768 = vst [vmem:[#allocation2 + $0xcc] sm:$0xf] %v767_v23 }
  0x84   : > { %769 = vst.msk [vmem:[#allocation2 + $0xd0] sm:$0xf] %vm238_vm0, %v605_v27 }
  0x85   : > { %772 = vst [vmem:[#allocation2 + $0xd4] sm:$0x1] %v771_v28 }
  0x86 PF: > { %s5426_s17 = smul.u32 96, %s5621_s20  ;;  %vm1090_vm8 = vcmask 1042432   ;;  %vm1091_vm9 = vcmask 1046532   ;;  %vm807_vm10 = vsmask.f32 3328  ;;  %s5640_s27 = smov 12  }
  0x87   : > { %vm808_vm11 = vsmask.f32 7440  ;;  %vm6169_vm12 = vmor %vm1090_vm8, %vm1091_vm9  ;;  %s5641_s28 = smov 8   ;;  %s5642_s30 = smov 24   ;;  %vm2614_vm14 = vcmask 1041408   ;;  %vm2391_vm15 = vcmask 31744  }
  0x88   : > { %s6163_s18 = scalar_lea.vmem [#allocation2], %s5426_s17  ;;  %vm6198_vm13 = vmor %vm807_vm10, %vm808_vm11  ;;  %s5643_s6 = smov 32   ;;  %vm2422_vm0 = vcmask 64512   ;;  %vm2443_vm1 = vcmask 97280   ;;  %vm2464_vm2 = vcmask 130048   ;;  %vm2485_vm3 = vcmask 162816  }
  0x89   : > { %s5644_s7 = smov 4   ;;  %s5645_s9 = smov 16   ;;  %vm2506_vm4 = vcmask 195584   ;;  %vm7781_vm5 = vcmask 228352   ;;  %vm2548_vm6 = vcmask 261120   ;;  %vm7782_vm7 = vcmask 293888  }
  0x8a   : > { %s5646_s10 = smov 28   ;;  %s5647_s11 = smov 20   ;;  %vm7780_vm8 = vcmask 253952   ;;  %vm2718_vm9 = vsmask.f32 256 }
  0x8b   : > { %vm6917_vm10 = vmand %vm7780_vm8, %vm2718_vm9  ;;  %vm2750_vm11 = vsmask.f32 7938 }
  0x8c   : > { %v5437_v41 = vld [vmem:[%s6163_s18 + $0xc] sm:$0xff]  ;;  %v778_v46 = vld [vmem:[%s6163_s18 + $0x4] sm:$0xf]  ;;  %v797_v51 = vld [vmem:[%s6163_s18 + $0x8] sm:$0x1] }
  0x8d   : > { %v830_v30 = vshll.u32 %v797_v51, 16  ;;  %v1050_v31 = vld [vmem:[%s6163_s18] sm:$0xe]  ;;  %v1095_v33 = vrot.slane %v778_v46, 5  ;;  %v1098_v34 = vrot.slane %v797_v51, 5  ;;  %v824_v35 = vshrl.u32 %v778_v46, 16  ;;  %2111 = vrot.lane.b32.xlu1 %v5437_v41, %s5640_s27 }
  0x8e   : > { %v4966_v36 = vrot.slane %v1050_v31, 9  ;;  %v6175_v37 = vld [vmem:[%s6163_s18 + $0x1c] sm:$0xf]  ;;  %v6178_v38 = vld [vmem:[%s6163_s18 + $0x20] sm:$0x1]  ;;  %v820_v39 = vshll.u32 %v778_v46, 16 }
  0x8f   : > { %v1097_v40 = vrot.slane %v1095_v33, 4  ;;  %v5060_v42 = vld [vmem:[%s6163_s18 + $0x18] sm:$0xe]  ;;  %v1863_v43 = vrot.slane %v6175_v37, 5  ;;  %v1866_v44 = vrot.slane %v6178_v38, 5  ;;  %v826_v45 = vrot.slane %v824_v35, 4 }
  0x90   : > { %v1096_v47 = vsel %vm6169_vm12, %v4966_v36, %v1095_v33  ;;  %v5070_v49 = vrot.slane %v5060_v42, 9  ;;  %v777_v50 = vld [vmem:[%s6163_s18] sm:$0xf]  ;;  %v822_v52 = vrot.slane %v820_v39, 5  ;;  %v832_v53 = vrot.slane %v830_v30, 5  ;;  %v5447_v9 = vld [vmem:[%s6163_s18 + $0x18] sm:$0xff] }
  0x91   : > { %v1099_v54 = vsel %vm6169_vm12, %v1097_v40, %v1098_v34  ;;  %v2021_v55 = vunpack.c.l.b16 %v1096_v47  ;;  %v1865_v29 = vrot.slane %v1863_v43, 4  ;;  %v811_v56 = vshrl.u32 %v777_v50, 16  ;;  %v4978_v48 = vld [vmem:[%s6163_s18 + $0xc] sm:$0xf]  ;;  %v6192_v61 = vld [vmem:[%s6163_s18 + $0x10] sm:$0xf]  ;;  %2271 = vrot.lane.b32.xlu2 %v5447_v9, %s5642_s30 }
  0x92   : > { %v2022_v57 = vunpack.c.l.b16 %v1099_v54  ;;  %v1864_v58 = vsel %vm6169_vm12, %v5070_v49, %v1863_v43  ;;  %v814_v59 = vshll.u32 %v777_v50, 16  ;;  %v827_v60 = vor.u32 %v826_v45, %v822_v52  ;;  %v6203_v3 = vld [vmem:[%s6163_s18 + $0x14] sm:$0x1]  ;;  %v5030_v13 = vld [vmem:[%s6163_s18 + $0x18] sm:$0xf] }
  0x93   : > { %v1867_v62 = vsel %vm6169_vm12, %v1865_v29, %v1866_v44  ;;  %v2341_v63 = vunpack.c.l.b16 %v1864_v58  ;;  %v813_v2 = vrot.slane %v811_v56, 4  ;;  %v1198_v4 = vshrl.u32 %v4978_v48, 16  ;;  %v1051_v46 = vld [vmem:[%s6163_s18 + $0xc] sm:$0xe]  ;;  %v6222_v34 = vld [vmem:[%s6163_s18 + $0x10] sm:$0xf] }
  0x94   : > { %v2041_v5 = vpack.c.b16 %v2022_v57, %v2021_v55  ;;  %v2342_v6 = vunpack.c.l.b16 %v1867_v62  ;;  %v816_v7 = vrot.slane %v814_v59, 5  ;;  %v828_v8 = vrot.slane %v827_v60, 4  ;;  %v6225_v42 = vld [vmem:[%s6163_s18 + $0x14] sm:$0x1]  ;;  %v5009_v47 = vld [vmem:[%s6163_s18 + $0x18] sm:$0xe] }
  0x95   : > { %v1200_v10 = vrot.slane %v1198_v4, 4  ;;  %v1201_v11 = vshll.u32 %v4978_v48, 16  ;;  %v1207_v0 = vshll.u32 %v6192_v61, 16  ;;  %v1211_v12 = vshrl.u32 %v6192_v61, 16  ;;  %v6234_v56 = vld [vmem:[%s6163_s18 + $0x1c] sm:$0xf] }
  0x96   : > { %2051 = vrot.lane.b32.xlu0 %v2041_v5, %s5641_s28  ;;  %v2361_v14 = vpack.c.b16 %v2342_v6, %v2341_v63  ;;  %v817_v15 = vor.u32 %v816_v7, %v813_v2  ;;  %v833_v16 = vsel %vm6198_vm13, %v828_v8, %v832_v53  ;;  %v1217_v17 = vshll.u32 %v6203_v3, 16  ;;  %v6237_v48 = vld [vmem:[%s6163_s18 + $0x20] sm:$0x1]  ;;  %v5008_v62 = vld [vmem:[%s6163_s18 + $0xc] sm:$0xe] }
  0x97   : > { %v1972_v18 = vunpack.c.l.b16 %v833_v16  ;;  %v1203_v19 = vrot.slane %v1201_v11, 5  ;;  %v1209_v20 = vrot.slane %v1207_v0, 5  ;;  %v1213_v21 = vrot.slane %v1211_v12, 4 }
  0x98   : > { %2371 = vrot.lane.b32.xlu1 %v2361_v14, %s5643_s6  ;;  %v818_v22 = vrot.slane %v817_v15, 4  ;;  %v1219_v23 = vrot.slane %v1217_v17, 5  ;;  %v1582_v24 = vshrl.u32 %v5030_v13, 16  ;;  %v1585_v25 = vshll.u32 %v5030_v13, 16  ;;  %v5061_v13 = vld [vmem:[%s6163_s18 + $0x24] sm:$0xe] }
  0x99   : > { %v1204_v26 = vor.u32 %v1203_v19, %v1200_v10  ;;  %v1214_v27 = vor.u32 %v1213_v21, %v1209_v20  ;;  %v1591_v28 = vshll.u32 %v6175_v37, 16  ;;  %v1595_v41 = vshrl.u32 %v6175_v37, 16  ;;  %v6262_v19 = vld [vmem:[%s6163_s18 + $0x2c] sm:$0x1] }
  0x9a   : > { %v823_v51 = vsel %vm6198_vm13, %v818_v22, %v822_v52  ;;  %v1584_v30 = vrot.slane %v1582_v24, 4  ;;  %v1587_v31 = vrot.slane %v1585_v25, 5  ;;  %v1601_v33 = vshll.u32 %v6178_v38, 16  ;;  %v6268_v24 = vld [vmem:[%s6163_s18 + $0x1c] sm:$0xf] }
  0x9b   : > { %v1971_v35 = vunpack.c.l.b16 %v823_v51  ;;  %v1205_v36 = vrot.slane %v1204_v26, 4  ;;  %v1215_v39 = vrot.slane %v1214_v27, 4  ;;  %v1593_v40 = vrot.slane %v1591_v28, 5  ;;  %v5438_v28 = vld [vmem:[%s6163_s18 + $0x18] sm:$0xff] }
  0x9c   : > { %v1588_v37 = vor.u32 %v1587_v31, %v1584_v30  ;;  %v1597_v43 = vrot.slane %v1595_v41, 4  ;;  %v1603_v44 = vrot.slane %v1601_v33, 5  ;;  %v4967_v45 = vrot.slane %v1051_v46, 9  ;;  %v6279_v33 = vld [vmem:[%s6163_s18 + $0x20] sm:$0x1] }
  0x9d   : > { %v1991_v49 = vpack.c.b16 %v1972_v18, %v1971_v35  ;;  %v1210_v38 = vsel %vm6198_vm13, %v1205_v36, %v1209_v20  ;;  %v1220_v50 = vsel %vm6198_vm13, %v1215_v39, %v1219_v23  ;;  %v1102_v52 = vrot.slane %v6222_v34, 5  ;;  %v6259_v18 = vld [vmem:[%s6163_s18 + $0x28] sm:$0xf]  ;;  %v781_v23 = vld [vmem:[%s6163_s18 + $0x18] sm:$0xf] }
  0x9e   : > { %v2131_v53 = vunpack.c.l.b16 %v1210_v38  ;;  %v2132_v54 = vunpack.c.l.b16 %v1220_v50  ;;  %v1589_v55 = vrot.slane %v1588_v37, 4  ;;  %v1598_v29 = vor.u32 %v1597_v43, %v1593_v40 }
  0x9f   : > { %2001 = vrot.lane.b32.xlu0 %v1991_v49, %s5644_s7  ;;  %v1103_v57 = vsel %vm6169_vm12, %v4967_v45, %v1102_v52  ;;  %v1104_v58 = vrot.slane %v1102_v52, 4  ;;  %v1105_v59 = vrot.slane %v6225_v42, 5  ;;  %v5019_v60 = vrot.slane %v5009_v47, 9  ;;  %v779_v45 = vld [vmem:[%s6163_s18 + $0xc] sm:$0xf] }
  0xa0   : > { %v2151_v63 = vpack.c.b16 %v2132_v54, %v2131_v53  ;;  %v1594_v2 = vsel %vm6198_vm13, %v1589_v55, %v1593_v40  ;;  %v1599_v4 = vrot.slane %v1598_v29, 4  ;;  %v2023_v5 = vunpack.c.l.b16 %v1103_v57 }
  0xa1   : > { %v2291_v6 = vunpack.c.l.b16 %v1594_v2  ;;  %v1106_v7 = vsel %vm6169_vm12, %v1104_v58, %v1105_v59  ;;  %v1486_v8 = vrot.slane %v6234_v56, 5  ;;  %v1489_v9 = vrot.slane %v6237_v48, 5 }
  0xa2   : > { %2161 = vrot.lane.b32.xlu1 %v2151_v63, %s5645_s9  ;;  %v1604_v10 = vsel %vm6198_vm13, %v1599_v4, %v1603_v44  ;;  %v2024_v11 = vunpack.c.l.b16 %v1106_v7  ;;  %v5018_v0 = vrot.slane %v5008_v62, 9  ;;  %v1479_v12 = vrot.slane %v6192_v61, 5  ;;  %v4982_v4 = vld [vmem:[%s6163_s18 + $0x24] sm:$0xf] }
  0xa3   : > { %v2292_v14 = vunpack.c.l.b16 %v1604_v10  ;;  %v1487_v15 = vsel %vm6169_vm12, %v5019_v60, %v1486_v8  ;;  %v1488_v16 = vrot.slane %v1486_v8, 4  ;;  %v1482_v17 = vrot.slane %v6203_v3, 5 }
  0xa4   : > { %v2042_v20 = vpack.c.b16 %v2024_v11, %v2023_v5  ;;  %v2183_v21 = vunpack.c.l.b16 %v1487_v15  ;;  %v1480_v22 = vsel %vm6169_vm12, %v5018_v0, %v1479_v12  ;;  %v1481_v61 = vrot.slane %v1479_v12, 4  ;;  %v6307_v15 = vld [vmem:[%s6163_s18 + $0x2c] sm:$0x1] }
  0xa5   : > { %v2311_v25 = vpack.c.b16 %v2292_v14, %v2291_v6  ;;  %v1490_v26 = vsel %vm6169_vm12, %v1488_v16, %v1489_v9  ;;  %v2181_v27 = vunpack.c.l.b16 %v1480_v22  ;;  %v5071_v3 = vrot.slane %v5061_v13, 9  ;;  %v5448_v9 = vld [vmem:[%s6163_s18 + $0x24] sm:$0xff] }
  0xa6   : > { %v2184_v41 = vunpack.c.l.b16 %v1490_v26  ;;  %v1483_v46 = vsel %vm6169_vm12, %v1481_v61, %v1482_v17  ;;  %v1870_v51 = vrot.slane %v6259_v18, 5  ;;  %v1873_v30 = vrot.slane %v6262_v19, 5 }
  0xa7   : > { %2321 = vrot.lane.b32.xlu0 %v2311_v25, %s5646_s10  ;;  %v2182_v31 = vunpack.c.l.b16 %v1483_v46  ;;  %v859_v35 = vshrl.u32 %v781_v23, 16  ;;  %v862_v36 = vshll.u32 %v781_v23, 16  ;;  %v868_v39 = vshll.u32 %v6268_v24, 16  ;;  %v4980_v25 = vld [vmem:[%s6163_s18 + $0x18] sm:$0xf] }
  0xa8   : > { %v6282_v40 = vpack.c.b16 %v2184_v41, %v2183_v21  ;;  %v1871_v37 = vsel %vm6169_vm12, %v5071_v3, %v1870_v51  ;;  %v1872_v43 = vrot.slane %v1870_v51, 4  ;;  %v872_v44 = vshrl.u32 %v6268_v24, 16 }
  0xa9   : > { %v2201_v47 = vpack.c.b16 %v2182_v31, %v2181_v27  ;;  %v2343_v49 = vunpack.c.l.b16 %v1871_v37  ;;  %v861_v38 = vrot.slane %v859_v35, 4  ;;  %v864_v50 = vrot.slane %v862_v36, 5 }
  0xaa   : > { %2113 = vrot.lane.b32.xlu1 %v5438_v28, %s5640_s27  ;;  %v1874_v52 = vsel %vm6169_vm12, %v1872_v43, %v1873_v30  ;;  %v870_v53 = vrot.slane %v868_v39, 5  ;;  %v874_v54 = vrot.slane %v872_v44, 4  ;;  %v878_v55 = vshll.u32 %v6279_v33, 16  ;;  %v5034_v44 = vld [vmem:[%s6163_s18 + $0x30] sm:$0xf] }
  0xab   : > { %2211 = vrot.lane.b32.xlu2 %v2201_v47, %s5647_s11  ;;  %v2344_v29 = vunpack.c.l.b16 %v1874_v52  ;;  %v865_v57 = vor.u32 %v864_v50, %v861_v38  ;;  %v835_v58 = vshrl.u32 %v779_v45, 16  ;;  %v838_v59 = vshll.u32 %v779_v45, 16 }
  0xac   : > { %v875_v60 = vor.u32 %v874_v54, %v870_v53  ;;  %v880_v62 = vrot.slane %v878_v55, 5  ;;  %v844_v63 = vshll.u32 %v6222_v34, 16  ;;  %v848_v2 = vshrl.u32 %v6222_v34, 16  ;;  %v6304_v34 = vld [vmem:[%s6163_s18 + $0x28] sm:$0xf] }
  0xad   : > { %v6296_v5 = vpack.c.b16 %v2344_v29, %v2343_v49  ;;  %v866_v6 = vrot.slane %v865_v57, 4  ;;  %v837_v7 = vrot.slane %v835_v58, 4  ;;  %v840_v8 = vrot.slane %v838_v59, 5  ;;  %v6329_v58 = vld [vmem:[%s6163_s18 + $0x34] sm:$0xf] }
  0xae   : > { %v876_v10 = vrot.slane %v875_v60, 4  ;;  %v846_v11 = vrot.slane %v844_v63, 5  ;;  %v850_v0 = vrot.slane %v848_v2, 4  ;;  %v854_v12 = vshll.u32 %v6225_v42, 16 }
  0xaf   : > { %2053 = vrot.lane.b32.xlu0 %v2042_v20, %s5641_s28  ;;  %v871_v13 = vsel %vm6198_vm13, %v866_v6, %v870_v53  ;;  %v841_v14 = vor.u32 %v840_v8, %v837_v7  ;;  %v1246_v16 = vshrl.u32 %v4982_v4, 16  ;;  %v1249_v17 = vshll.u32 %v4982_v4, 16  ;;  %v6332_v4 = vld [vmem:[%s6163_s18 + $0x38] sm:$0x1]  ;;  %v5032_v8 = vld [vmem:[%s6163_s18 + $0x24] sm:$0xf] }
  0xb0   : > { %v881_v21 = vsel %vm6198_vm13, %v876_v10, %v880_v62  ;;  %v1975_v22 = vunpack.c.l.b16 %v871_v13  ;;  %v851_v61 = vor.u32 %v850_v0, %v846_v11  ;;  %v856_v23 = vrot.slane %v854_v12, 5 }
  0xb1   : > { %v1976_v42 = vunpack.c.l.b16 %v881_v21  ;;  %v842_v26 = vrot.slane %v841_v14, 4  ;;  %v1248_v20 = vrot.slane %v1246_v16, 4  ;;  %v1251_v27 = vrot.slane %v1249_v17, 5 }
  0xb2   : > { %2273 = vrot.lane.b32.xlu1 %v5448_v9, %s5642_s30  ;;  %v852_v3 = vrot.slane %v851_v61, 4  ;;  %v1255_v28 = vshll.u32 %v6304_v34, 16  ;;  %v1259_v41 = vshrl.u32 %v6304_v34, 16  ;;  %v1265_v46 = vshll.u32 %v6307_v15, 16 }
  0xb3   : > { %v1993_v51 = vpack.c.b16 %v1976_v42, %v1975_v22  ;;  %v847_v30 = vsel %vm6198_vm13, %v842_v26, %v846_v11  ;;  %v1252_v31 = vor.u32 %v1251_v27, %v1248_v20  ;;  %v1222_v35 = vshrl.u32 %v4980_v25, 16 }
  0xb4   : > { %v857_v36 = vsel %vm6198_vm13, %v852_v3, %v856_v23  ;;  %v1973_v39 = vunpack.c.l.b16 %v847_v30  ;;  %v1257_v37 = vrot.slane %v1255_v28, 5  ;;  %v1261_v43 = vrot.slane %v1259_v41, 4  ;;  %v783_v28 = vld [vmem:[%s6163_s18 + $0x24] sm:$0xf] }
  0xb5   : > { %v1974_v45 = vunpack.c.l.b16 %v857_v36  ;;  %v1253_v47 = vrot.slane %v1252_v31, 4  ;;  %v1267_v49 = vrot.slane %v1265_v46, 5  ;;  %v1224_v38 = vrot.slane %v1222_v35, 4 }
  0xb6   : > { %v1262_v50 = vor.u32 %v1261_v43, %v1257_v37  ;;  %v1225_v52 = vshll.u32 %v4980_v25, 16  ;;  %v1231_v53 = vshll.u32 %v6234_v56, 16  ;;  %v1235_v54 = vshrl.u32 %v6234_v56, 16 }
  0xb7   : > { %2213 = vrot.lane.b32.xlu0 %v6282_v40, %s5647_s11  ;;  %v1992_v55 = vpack.c.b16 %v1974_v45, %v1973_v39  ;;  %v1258_v29 = vsel %vm6198_vm13, %v1253_v47, %v1257_v37  ;;  %v1241_v57 = vshll.u32 %v6237_v48, 16  ;;  %v1630_v59 = vshrl.u32 %v5034_v44, 16 }
  0xb8   : > { %v1263_v60 = vrot.slane %v1262_v50, 4  ;;  %v2135_v62 = vunpack.c.l.b16 %v1258_v29  ;;  %v1227_v63 = vrot.slane %v1225_v52, 5  ;;  %v1233_v2 = vrot.slane %v1231_v53, 5  ;;  %v800_v52 = vld [vmem:[%s6163_s18 + $0x2c] sm:$0x1] }
  0xb9   : > { %2003 = vrot.lane.b32.xlu2 %v1992_v55, %s5644_s7  ;;  %v1237_v56 = vrot.slane %v1235_v54, 4  ;;  %v1243_v40 = vrot.slane %v1241_v57, 5  ;;  %v1632_v6 = vrot.slane %v1630_v59, 4  ;;  %v1633_v7 = vshll.u32 %v5034_v44, 16  ;;  %v784_v44 = vld [vmem:[%s6163_s18 + $0x28] sm:$0xf] }
  0xba   : > { %2005 = vrot.lane.b32.xlu1 %v1993_v51, %s5644_s7  ;;  %v1268_v48 = vsel %vm6198_vm13, %v1263_v60, %v1267_v49  ;;  %v1228_v9 = vor.u32 %v1227_v63, %v1224_v38  ;;  %v1639_v10 = vshll.u32 %v6329_v58, 16  ;;  %v1643_v11 = vshrl.u32 %v6329_v58, 16  ;;  %v1053_v53 = vld [vmem:[%s6163_s18 + $0x24] sm:$0xe] }
  0xbb   : > { %v2136_v0 = vunpack.c.l.b16 %v1268_v48  ;;  %v1238_v12 = vor.u32 %v1237_v56, %v1233_v2  ;;  %v1635_v13 = vrot.slane %v1633_v7, 5  ;;  %v1649_v14 = vshll.u32 %v6332_v4, 16 }
  0xbc   : > { %v1229_v16 = vrot.slane %v1228_v9, 4  ;;  %v1641_v17 = vrot.slane %v1639_v10, 5  ;;  %v1645_v21 = vrot.slane %v1643_v11, 4  ;;  %v1606_v22 = vshrl.u32 %v5032_v8, 16 }
  0xbd   : > { %v2153_v61 = vpack.c.b16 %v2136_v0, %v2135_v62  ;;  %v1239_v23 = vrot.slane %v1238_v12, 4  ;;  %v1636_v25 = vor.u32 %v1635_v13, %v1632_v6  ;;  %v1651_v42 = vrot.slane %v1649_v14, 5  ;;  %v1052_v6 = vld [vmem:[%s6163_s18 + $0x18] sm:$0xe] }
  0xbe   : > { %v1234_v26 = vsel %vm6198_vm13, %v1229_v16, %v1233_v2  ;;  %v1646_v20 = vor.u32 %v1645_v21, %v1641_v17  ;;  %v1608_v27 = vrot.slane %v1606_v22, 4  ;;  %v1609_v3 = vshll.u32 %v5032_v8, 16 }
  0xbf   : > { %2373 = vrot.lane.b32.xlu0 %v6296_v5, %s5643_s6  ;;  %v1244_v41 = vsel %vm6198_vm13, %v1239_v23, %v1243_v40  ;;  %v2133_v46 = vunpack.c.l.b16 %v1234_v26  ;;  %v1637_v51 = vrot.slane %v1636_v25, 4  ;;  %v1615_v30 = vshll.u32 %v6259_v18, 16 }
  0xc0   : > { %v2134_v31 = vunpack.c.l.b16 %v1244_v41  ;;  %v1647_v35 = vrot.slane %v1646_v20, 4  ;;  %v1611_v36 = vrot.slane %v1609_v3, 5  ;;  %v1619_v39 = vshrl.u32 %v6259_v18, 16  ;;  %v5439_v18 = vld [vmem:[%s6163_s18 + $0x24] sm:$0xff] }
  0xc1   : > { %v1642_v37 = vsel %vm6198_vm13, %v1637_v51, %v1641_v17  ;;  %v1617_v43 = vrot.slane %v1615_v30, 5  ;;  %v1625_v5 = vshll.u32 %v6262_v19, 16  ;;  %v883_v45 = vshrl.u32 %v783_v28, 16 }
  0xc2   : > { %2165 = vrot.lane.b32.xlu1 %v2153_v61, %s5645_s9  ;;  %v2152_v47 = vpack.c.b16 %v2134_v31, %v2133_v46  ;;  %v1652_v49 = vsel %vm6198_vm13, %v1647_v35, %v1651_v42  ;;  %v2295_v38 = vunpack.c.l.b16 %v1642_v37  ;;  %v1612_v50 = vor.u32 %v1611_v36, %v1608_v27  ;;  %v5449_v27 = vld [vmem:[%s6163_s18 + $0x30] sm:$0xff] }
  0xc3   : > { %v2296_v54 = vunpack.c.l.b16 %v1652_v49  ;;  %v1621_v55 = vrot.slane %v1619_v39, 4  ;;  %v1627_v29 = vrot.slane %v1625_v5, 5  ;;  %v885_v57 = vrot.slane %v883_v45, 4  ;;  %v4985_v36 = vld [vmem:[%s6163_s18 + $0x34] sm:$0xf] }
  0xc4   : > { %2163 = vrot.lane.b32.xlu2 %v2152_v47, %s5645_s9  ;;  %v1613_v19 = vrot.slane %v1612_v50, 4  ;;  %v886_v59 = vshll.u32 %v783_v28, 16  ;;  %v892_v60 = vshll.u32 %v784_v44, 16  ;;  %v896_v62 = vshrl.u32 %v784_v44, 16  ;;  %v5001_v39 = vld [vmem:[%s6163_s18 + $0x38] sm:$0x1] }
  0xc5   : > { %v2313_v63 = vpack.c.b16 %v2296_v54, %v2295_v38  ;;  %v1622_v2 = vor.u32 %v1621_v55, %v1617_v43  ;;  %v902_v56 = vshll.u32 %v800_v52, 16  ;;  %v4969_v40 = vrot.slane %v1053_v53, 9  ;;  %v5011_v45 = vld [vmem:[%s6163_s18 + $0x30] sm:$0xe]  ;;  %v5010_v54 = vld [vmem:[%s6163_s18 + $0x24] sm:$0xe] }
  0xc6   : > { %v1618_v7 = vsel %vm6198_vm13, %v1613_v19, %v1617_v43  ;;  %v888_v8 = vrot.slane %v886_v59, 5  ;;  %v894_v48 = vrot.slane %v892_v60, 5  ;;  %v898_v9 = vrot.slane %v896_v62, 4 }
  0xc7   : > { %2115 = vrot.lane.b32.xlu0 %v5439_v18, %s5640_s27  ;;  %v1623_v10 = vrot.slane %v1622_v2, 4  ;;  %v2293_v11 = vunpack.c.l.b16 %v1618_v7  ;;  %v904_v0 = vrot.slane %v902_v56, 5  ;;  %v1116_v12 = vrot.slane %v784_v44, 5  ;;  %v5036_v7 = vld [vmem:[%s6163_s18 + $0x3c] sm:$0xf] }
  0xc8   : > { %v889_v13 = vor.u32 %v888_v8, %v885_v57  ;;  %v899_v14 = vor.u32 %v898_v9, %v894_v48  ;;  %v1119_v16 = vrot.slane %v800_v52, 5  ;;  %v4968_v17 = vrot.slane %v1052_v6, 9 }
  0xc9   : > { %v1628_v21 = vsel %vm6198_vm13, %v1623_v10, %v1627_v29  ;;  %v1117_v22 = vsel %vm6169_vm12, %v4969_v40, %v1116_v12  ;;  %v1118_v61 = vrot.slane %v1116_v12, 4  ;;  %v1109_v23 = vrot.slane %v6268_v24, 5  ;;  %v4984_v24 = vld [vmem:[%s6163_s18 + $0x30] sm:$0xf] }
  0xca   : > { %2325 = vrot.lane.b32.xlu1 %v2313_v63, %s5646_s10  ;;  %v2294_v25 = vunpack.c.l.b16 %v1628_v21  ;;  %v890_v42 = vrot.slane %v889_v13, 4  ;;  %v900_v26 = vrot.slane %v899_v14, 4  ;;  %v2027_v20 = vunpack.c.l.b16 %v1117_v22 }
  0xcb   : > { %v1120_v3 = vsel %vm6169_vm12, %v1118_v61, %v1119_v16  ;;  %v1110_v28 = vsel %vm6169_vm12, %v4968_v17, %v1109_v23  ;;  %v1111_v41 = vrot.slane %v1109_v23, 4  ;;  %v1112_v46 = vrot.slane %v6279_v33, 5  ;;  %v5037_v17 = vld [vmem:[%s6163_s18 + $0x40] sm:$0xf]  ;;  %v5053_v23 = vld [vmem:[%s6163_s18 + $0x44] sm:$0x1] }
  0xcc   : > { %v2312_v51 = vpack.c.b16 %v2294_v25, %v2293_v11  ;;  %v895_v30 = vsel %vm6198_vm13, %v890_v42, %v894_v48  ;;  %v905_v31 = vsel %vm6198_vm13, %v900_v26, %v904_v0  ;;  %v2028_v35 = vunpack.c.l.b16 %v1120_v3  ;;  %v5063_v42 = vld [vmem:[%s6163_s18 + $0x3c] sm:$0xe] }
  0xcd   : > { %v1977_v37 = vunpack.c.l.b16 %v895_v30  ;;  %v1978_v43 = vunpack.c.l.b16 %v905_v31  ;;  %v1113_v5 = vsel %vm6169_vm12, %v1111_v41, %v1112_v46  ;;  %v2025_v44 = vunpack.c.l.b16 %v1110_v28 }
  0xce   : > { %2323 = vrot.lane.b32.xlu2 %v2312_v51, %s5646_s10  ;;  %v2044_v33 = vpack.c.b16 %v2028_v35, %v2027_v20  ;;  %v2026_v47 = vunpack.c.l.b16 %v1113_v5  ;;  %v1270_v49 = vshrl.u32 %v4984_v24, 16  ;;  %v1273_v38 = vshll.u32 %v4984_v24, 16  ;;  %v5062_v51 = vld [vmem:[%s6163_s18 + $0x30] sm:$0xe] }
  0xcf   : > { %2275 = vrot.lane.b32.xlu0 %v5449_v27, %s5642_s30  ;;  %v1994_v50 = vpack.c.b16 %v1978_v43, %v1977_v37  ;;  %v1279_v52 = vshll.u32 %v4985_v36, 16  ;;  %v1283_v53 = vshrl.u32 %v4985_v36, 16  ;;  %v1289_v18 = vshll.u32 %v5001_v39, 16 }
  0xd0   : > { %v2043_v55 = vpack.c.b16 %v2026_v47, %v2025_v44  ;;  %v1272_v29 = vrot.slane %v1270_v49, 4  ;;  %v1275_v57 = vrot.slane %v1273_v38, 5  ;;  %v5021_v19 = vrot.slane %v5011_v45, 9  ;;  %v1054_v44 = vld [vmem:[%s6163_s18 + $0x30] sm:$0xe] }
  0xd1   : > { %v1281_v59 = vrot.slane %v1279_v52, 5  ;;  %v1285_v60 = vrot.slane %v1283_v53, 4  ;;  %v1291_v62 = vrot.slane %v1289_v18, 5  ;;  %v1500_v63 = vrot.slane %v4985_v36, 5  ;;  %v6419_v18 = vld [vmem:[%s6163_s18 + $0x34] sm:$0xf] }
  0xd2   : > { %2057 = vrot.lane.b32.xlu1 %v2044_v33, %s5641_s28  ;;  %v1276_v2 = vor.u32 %v1275_v57, %v1272_v29  ;;  %v1503_v56 = vrot.slane %v5001_v39, 5  ;;  %v5020_v40 = vrot.slane %v5010_v54, 9  ;;  %v1493_v6 = vrot.slane %v6304_v34, 5  ;;  %v6423_v57 = vld [vmem:[%s6163_s18 + $0x38] sm:$0x1] }
  0xd3   : > { %v1286_v8 = vor.u32 %v1285_v60, %v1281_v59  ;;  %v1501_v48 = vsel %vm6169_vm12, %v5021_v19, %v1500_v63  ;;  %v1502_v9 = vrot.slane %v1500_v63, 4  ;;  %v1496_v10 = vrot.slane %v6307_v15, 5 }
  0xd4   : > { %v1277_v11 = vrot.slane %v1276_v2, 4  ;;  %v2187_v0 = vunpack.c.l.b16 %v1501_v48  ;;  %v1494_v12 = vsel %vm6169_vm12, %v5020_v40, %v1493_v6  ;;  %v1495_v13 = vrot.slane %v1493_v6, 4  ;;  %v6434_v2 = vld [vmem:[%s6163_s18 + $0x40] sm:$0xf] }
  0xd5   : > { %v1287_v14 = vrot.slane %v1286_v8, 4  ;;  %v1504_v34 = vsel %vm6169_vm12, %v1502_v9, %v1503_v56  ;;  %v2185_v16 = vunpack.c.l.b16 %v1494_v12  ;;  %v1654_v21 = vshrl.u32 %v5036_v7, 16 }
  0xd6   : > { %2055 = vrot.lane.b32.xlu2 %v2043_v55, %s5641_s28  ;;  %v1282_v15 = vsel %vm6198_vm13, %v1277_v11, %v1281_v59  ;;  %v2188_v22 = vunpack.c.l.b16 %v1504_v34  ;;  %v1497_v61 = vsel %vm6169_vm12, %v1495_v13, %v1496_v10  ;;  %v1657_v25 = vshll.u32 %v5036_v7, 16  ;;  %v5012_v59 = vld [vmem:[%s6163_s18 + $0x3c] sm:$0xe]  ;;  %v6438_v7 = vld [vmem:[%s6163_s18 + $0x44] sm:$0x1] }
  0xd7   : > { %2007 = vrot.lane.b32.xlu0 %v1994_v50, %s5644_s7  ;;  %v1292_v26 = vsel %vm6198_vm13, %v1287_v14, %v1291_v62  ;;  %v2137_v20 = vunpack.c.l.b16 %v1282_v15  ;;  %v2186_v27 = vunpack.c.l.b16 %v1497_v61  ;;  %v1656_v3 = vrot.slane %v1654_v21, 4  ;;  %v5064_v14 = vld [vmem:[%s6163_s18 + $0x48] sm:$0xe]  ;;  %v6452_v15 = vld [vmem:[%s6163_s18 + $0x4c] sm:$0xf] }
  0xd8   : > { %v2138_v28 = vunpack.c.l.b16 %v1292_v26  ;;  %v2204_v41 = vpack.c.b16 %v2188_v22, %v2187_v0  ;;  %v1659_v46 = vrot.slane %v1657_v25, 5  ;;  %v1663_v24 = vshll.u32 %v5037_v17, 16  ;;  %v6455_v22 = vld [vmem:[%s6163_s18 + $0x50] sm:$0x1]  ;;  %v787_v26 = vld [vmem:[%s6163_s18 + $0x3c] sm:$0xf] }
  0xd9   : > { %v2203_v30 = vpack.c.b16 %v2186_v27, %v2185_v16  ;;  %v1667_v31 = vshrl.u32 %v5037_v17, 16  ;;  %v1673_v35 = vshll.u32 %v5053_v23, 16  ;;  %v5073_v36 = vrot.slane %v5063_v42, 9 }
  0xda   : > { %v2154_v39 = vpack.c.b16 %v2138_v28, %v2137_v20  ;;  %2217 = vrot.lane.b32.xlu1 %v2204_v41, %s5647_s11  ;;  %v1660_v37 = vor.u32 %v1659_v46, %v1656_v3  ;;  %v1665_v43 = vrot.slane %v1663_v24, 5  ;;  %v1884_v5 = vrot.slane %v5037_v17, 5  ;;  %v6462_v20 = vld [vmem:[%s6163_s18 + $0x40] sm:$0xf] }
  0xdb   : > { %v1669_v45 = vrot.slane %v1667_v31, 4  ;;  %v1675_v33 = vrot.slane %v1673_v35, 5  ;;  %v1887_v47 = vrot.slane %v5053_v23, 5  ;;  %v5072_v49 = vrot.slane %v5062_v51, 9  ;;  %v6472_v35 = vld [vmem:[%s6163_s18 + $0x44] sm:$0x1] }
  0xdc   : > { %v1661_v38 = vrot.slane %v1660_v37, 4  ;;  %v1885_v50 = vsel %vm6169_vm12, %v5073_v36, %v1884_v5  ;;  %v1886_v52 = vrot.slane %v1884_v5, 4  ;;  %v1877_v53 = vrot.slane %v6329_v58, 5  ;;  %v5441_v5 = vld [vmem:[%s6163_s18 + $0x3c] sm:$0xff] }
  0xdd   : > { %v1670_v54 = vor.u32 %v1669_v45, %v1665_v43  ;;  %v2347_v55 = vunpack.c.l.b16 %v1885_v50  ;;  %v1880_v29 = vrot.slane %v6332_v4, 5  ;;  %v4970_v19 = vrot.slane %v1054_v44, 9 }
  0xde   : > { %2215 = vrot.lane.b32.xlu2 %v2203_v30, %s5647_s11  ;;  %v1666_v60 = vsel %vm6198_vm13, %v1661_v38, %v1665_v43  ;;  %v1888_v62 = vsel %vm6169_vm12, %v1886_v52, %v1887_v47  ;;  %v1878_v58 = vsel %vm6169_vm12, %v5072_v49, %v1877_v53  ;;  %v1879_v63 = vrot.slane %v1877_v53, 4  ;;  %v785_v47 = vld [vmem:[%s6163_s18 + $0x30] sm:$0xf] }
  0xdf   : > { %2167 = vrot.lane.b32.xlu0 %v2154_v39, %s5645_s9  ;;  %v1671_v4 = vrot.slane %v1670_v54, 4  ;;  %v2297_v56 = vunpack.c.l.b16 %v1666_v60  ;;  %v2348_v40 = vunpack.c.l.b16 %v1888_v62  ;;  %v2345_v6 = vunpack.c.l.b16 %v1878_v58 }
  0xe0   : > { %v1881_v8 = vsel %vm6169_vm12, %v1879_v63, %v1880_v29  ;;  %v1123_v48 = vrot.slane %v6419_v18, 5  ;;  %v1126_v9 = vrot.slane %v6423_v57, 5  ;;  %v5022_v10 = vrot.slane %v5012_v59, 9 }
  0xe1   : > { %v1676_v11 = vsel %vm6198_vm13, %v1671_v4, %v1675_v33  ;;  %v2364_v0 = vpack.c.b16 %v2348_v40, %v2347_v55  ;;  %v2346_v12 = vunpack.c.l.b16 %v1881_v8  ;;  %v1507_v13 = vrot.slane %v6434_v2, 5 }
  0xe2   : > { %v2298_v34 = vunpack.c.l.b16 %v1676_v11  ;;  %v1124_v16 = vsel %vm6169_vm12, %v4970_v19, %v1123_v48  ;;  %v1125_v17 = vrot.slane %v1123_v48, 4  ;;  %v1510_v21 = vrot.slane %v6438_v7, 5  ;;  %v5440_v19 = vld [vmem:[%s6163_s18 + $0x30] sm:$0xff] }
  0xe3   : > { %2377 = vrot.lane.b32.xlu1 %v2364_v0, %s5643_s6  ;;  %v2363_v61 = vpack.c.b16 %v2346_v12, %v2345_v6  ;;  %v2029_v23 = vunpack.c.l.b16 %v1124_v16  ;;  %v1508_v25 = vsel %vm6169_vm12, %v5022_v10, %v1507_v13  ;;  %v1509_v42 = vrot.slane %v1507_v13, 4  ;;  %v4988_v6 = vld [vmem:[%s6163_s18 + $0x48] sm:$0xf]  ;;  %v6501_v16 = vld [vmem:[%s6163_s18 + $0x50] sm:$0x1] }
  0xe4   : > { %v2314_v27 = vpack.c.b16 %v2298_v34, %v2297_v56  ;;  %v1127_v3 = vsel %vm6169_vm12, %v1125_v17, %v1126_v9  ;;  %v2189_v28 = vunpack.c.l.b16 %v1508_v25  ;;  %v5074_v41 = vrot.slane %v5064_v14, 9 }
  0xe5   : > { %v2030_v46 = vunpack.c.l.b16 %v1127_v3  ;;  %v1511_v24 = vsel %vm6169_vm12, %v1509_v42, %v1510_v21  ;;  %v1891_v51 = vrot.slane %v6452_v15, 5  ;;  %v1894_v30 = vrot.slane %v6455_v22, 5 }
  0xe6   : > { %2375 = vrot.lane.b32.xlu2 %v2363_v61, %s5643_s6  ;;  %v2190_v31 = vunpack.c.l.b16 %v1511_v24  ;;  %v931_v36 = vshrl.u32 %v787_v26, 16  ;;  %v934_v39 = vshll.u32 %v787_v26, 16  ;;  %v940_v37 = vshll.u32 %v6462_v20, 16  ;;  %v5451_v61 = vld [vmem:[%s6163_s18 + $0x48] sm:$0xff]  ;;  %v4986_v26 = vld [vmem:[%s6163_s18 + $0x3c] sm:$0xf] }
  0xe7   : > { %2327 = vrot.lane.b32.xlu0 %v2314_v27, %s5646_s10  ;;  %v2045_v43 = vpack.c.b16 %v2030_v46, %v2029_v23  ;;  %v1892_v44 = vsel %vm6169_vm12, %v5074_v41, %v1891_v51  ;;  %v1893_v45 = vrot.slane %v1891_v51, 4  ;;  %v944_v33 = vshrl.u32 %v6462_v20, 16 }
  0xe8   : > { %v6481_v49 = vpack.c.b16 %v2190_v31, %v2189_v28  ;;  %v2349_v38 = vunpack.c.l.b16 %v1892_v44  ;;  %v933_v50 = vrot.slane %v931_v36, 4  ;;  %v936_v52 = vrot.slane %v934_v39, 5  ;;  %v5450_v31 = vld [vmem:[%s6163_s18 + $0x3c] sm:$0xff] }
  0xe9   : > { %v1895_v53 = vsel %vm6169_vm12, %v1893_v45, %v1894_v30  ;;  %v942_v54 = vrot.slane %v940_v37, 5  ;;  %v946_v55 = vrot.slane %v944_v33, 4  ;;  %v950_v29 = vshll.u32 %v6472_v35, 16 }
  0xea   : > { %v2350_v59 = vunpack.c.l.b16 %v1895_v53  ;;  %v937_v60 = vor.u32 %v936_v52, %v933_v50  ;;  %v907_v62 = vshrl.u32 %v785_v47, 16  ;;  %v910_v58 = vshll.u32 %v785_v47, 16  ;;  %v5040_v47 = vld [vmem:[%s6163_s18 + $0x54] sm:$0xf] }
  0xeb   : > { %2119 = vrot.lane.b32.xlu1 %v5441_v5, %s5640_s27  ;;  %v947_v63 = vor.u32 %v946_v55, %v942_v54  ;;  %v952_v4 = vrot.slane %v950_v29, 5  ;;  %v916_v56 = vshll.u32 %v6419_v18, 16  ;;  %v920_v40 = vshrl.u32 %v6419_v18, 16  ;;  %v6498_v18 = vld [vmem:[%s6163_s18 + $0x4c] sm:$0xf] }
  0xec   : > { %v6491_v8 = vpack.c.b16 %v2350_v59, %v2349_v38  ;;  %v938_v48 = vrot.slane %v937_v60, 4  ;;  %v909_v9 = vrot.slane %v907_v62, 4  ;;  %v912_v10 = vrot.slane %v910_v58, 5  ;;  %v6525_v58 = vld [vmem:[%s6163_s18 + $0x58] sm:$0xf] }
  0xed   : > { %v948_v11 = vrot.slane %v947_v63, 4  ;;  %v918_v0 = vrot.slane %v916_v56, 5  ;;  %v922_v12 = vrot.slane %v920_v40, 4  ;;  %v926_v13 = vshll.u32 %v6423_v57, 16 }
  0xee   : > { %2117 = vrot.lane.b32.xlu2 %v5440_v19, %s5640_s27  ;;  %v943_v14 = vsel %vm6198_vm13, %v938_v48, %v942_v54  ;;  %v913_v34 = vor.u32 %v912_v10, %v909_v9  ;;  %v1318_v17 = vshrl.u32 %v4988_v6, 16  ;;  %v1321_v21 = vshll.u32 %v4988_v6, 16  ;;  %v6530_v48 = vld [vmem:[%s6163_s18 + $0x5c] sm:$0x1] }
  0xef   : > { %2059 = vrot.lane.b32.xlu0 %v2045_v43, %s5641_s28  ;;  %v953_v23 = vsel %vm6198_vm13, %v948_v11, %v952_v4  ;;  %v1981_v57 = vunpack.c.l.b16 %v943_v14  ;;  %v923_v25 = vor.u32 %v922_v12, %v918_v0  ;;  %v928_v42 = vrot.slane %v926_v13, 5 }
  0xf0   : > { %v1982_v27 = vunpack.c.l.b16 %v953_v23  ;;  %v914_v3 = vrot.slane %v913_v34, 4  ;;  %v1320_v28 = vrot.slane %v1318_v17, 4  ;;  %v1323_v41 = vrot.slane %v1321_v21, 5 }
  0xf1   : > { %v924_v46 = vrot.slane %v923_v25, 4  ;;  %v1327_v24 = vshll.u32 %v6498_v18, 16  ;;  %v1331_v51 = vshrl.u32 %v6498_v18, 16  ;;  %v1337_v30 = vshll.u32 %v6501_v16, 16 }
  0xf2   : > { %v1996_v36 = vpack.c.b16 %v1982_v27, %v1981_v57  ;;  %v919_v39 = vsel %vm6198_vm13, %v914_v3, %v918_v0  ;;  %v1324_v37 = vor.u32 %v1323_v41, %v1320_v28  ;;  %v1294_v43 = vshrl.u32 %v4986_v26, 16 }
  0xf3   : > { %2279 = vrot.lane.b32.xlu1 %v5451_v61, %s5642_s30  ;;  %v929_v5 = vsel %vm6198_vm13, %v924_v46, %v928_v42  ;;  %v1979_v44 = vunpack.c.l.b16 %v919_v39  ;;  %v1329_v45 = vrot.slane %v1327_v24, 5  ;;  %v1333_v33 = vrot.slane %v1331_v51, 4  ;;  %v5038_v42 = vld [vmem:[%s6163_s18 + $0x48] sm:$0xf] }
  0xf4   : > { %v1980_v38 = vunpack.c.l.b16 %v929_v5  ;;  %v1325_v50 = vrot.slane %v1324_v37, 4  ;;  %v1339_v52 = vrot.slane %v1337_v30, 5  ;;  %v1296_v53 = vrot.slane %v1294_v43, 4  ;;  %v6549_v37 = vpop.permute.xlu2 %2271 }
  0xf5   : > { %v1334_v54 = vor.u32 %v1333_v33, %v1329_v45  ;;  %v1297_v55 = vshll.u32 %v4986_v26, 16  ;;  %v1303_v29 = vshll.u32 %v6434_v2, 16  ;;  %v1307_v19 = vshrl.u32 %v6434_v2, 16 }
  0xf6   : > { %2277 = vrot.lane.b32.xlu2 %v5450_v31, %s5642_s30  ;;  %v1995_v59 = vpack.c.b16 %v1980_v38, %v1979_v44  ;;  %v1330_v60 = vsel %vm6198_vm13, %v1325_v50, %v1329_v45  ;;  %v1313_v62 = vshll.u32 %v6438_v7, 16  ;;  %v1702_v63 = vshrl.u32 %v5040_v47, 16  ;;  %v2573_v7 = vld [vmem:[%s7775_s1 + $0x10] sm:$0x3]  ;;  %v5458_v50 = vld [vmem:[%s7775_s1 + $0x8] sm:$0xff] }
  0xf7   : > { %2219 = vrot.lane.b32.xlu0 %v6481_v49, %s5647_s11  ;;  %v1335_v4 = vrot.slane %v1334_v54, 4  ;;  %v2141_v56 = vunpack.c.l.b16 %v1330_v60  ;;  %v1299_v40 = vrot.slane %v1297_v55, 5  ;;  %v1305_v6 = vrot.slane %v1303_v29, 5 }
  0xf8   : > { %v1309_v2 = vrot.slane %v1307_v19, 4  ;;  %v1315_v9 = vrot.slane %v1313_v62, 5  ;;  %v1704_v10 = vrot.slane %v1702_v63, 4  ;;  %v1705_v11 = vshll.u32 %v5040_v47, 16  ;;  %v789_v62 = vld [vmem:[%s6163_s18 + $0x48] sm:$0xf] }
  0xf9   : > { %v1340_v0 = vsel %vm6198_vm13, %v1335_v4, %v1339_v52  ;;  %v1300_v12 = vor.u32 %v1299_v40, %v1296_v53  ;;  %v1711_v49 = vshll.u32 %v6525_v58, 16  ;;  %v1715_v13 = vshrl.u32 %v6525_v58, 16  ;;  %v5442_v63 = vld [vmem:[%s6163_s18 + $0x48] sm:$0xff] }
  0xfa   : > { %v2142_v14 = vunpack.c.l.b16 %v1340_v0  ;;  %v1310_v34 = vor.u32 %v1309_v2, %v1305_v6  ;;  %v1707_v17 = vrot.slane %v1705_v11, 5  ;;  %v1721_v21 = vshll.u32 %v6530_v48, 16  ;;  %v790_v4 = vld [vmem:[%s6163_s18 + $0x4c] sm:$0xf]  ;;  %v1056_v2 = vld [vmem:[%s6163_s18 + $0x48] sm:$0xe] }
  0xfb   : > { %2011 = vrot.lane.b32.xlu1 %v1996_v36, %s5644_s7  ;;  %v1301_v61 = vrot.slane %v1300_v12, 4  ;;  %v1713_v23 = vrot.slane %v1711_v49, 5  ;;  %v1717_v57 = vrot.slane %v1715_v13, 4  ;;  %v2587_v25 = vunpack.c.l.b16 %v2573_v7 }
  0xfc   : > { %v2156_v26 = vpack.c.b16 %v2142_v14, %v2141_v56  ;;  %v1311_v27 = vrot.slane %v1310_v34, 4  ;;  %v1708_v3 = vor.u32 %v1707_v17, %v1704_v10  ;;  %v1723_v28 = vrot.slane %v1721_v21, 5  ;;  %v803_v56 = vld [vmem:[%s6163_s18 + $0x50] sm:$0x1] }
  0xfd   : > { %v1306_v41 = vsel %vm6198_vm13, %v1301_v61, %v1305_v6  ;;  %v1718_v46 = vor.u32 %v1717_v57, %v1713_v23  ;;  %v2590_v24 = vpack.c.b16 %v2587_v25, %v2587_v25  ;;  %v1678_v36 = vshrl.u32 %v5038_v42, 16  ;;  %v1055_v61 = vld [vmem:[%s6163_s18 + $0x3c] sm:$0xe] }
  0xfe   : > { %2009 = vrot.lane.b32.xlu2 %v1995_v59, %s5644_s7  ;;  %v1316_v51 = vsel %vm6198_vm13, %v1311_v27, %v1315_v9  ;;  %v2139_v30 = vunpack.c.l.b16 %v1306_v41  ;;  %v1709_v31 = vrot.slane %v1708_v3, 4  ;;  %v1681_v44 = vshll.u32 %v5038_v42, 16  ;;  %v5457_v9 = vld [vmem:[%s7775_s1] sm:$0xff] }
  0xff   : > { %2379 = vrot.lane.b32.xlu0 %v6491_v8, %s5643_s6  ;;  %v2140_v39 = vunpack.c.l.b16 %v1316_v51  ;;  %v1719_v43 = vrot.slane %v1718_v46, 4  ;;  %v2616_v5 = vsel %vm2614_vm14, %v2590_v24, 0  ;;  %v6551_v45 = vpop.permute.xlu1 %2111  ;;  %v1680_v47 = vrot.slane %v1678_v36, 4  ;;  %vm6929_vm14 = vmand %vm7780_vm8, %vm2750_vm11 }
 0x100   : > { %v1714_v33 = vsel %vm6198_vm13, %v1709_v31, %v1713_v23  ;;  %2623 = vmatpush.bf16.msra.mxu0 %v2616_v5  ;;  %v1687_v38 = vshll.u32 %v6452_v15, 16  ;;  %v1691_v8 = vshrl.u32 %v6452_v15, 16  ;;  %v1683_v55 = vrot.slane %v1681_v44, 5 }
 0x101   : > { %v2155_v52 = vpack.c.b16 %v2140_v39, %v2139_v30  ;;  %v1724_v53 = vsel %vm6198_vm13, %v1719_v43, %v1723_v28  ;;  %v2301_v54 = vunpack.c.l.b16 %v1714_v33  ;;  %v1697_v60 = vshll.u32 %v6455_v22, 16  ;;  %v5452_v39 = vld [vmem:[%s6163_s18 + $0x54] sm:$0xff] }
 0x102   : > { %v2302_v29 = vunpack.c.l.b16 %v1724_v53  ;;  %v1689_v19 = vrot.slane %v1687_v38, 5  ;;  %v1693_v59 = vrot.slane %v1691_v8, 4  ;;  %v1684_v15 = vor.u32 %v1683_v55, %v1680_v47  ;;  %v5427_v55 = vld [vmem:[%s6163_s18] sm:$0xff] }
 0x103   : > { %2171 = vrot.lane.b32.xlu1 %v2156_v26, %s5645_s9  ;;  %v1699_v6 = vrot.slane %v1697_v60, 5  ;;  %v955_v7 = vshrl.u32 %v789_v62, 16  ;;  %v958_v22 = vshll.u32 %v789_v62, 16  ;;  %v964_v12 = vshll.u32 %v790_v4, 16  ;;  %v4991_v62 = vld [vmem:[%s6163_s18 + $0x58] sm:$0xf] }
 0x104   : > { %v1694_v40 = vor.u32 %v1693_v59, %v1689_v19  ;;  %2624 = vmatpush.bf16.msra.mxu0 %v5458_v50  ;;  %v2316_v10 = vpack.c.b16 %v2302_v29, %v2301_v54  ;;  %v1685_v11 = vrot.slane %v1684_v15, 4  ;;  %v968_v49 = vshrl.u32 %v790_v4, 16  ;;  %v4990_v54 = vld [vmem:[%s6163_s18 + $0x54] sm:$0xf] }
 0x105   : > { %v974_v13 = vshll.u32 %v803_v56, 16  ;;  %v957_v34 = vrot.slane %v955_v7, 4  ;;  %v960_v17 = vrot.slane %v958_v22, 5  ;;  %v4972_v21 = vrot.slane %v1056_v2, 9  ;;  %v6581_v3 = vpop.permute.xlu2 %2211  ;;  %v5014_v22 = vld [vmem:[%s6163_s18 + $0x54] sm:$0xe] }
 0x106   : > { %2169 = vrot.lane.b32.xlu2 %v2155_v52, %s5645_s9  ;;  %v1695_v0 = vrot.slane %v1694_v40, 4  ;;  %v1690_v14 = vsel %vm6198_vm13, %v1685_v11, %v1689_v19  ;;  %v966_v42 = vrot.slane %v964_v12, 5  ;;  %v970_v26 = vrot.slane %v968_v49, 4  ;;  %v5428_v40 = vld [vmem:[%s6163_s18 + $0xc] sm:$0xff] }
 0x107   : > { %2121 = vrot.lane.b32.xlu0 %v5442_v63, %s5640_s27  ;;  %v2299_v25 = vunpack.c.l.b16 %v1690_v14  ;;  %v961_v28 = vor.u32 %v960_v17, %v957_v34  ;;  %v976_v41 = vrot.slane %v974_v13, 5  ;;  %v1137_v46 = vrot.slane %v790_v4, 5 }
 0x108   : > { %v6577_v23 = vpop.permute.xlu0 %2051  ;;  %v1700_v57 = vsel %vm6198_vm13, %v1695_v0, %v1699_v6  ;;  %2625 = vmatpush.bf16.msra.mxu0 %v5457_v9  ;;  %v971_v51 = vor.u32 %v970_v26, %v966_v42  ;;  %v1140_v30 = vrot.slane %v803_v56, 5  ;;  %v4971_v31 = vrot.slane %v1055_v61, 9 }
 0x109   : > { %v2300_v27 = vunpack.c.l.b16 %v1700_v57  ;;  %v1130_v36 = vrot.slane %v6462_v20, 5  ;;  %v962_v5 = vrot.slane %v961_v28, 4  ;;  %v1138_v44 = vsel %vm6169_vm12, %v4972_v21, %v1137_v46  ;;  %v5013_v57 = vld [vmem:[%s6163_s18 + $0x48] sm:$0xe] }
 0x10a   : > { %v6583_v24 = vpop.permute.xlu1 %2371  ;;  %v1139_v33 = vrot.slane %v1137_v46, 4  ;;  %v972_v47 = vrot.slane %v971_v51, 4  ;;  %v2033_v38 = vunpack.c.l.b16 %v1138_v44  ;;  %v1133_v53 = vrot.slane %v6472_v35, 5  ;;  %v5004_v35 = vld [vmem:[%s6163_s18 + $0x5c] sm:$0x1] }
 0x10b   : > { %2331 = vrot.lane.b32.xlu1 %v2316_v10, %s5646_s10  ;;  %v2315_v43 = vpack.c.b16 %v2300_v27, %v2299_v25  ;;  %v1131_v8 = vsel %vm6169_vm12, %v4971_v31, %v1130_v36  ;;  %v1132_v50 = vrot.slane %v1130_v36, 4  ;;  %v967_v20 = vsel %vm6198_vm13, %v962_v5, %v966_v42 }
 0x10c   : > { %v1141_v52 = vsel %vm6169_vm12, %v1139_v33, %v1140_v30  ;;  %v977_v29 = vsel %vm6198_vm13, %v972_v47, %v976_v41  ;;  %v1983_v19 = vunpack.c.l.b16 %v967_v20  ;;  %v2031_v60 = vunpack.c.l.b16 %v1131_v8  ;;  %v5042_v8 = vld [vmem:[%s6163_s18 + $0x60] sm:$0xf] }
 0x10d   : > { %v2034_v59 = vunpack.c.l.b16 %v1141_v52  ;;  %v1984_v63 = vunpack.c.l.b16 %v977_v29  ;;  %v1134_v15 = vsel %vm6169_vm12, %v1132_v50, %v1133_v53  ;;  %v1342_v6 = vshrl.u32 %v4990_v54, 16  ;;  %v5043_v53 = vld [vmem:[%s6163_s18 + $0x64] sm:$0xf] }
 0x10e   : > { %2329 = vrot.lane.b32.xlu2 %v2315_v43, %s5646_s10  ;;  %v2032_v56 = vunpack.c.l.b16 %v1134_v15  ;;  %v1345_v10 = vshll.u32 %v4990_v54, 16  ;;  %v1351_v11 = vshll.u32 %v4991_v62, 16  ;;  %v1355_v7 = vshrl.u32 %v4991_v62, 16 }
 0x10f   : > { %2281 = vrot.lane.b32.xlu0 %v5452_v39, %s5642_s30  ;;  %v2047_v4 = vpack.c.b16 %v2034_v59, %v2033_v38  ;;  %v1997_v9 = vpack.c.b16 %v1984_v63, %v1983_v19  ;;  %v1344_v49 = vrot.slane %v1342_v6, 4  ;;  %v1361_v13 = vshll.u32 %v5004_v35, 16  ;;  %v5056_v59 = vld [vmem:[%s6163_s18 + $0x68] sm:$0x1] }
 0x110   : > { %v2046_v12 = vpack.c.b16 %v2032_v56, %v2031_v60  ;;  %v1347_v17 = vrot.slane %v1345_v10, 5  ;;  %v1353_v21 = vrot.slane %v1351_v11, 5  ;;  %v1357_v61 = vrot.slane %v1355_v7, 4  ;;  %v5065_v7 = vld [vmem:[%s6163_s18 + $0x54] sm:$0xe] }
 0x111   : > { %v2002_v2 = vpop.permute.xlu0 %2001  ;;  %v1363_v27 = vrot.slane %v1361_v13, 5  ;;  %v5024_v28 = vrot.slane %v5014_v22, 9  ;;  %v1521_v51 = vrot.slane %v4991_v62, 5  ;;  %v1524_v31 = vrot.slane %v5004_v35, 5  ;;  %v1057_v13 = vld [vmem:[%s6163_s18 + $0x54] sm:$0xe] }
 0x112   : > { %v2394_v0 = vsel %vm2391_vm15, %v5427_v55, %v2002_v2  ;;  %v1348_v46 = vor.u32 %v1347_v17, %v1344_v49  ;;  %v5023_v36 = vrot.slane %v5013_v57, 9  ;;  %v1517_v20 = vrot.slane %v6501_v16, 5  ;;  %v5066_v16 = vld [vmem:[%s6163_s18 + $0x60] sm:$0xe] }
 0x113   : > { %v2424_v14 = vsel %vm2422_vm0, %v2394_v0, %v6577_v23  ;;  %2063 = vrot.lane.b32.xlu1 %v2047_v4, %s5641_s28  ;;  %v2004_v34 = vpop.permute.xlu2 %2003  ;;  %v1358_v23 = vor.u32 %v1357_v61, %v1353_v21  ;;  %v1522_v44 = vsel %vm6169_vm12, %v5024_v28, %v1521_v51  ;;  %v1523_v33 = vrot.slane %v1521_v51, 4 }
 0x114   : > { %v2162_v25 = vpop.permute.xlu1 %2161  ;;  %v2445_v42 = vsel %vm2443_vm1, %v2424_v14, %v6551_v45  ;;  %v6617_v26 = vsel %vm2391_vm15, %v5428_v40, %v2004_v34  ;;  %v1514_v45 = vrot.slane %v6498_v18, 5  ;;  %v1349_v43 = vrot.slane %v1348_v46, 4 }
 0x115   : > { %v2466_v41 = vsel %vm2464_vm2, %v2445_v42, %v2162_v25  ;;  %v1359_v5 = vrot.slane %v1358_v23, 4  ;;  %v1525_v19 = vsel %vm6169_vm12, %v1523_v33, %v1524_v31  ;;  %v1726_v15 = vshrl.u32 %v5042_v8, 16 }
 0x116   : > { %v2487_v30 = vsel %vm2485_vm3, %v2466_v41, %v6581_v3  ;;  %2061 = vrot.lane.b32.xlu2 %v2046_v12, %s5641_s28  ;;  %v2193_v3 = vunpack.c.l.b16 %v1522_v44  ;;  %v1515_v47 = vsel %vm6169_vm12, %v5023_v36, %v1514_v45  ;;  %v1516_v38 = vrot.slane %v1514_v45, 4  ;;  %v6662_v36 = vld [vmem:[%s6163_s18 + $0x58] sm:$0xf] }
 0x117   : > { %2013 = vrot.lane.b32.xlu0 %v1997_v9, %s5644_s7  ;;  %v2508_v39 = vsel %vm2506_vm4, %v2487_v30, %v6549_v37  ;;  %v1354_v50 = vsel %vm6198_vm13, %v1349_v43, %v1353_v21  ;;  %v1364_v37 = vsel %vm6198_vm13, %v1359_v5, %v1363_v27  ;;  %v2191_v52 = vunpack.c.l.b16 %v1515_v47  ;;  %v6668_v5 = vld [vmem:[%s6163_s18 + $0x5c] sm:$0x1] }
 0x118   : > { %v2143_v55 = vunpack.c.l.b16 %v1354_v50  ;;  %v2144_v29 = vunpack.c.l.b16 %v1364_v37  ;;  %v2194_v62 = vunpack.c.l.b16 %v1525_v19  ;;  %v1518_v63 = vsel %vm6169_vm12, %v1516_v38, %v1517_v20  ;;  %v6674_v38 = vld [vmem:[%s6163_s18 + $0x64] sm:$0xf]  ;;  %v5067_v19 = vld [vmem:[%s6163_s18 + $0x6c] sm:$0xe] }
 0x119   : > { %v2322_v18 = vpop.permute.xlu0 %2321  ;;  %v2192_v4 = vunpack.c.l.b16 %v1518_v63  ;;  %v1729_v40 = vshll.u32 %v5042_v8, 16  ;;  %v1735_v6 = vshll.u32 %v5043_v53, 16  ;;  %v1728_v9 = vrot.slane %v1726_v15, 4  ;;  %v5015_v8 = vld [vmem:[%s6163_s18 + $0x60] sm:$0xe] }
 0x11a   : > { %v2529_v54 = vsel %vm7781_vm5, %v2508_v39, %v2322_v18  ;;  %v2157_v35 = vpack.c.b16 %v2144_v29, %v2143_v55  ;;  %v2207_v2 = vpack.c.b16 %v2194_v62, %v2193_v3  ;;  %v1739_v10 = vshrl.u32 %v5043_v53, 16  ;;  %v6691_v15 = vld [vmem:[%s6163_s18 + $0x70] sm:$0xf] }
 0x11b   : > { %v2550_v60 = vsel %vm2548_vm6, %v2529_v54, %v6583_v24  ;;  %v1745_v11 = vshll.u32 %v5056_v59, 16  ;;  %v2206_v24 = vpack.c.b16 %v2192_v4, %v2191_v52  ;;  %v1731_v0 = vrot.slane %v1729_v40, 5  ;;  %v6683_v52 = vld [vmem:[%s6163_s18 + $0x68] sm:$0x1] }
 0x11c   : > { %5208 = vmatmul.msk.bf16.vlgmr.msra.gmra.mxu0 %vm7782_vm7, %v2550_v60  ;;  %v2114_v56 = vpop.permute.xlu1 %2113  ;;  %v1737_v12 = vrot.slane %v1735_v6, 5  ;;  %v5076_v49 = vrot.slane %v5066_v16, 9  ;;  %2223 = vrot.lane.b32.xlu1 %v2207_v2, %s5647_s11  ;;  %v1741_v14 = vrot.slane %v1739_v10, 4  ;;  %v1905_v17 = vrot.slane %v5043_v53, 5  ;;  %v6696_v6 = vld [vmem:[%s6163_s18 + $0x74] sm:$0x1] }
 0x11d   : > { %v1747_v34 = vrot.slane %v1745_v11, 5  ;;  %v1908_v21 = vrot.slane %v5056_v59, 5  ;;  %v1732_v61 = vor.u32 %v1731_v0, %v1728_v9  ;;  %v5075_v57 = vrot.slane %v5065_v7, 9  ;;  %v793_v2 = vld [vmem:[%s6163_s18 + $0x60] sm:$0xf]  ;;  %v5429_v11 = vld [vmem:[%s6163_s18 + $0x18] sm:$0xff] }
 0x11e   : > { %v2164_v22 = vpop.permute.xlu2 %2163  ;;  %2221 = vrot.lane.b32.xlu2 %v2206_v24, %s5647_s11  ;;  %v1898_v25 = vrot.slane %v6525_v58, 5  ;;  %v1901_v42 = vrot.slane %v6530_v48, 5  ;;  %v1742_v28 = vor.u32 %v1741_v14, %v1737_v12  ;;  %v1906_v41 = vsel %vm6169_vm12, %v5076_v49, %v1905_v17 }
 0x11f   : > { %2173 = vrot.lane.b32.xlu0 %v2157_v35, %s5645_s9  ;;  %v1907_v46 = vrot.slane %v1905_v17, 4  ;;  %v4973_v23 = vrot.slane %v1057_v13, 9  ;;  %v1733_v30 = vrot.slane %v1732_v61, 4  ;;  %v2353_v31 = vunpack.c.l.b16 %v1906_v41 }
 0x120   : > { %v1899_v58 = vsel %vm6169_vm12, %v5075_v57, %v1898_v25  ;;  %v1743_v45 = vrot.slane %v1742_v28, 4  ;;  %v1900_v43 = vrot.slane %v1898_v25, 4  ;;  %v1144_v20 = vrot.slane %v6662_v36, 5 }
 0x121   : > { %v2054_v27 = vpop.permute.xlu0 %2053  ;;  %v1909_v39 = vsel %vm6169_vm12, %v1907_v46, %v1908_v21  ;;  %v1738_v44 = vsel %vm6198_vm13, %v1733_v30, %v1737_v12  ;;  %v2351_v3 = vunpack.c.l.b16 %v1899_v58  ;;  %v1147_v29 = vrot.slane %v6668_v5, 5  ;;  %v6713_v21 = vld [vmem:[%s6163_s18 + $0x64] sm:$0xf]  ;;  %v6720_v46 = vld [vmem:[%s6163_s18 + $0x68] sm:$0x1] }
 0x122   : > { %v2426_v51 = vsel %vm2422_vm0, %v6617_v26, %v2054_v27  ;;  %v2354_v33 = vunpack.c.l.b16 %v1909_v39  ;;  %v1748_v18 = vsel %vm6198_vm13, %v1743_v45, %v1747_v34  ;;  %v2303_v50 = vunpack.c.l.b16 %v1738_v44 }
 0x123   : > { %v2447_v48 = vsel %vm2443_vm1, %v2426_v51, %v2114_v56  ;;  %v1902_v37 = vsel %vm6169_vm12, %v1900_v43, %v1901_v42  ;;  %v2304_v53 = vunpack.c.l.b16 %v1748_v18  ;;  %v1145_v59 = vsel %vm6169_vm12, %v4973_v23, %v1144_v20  ;;  %v5444_v42 = vld [vmem:[%s6163_s18 + $0x60] sm:$0xff]  ;;  %v791_v23 = vld [vmem:[%s6163_s18 + $0x54] sm:$0xf] }
 0x124   : > { %v2468_v26 = vsel %vm2464_vm2, %v2447_v48, %v2164_v22  ;;  %v2274_v47 = vpop.permute.xlu1 %2273  ;;  %v2367_v54 = vpack.c.b16 %v2354_v33, %v2353_v31  ;;  %v2352_v55 = vunpack.c.l.b16 %v1902_v37  ;;  %v1146_v60 = vrot.slane %v1144_v20, 4  ;;  %v5443_v48 = vld [vmem:[%s6163_s18 + $0x54] sm:$0xff] }
 0x125   : > { %v5025_v62 = vrot.slane %v5015_v8, 9  ;;  %v1528_v63 = vrot.slane %v6674_v38, 5  ;;  %v2317_v16 = vpack.c.b16 %v2304_v53, %v2303_v50  ;;  %v2035_v56 = vunpack.c.l.b16 %v1145_v59  ;;  %v4994_v59 = vld [vmem:[%s6163_s18 + $0x6c] sm:$0xf] }
 0x126   : > { %2383 = vrot.lane.b32.xlu1 %v2367_v54, %s5643_s6  ;;  %v2366_v35 = vpack.c.b16 %v2352_v55, %v2351_v3  ;;  %v1531_v40 = vrot.slane %v6683_v52, 5  ;;  %v1148_v10 = vsel %vm6169_vm12, %v1146_v60, %v1147_v29  ;;  %v5077_v22 = vrot.slane %v5067_v19, 9 }
 0x127   : > { %v1529_v7 = vsel %vm6169_vm12, %v5025_v62, %v1528_v63  ;;  %v1530_v24 = vrot.slane %v1528_v63, 4  ;;  %2333 = vrot.lane.b32.xlu0 %v2317_v16, %s5646_s10  ;;  %v2036_v12 = vunpack.c.l.b16 %v1148_v10  ;;  %v1912_v13 = vrot.slane %v6691_v15, 5 }
 0x128   : > { %v2324_v4 = vpop.permute.xlu2 %2323  ;;  %2381 = vrot.lane.b32.xlu2 %v2366_v35, %s5643_s6  ;;  %v2195_v49 = vunpack.c.l.b16 %v1529_v7  ;;  %v1915_v17 = vrot.slane %v6696_v6, 5  ;;  %v1003_v61 = vshrl.u32 %v793_v2, 16  ;;  %v1006_v39 = vshll.u32 %v793_v2, 16  ;;  %v6745_v2 = vld [vmem:[%s6163_s18 + $0x70] sm:$0xf] }
 0x129   : > { %v2214_v9 = vpop.permute.xlu0 %2213  ;;  %v1532_v34 = vsel %vm6169_vm12, %v1530_v24, %v1531_v40  ;;  %v2048_v25 = vpack.c.b16 %v2036_v12, %v2035_v56  ;;  %v1913_v41 = vsel %vm6169_vm12, %v5077_v22, %v1912_v13  ;;  %v1914_v30 = vrot.slane %v1912_v13, 4 }
 0x12a   : > { %v2489_v0 = vsel %vm2485_vm3, %v2468_v26, %v2214_v9  ;;  %v2196_v28 = vunpack.c.l.b16 %v1532_v34  ;;  %v2355_v31 = vunpack.c.l.b16 %v1913_v41  ;;  %v1005_v58 = vrot.slane %v1003_v61, 4  ;;  %v5454_v9 = vld [vmem:[%s6163_s18 + $0x6c] sm:$0xff]  ;;  %v5453_v34 = vld [vmem:[%s6163_s18 + $0x60] sm:$0xff] }
 0x12b   : > { %v2510_v14 = vsel %vm2506_vm4, %v2489_v0, %v2274_v47  ;;  %v1012_v43 = vshll.u32 %v6713_v21, 16  ;;  %v1016_v26 = vshrl.u32 %v6713_v21, 16  ;;  %v1916_v44 = vsel %vm6169_vm12, %v1914_v30, %v1915_v17  ;;  %v6753_v17 = vld [vmem:[%s6163_s18 + $0x74] sm:$0x1] }
 0x12c   : > { %v2531_v57 = vsel %vm7781_vm5, %v2510_v14, %v2324_v4  ;;  %v2006_v27 = vpop.permute.xlu1 %2005  ;;  %v6725_v45 = vpack.c.b16 %v2196_v28, %v2195_v49  ;;  %v1022_v33 = vshll.u32 %v6720_v46, 16  ;;  %v979_v3 = vshrl.u32 %v791_v23, 16  ;;  %v4992_v14 = vld [vmem:[%s6163_s18 + $0x60] sm:$0xf] }
 0x12d   : > { %v2400_v51 = vsel %vm2391_vm15, %v5429_v11, %v2006_v27  ;;  %v982_v47 = vshll.u32 %v791_v23, 16  ;;  %v2356_v18 = vunpack.c.l.b16 %v1916_v44  ;;  %v1008_v50 = vrot.slane %v1006_v39, 5 }
 0x12e   : > { %2125 = vrot.lane.b32.xlu1 %v5444_v42, %s5640_s27  ;;  %v1014_v37 = vrot.slane %v1012_v43, 5  ;;  %v1018_v20 = vrot.slane %v1016_v26, 4  ;;  %v1024_v55 = vrot.slane %v1022_v33, 5  ;;  %v981_v29 = vrot.slane %v979_v3, 4 }
 0x12f   : > { %v984_v19 = vrot.slane %v982_v47, 5  ;;  %2065 = vrot.lane.b32.xlu0 %v2048_v25, %s5641_s28  ;;  %v6738_v62 = vpack.c.b16 %v2356_v18, %v2355_v31  ;;  %v1009_v63 = vor.u32 %v1008_v50, %v1005_v58  ;;  %v988_v16 = vshll.u32 %v6662_v36, 16 }
 0x130   : > { %v2056_v8 = vpop.permute.xlu2 %2055  ;;  %2123 = vrot.lane.b32.xlu2 %v5443_v48, %s5640_s27  ;;  %v1019_v35 = vor.u32 %v1018_v20, %v1014_v37  ;;  %v992_v56 = vshrl.u32 %v6662_v36, 16  ;;  %v998_v40 = vshll.u32 %v6668_v5, 16  ;;  %v1390_v24 = vshrl.u32 %v4994_v59, 16  ;;  %v5046_v20 = vld [vmem:[%s6163_s18 + $0x78] sm:$0xf] }
 0x131   : > { %v2374_v53 = vpop.permute.xlu0 %2373  ;;  %v2428_v54 = vsel %vm2422_vm0, %v2400_v51, %v2056_v8  ;;  %v985_v4 = vor.u32 %v984_v19, %v981_v29  ;;  %v1010_v11 = vrot.slane %v1009_v63, 4  ;;  %v990_v7 = vrot.slane %v988_v16, 5  ;;  %v6776_v16 = vld [vmem:[%s6163_s18 + $0x7c] sm:$0xf] }
 0x132   : > { %v2552_v60 = vsel %vm2548_vm6, %v2531_v57, %v2374_v53  ;;  %v1393_v22 = vshll.u32 %v4994_v59, 16  ;;  %v1020_v0 = vrot.slane %v1019_v35, 4  ;;  %v994_v49 = vrot.slane %v992_v56, 4 }
 0x133   : > { %5209 = vmatmul.msk.bf16.gmra.mxu0 %vm7782_vm7, %v2552_v60  ;;  %v986_v12 = vrot.slane %v985_v4, 4  ;;  %v1000_v13 = vrot.slane %v998_v40, 5  ;;  %v1015_v36 = vsel %vm6198_vm13, %v1010_v11, %v1014_v37  ;;  %v1392_v5 = vrot.slane %v1390_v24, 4 }
 0x134   : > { %v2166_v10 = vpop.permute.xlu1 %2165  ;;  %v1395_v61 = vrot.slane %v1393_v22, 5  ;;  %v1399_v57 = vshll.u32 %v6745_v2, 16  ;;  %v1025_v25 = vsel %vm6198_vm13, %v1020_v0, %v1024_v55  ;;  %v1987_v42 = vunpack.c.l.b16 %v1015_v36 }
 0x135   : > { %v991_v27 = vsel %vm6198_vm13, %v986_v12, %v990_v7  ;;  %v995_v28 = vor.u32 %v994_v49, %v990_v7  ;;  %v1988_v23 = vunpack.c.l.b16 %v1025_v25  ;;  %v1403_v39 = vshrl.u32 %v6745_v2, 16 }
 0x136   : > { %2285 = vrot.lane.b32.xlu1 %v5454_v9, %s5642_s30  ;;  %v1985_v51 = vunpack.c.l.b16 %v991_v27  ;;  %v1396_v30 = vor.u32 %v1395_v61, %v1392_v5  ;;  %v1401_v31 = vrot.slane %v1399_v57, 5  ;;  %v1409_v43 = vshll.u32 %v6753_v17, 16  ;;  %v6790_v57 = vld [vmem:[%s6163_s18 + $0x80] sm:$0x1] }
 0x137   : > { %v996_v48 = vrot.slane %v995_v28, 4  ;;  %v1366_v26 = vshrl.u32 %v4992_v14, 16  ;;  %2225 = vrot.lane.b32.xlu0 %v6725_v45, %s5647_s11  ;;  %v1999_v33 = vpack.c.b16 %v1988_v23, %v1987_v42  ;;  %v1369_v47 = vshll.u32 %v4992_v14, 16  ;;  %v5044_v42 = vld [vmem:[%s6163_s18 + $0x6c] sm:$0xf] }
 0x138   : > { %v2216_v41 = vpop.permute.xlu2 %2215  ;;  %2283 = vrot.lane.b32.xlu2 %v5453_v34, %s5642_s30  ;;  %v1397_v3 = vrot.slane %v1396_v30, 4  ;;  %v1405_v50 = vrot.slane %v1403_v39, 4  ;;  %v1411_v37 = vrot.slane %v1409_v43, 5  ;;  %v1375_v63 = vshll.u32 %v6674_v38, 16 }
 0x139   : > { %v2116_v58 = vpop.permute.xlu0 %2115  ;;  %v1001_v18 = vsel %vm6198_vm13, %v996_v48, %v1000_v13  ;;  %v1371_v60 = vrot.slane %v1369_v47, 5  ;;  %v1379_v4 = vshrl.u32 %v6674_v38, 16  ;;  %v1385_v56 = vshll.u32 %v6683_v52, 16 }
 0x13a   : > { %v2449_v44 = vsel %vm2443_vm1, %v2428_v54, %v2116_v58  ;;  %v1986_v55 = vunpack.c.l.b16 %v1001_v18  ;;  %v1402_v29 = vsel %vm6198_vm13, %v1397_v3, %v1401_v31  ;;  %v1368_v54 = vrot.slane %v1366_v26, 4  ;;  %v5430_v3 = vld [vmem:[%s6163_s18 + $0x24] sm:$0xff] }
 0x13b   : > { %v2470_v8 = vsel %vm2464_vm2, %v2449_v44, %v2166_v10  ;;  %v1406_v19 = vor.u32 %v1405_v50, %v1401_v31  ;;  %v2147_v59 = vunpack.c.l.b16 %v1402_v29  ;;  %v1774_v40 = vshrl.u32 %v5046_v20, 16  ;;  %v5445_v44 = vld [vmem:[%s6163_s18 + $0x6c] sm:$0xff] }
 0x13c   : > { %v2491_v53 = vsel %vm2485_vm3, %v2470_v8, %v2216_v41  ;;  %v2326_v45 = vpop.permute.xlu1 %2325  ;;  %v1998_v35 = vpack.c.b16 %v1986_v55, %v1985_v51  ;;  %v1372_v10 = vor.u32 %v1371_v60, %v1368_v54  ;;  %v1377_v11 = vrot.slane %v1375_v63, 5  ;;  %v795_v55 = vld [vmem:[%s6163_s18 + $0x6c] sm:$0xf] }
 0x13d   : > { %v1407_v9 = vrot.slane %v1406_v19, 4  ;;  %v1777_v7 = vshll.u32 %v5046_v20, 16  ;;  %v1381_v22 = vrot.slane %v1379_v4, 4  ;;  %v1387_v0 = vrot.slane %v1385_v56, 5 }
 0x13e   : > { %2017 = vrot.lane.b32.xlu1 %v1999_v33, %s5644_s7  ;;  %v1776_v12 = vrot.slane %v1774_v40, 4  ;;  %v1783_v49 = vshll.u32 %v6776_v16, 16  ;;  %v1373_v52 = vrot.slane %v1372_v10, 4  ;;  %v1787_v34 = vshrl.u32 %v6776_v16, 16  ;;  %v796_v10 = vld [vmem:[%s6163_s18 + $0x70] sm:$0xf] }
 0x13f   : > { %v1412_v38 = vsel %vm6198_vm13, %v1407_v9, %v1411_v37  ;;  %v1779_v14 = vrot.slane %v1777_v7, 5  ;;  %2385 = vrot.lane.b32.xlu0 %v6738_v62, %s5643_s6  ;;  %v1382_v61 = vor.u32 %v1381_v22, %v1377_v11  ;;  %v1793_v43 = vshll.u32 %v6790_v57, 16 }
 0x140   : > { %v2376_v24 = vpop.permute.xlu2 %2375  ;;  %2015 = vrot.lane.b32.xlu2 %v1998_v35, %s5644_s7  ;;  %v2148_v5 = vunpack.c.l.b16 %v1412_v38  ;;  %v1785_v25 = vrot.slane %v1783_v49, 5  ;;  %v1378_v28 = vsel %vm6198_vm13, %v1373_v52, %v1377_v11  ;;  %v1789_v23 = vrot.slane %v1787_v34, 4  ;;  %v1059_v49 = vld [vmem:[%s6163_s18 + $0x6c] sm:$0xe] }
 0x141   : > { %v2276_v13 = vpop.permute.xlu0 %2275  ;;  %v1780_v41 = vor.u32 %v1779_v14, %v1776_v12  ;;  %v1383_v30 = vrot.slane %v1382_v61, 4  ;;  %v2145_v31 = vunpack.c.l.b16 %v1378_v28  ;;  %v1750_v26 = vshrl.u32 %v5044_v42, 16 }
 0x142   : > { %v2512_v36 = vsel %vm2506_vm4, %v2491_v53, %v2276_v13  ;;  %v2159_v51 = vpack.c.b16 %v2148_v5, %v2147_v59  ;;  %v1790_v39 = vor.u32 %v1789_v23, %v1785_v25  ;;  %v1753_v47 = vshll.u32 %v5044_v42, 16 }
 0x143   : > { %v2533_v27 = vsel %vm7781_vm5, %v2512_v36, %v2326_v45  ;;  %v1781_v48 = vrot.slane %v1780_v41, 4  ;;  %v1388_v33 = vsel %vm6198_vm13, %v1383_v30, %v1387_v0  ;;  %v1759_v8 = vshll.u32 %v6691_v15, 16  ;;  %v806_v0 = vld [vmem:[%s6163_s18 + $0x74] sm:$0x1] }
 0x144   : > { %v2554_v62 = vsel %vm2548_vm6, %v2533_v27, %v2376_v24  ;;  %v2058_v58 = vpop.permute.xlu1 %2057  ;;  %v1763_v18 = vshrl.u32 %v6691_v15, 16  ;;  %v2146_v50 = vunpack.c.l.b16 %v1388_v33  ;;  %v1791_v20 = vrot.slane %v1790_v39, 4 }
 0x145   : > { %5210 = vmatmul.msk.bf16.gmra.mxu0 %vm7782_vm7, %v2554_v62  ;;  %v1786_v37 = vsel %vm6198_vm13, %v1781_v48, %v1785_v25  ;;  %v1795_v53 = vrot.slane %v1793_v43, 5  ;;  %v1752_v54 = vrot.slane %v1750_v26, 4  ;;  %v1755_v19 = vrot.slane %v1753_v47, 5  ;;  %v5455_v25 = vld [vmem:[%s6163_s18 + $0x78] sm:$0xff] }
 0x146   : > { %2177 = vrot.lane.b32.xlu1 %v2159_v51, %s5645_s9  ;;  %v2307_v29 = vunpack.c.l.b16 %v1786_v37  ;;  %v1761_v59 = vrot.slane %v1759_v8, 5  ;;  %v2158_v60 = vpack.c.b16 %v2146_v50, %v2145_v31  ;;  %v1765_v35 = vrot.slane %v1763_v18, 4  ;;  %v1058_v31 = vld [vmem:[%s6163_s18 + $0x60] sm:$0xe] }
 0x147   : > { %v1796_v15 = vsel %vm6198_vm13, %v1791_v20, %v1795_v53  ;;  %v1769_v4 = vshll.u32 %v6696_v6, 16  ;;  %2127 = vrot.lane.b32.xlu0 %v5445_v44, %s5640_s27  ;;  %v1756_v9 = vor.u32 %v1755_v19, %v1752_v54  ;;  %v1027_v11 = vshrl.u32 %v795_v55, 16  ;;  %v4996_v53 = vld [vmem:[%s6163_s18 + $0x78] sm:$0xf] }
 0x148   : > { %v2118_v45 = vpop.permute.xlu2 %2117  ;;  %v2308_v40 = vunpack.c.l.b16 %v1796_v15  ;;  %2175 = vrot.lane.b32.xlu2 %v2158_v60, %s5645_s9  ;;  %v1766_v24 = vor.u32 %v1765_v35, %v1761_v59  ;;  %v1030_v12 = vshll.u32 %v795_v55, 16  ;;  %v1036_v5 = vshll.u32 %v796_v10, 16  ;;  %v4997_v15 = vld [vmem:[%s6163_s18 + $0x7c] sm:$0xf] }
 0x149   : > { %v2008_v63 = vpop.permute.xlu0 %2007  ;;  %v1771_v22 = vrot.slane %v1769_v4, 5  ;;  %v1757_v38 = vrot.slane %v1756_v9, 4  ;;  %v1029_v14 = vrot.slane %v1027_v11, 4  ;;  %v1040_v61 = vshrl.u32 %v796_v10, 16  ;;  %v5431_v9 = vld [vmem:[%s6163_s18 + $0x30] sm:$0xff] }
 0x14a   : > { %v2403_v56 = vsel %vm2391_vm15, %v5430_v3, %v2008_v63  ;;  %v2319_v13 = vpack.c.b16 %v2308_v40, %v2307_v29  ;;  %v1767_v34 = vrot.slane %v1766_v24, 4  ;;  %v1032_v36 = vrot.slane %v1030_v12, 5 }
 0x14b   : > { %v2430_v7 = vsel %vm2422_vm0, %v2403_v56, %v2058_v58  ;;  %v1762_v42 = vsel %vm6198_vm13, %v1757_v38, %v1761_v59  ;;  %v1046_v27 = vshll.u32 %v806_v0, 16  ;;  %v4975_v28 = vrot.slane %v1059_v49, 9 }
 0x14c   : > { %v2451_v6 = vsel %vm2443_vm1, %v2430_v7, %v2118_v45  ;;  %v2218_v52 = vpop.permute.xlu1 %2217  ;;  %v1158_v41 = vrot.slane %v796_v10, 5  ;;  %v1772_v23 = vsel %vm6198_vm13, %v1767_v34, %v1771_v22  ;;  %v2305_v62 = vunpack.c.l.b16 %v1762_v42  ;;  %v5007_v10 = vld [vmem:[%s6163_s18 + $0x80] sm:$0x1] }
 0x14d   : > { %v1033_v51 = vor.u32 %v1032_v36, %v1029_v14  ;;  %v1038_v30 = vrot.slane %v1036_v5, 5  ;;  %v2306_v58 = vunpack.c.l.b16 %v1772_v23  ;;  %v1042_v39 = vrot.slane %v1040_v61, 4 }
 0x14e   : > { %2337 = vrot.lane.b32.xlu1 %v2319_v13, %s5646_s10  ;;  %v1048_v43 = vrot.slane %v1046_v27, 5  ;;  %v1159_v26 = vsel %vm6169_vm12, %v4975_v28, %v1158_v41  ;;  %v1160_v3 = vrot.slane %v1158_v41, 4  ;;  %v1161_v47 = vrot.slane %v806_v0, 5  ;;  %v5017_v0 = vld [vmem:[%s6163_s18 + $0x78] sm:$0xe] }
 0x14f   : > { %v1034_v33 = vrot.slane %v1033_v51, 4  ;;  %v2039_v8 = vunpack.c.l.b16 %v1159_v26  ;;  %2287 = vrot.lane.b32.xlu0 %v5455_v25, %s5642_s30  ;;  %v2318_v18 = vpack.c.b16 %v2306_v58, %v2305_v62  ;;  %v1043_v37 = vor.u32 %v1042_v39, %v1038_v30  ;;  %v5016_v27 = vld [vmem:[%s6163_s18 + $0x6c] sm:$0xe]  ;;  %v5048_v51 = vld [vmem:[%s6163_s18 + $0x84] sm:$0xf] }
 0x150   : > { %v2278_v48 = vpop.permute.xlu2 %2277  ;;  %v4974_v20 = vrot.slane %v1058_v31, 9  ;;  %v1162_v29 = vsel %vm6169_vm12, %v1160_v3, %v1161_v47  ;;  %v1151_v54 = vrot.slane %v6713_v21, 5  ;;  %v1154_v56 = vrot.slane %v6720_v46, 5 }
 0x151   : > { %v2168_v44 = vpop.permute.xlu0 %2167  ;;  %v1039_v45 = vsel %vm6198_vm13, %v1034_v33, %v1038_v30  ;;  %2335 = vrot.lane.b32.xlu2 %v2318_v18, %s5646_s10  ;;  %v1044_v59 = vrot.slane %v1043_v37, 4  ;;  %v2040_v63 = vunpack.c.l.b16 %v1162_v29  ;;  %v1414_v11 = vshrl.u32 %v4996_v53, 16 }
 0x152   : > { %v2472_v50 = vsel %vm2464_vm2, %v2451_v6, %v2168_v44  ;;  %v1989_v60 = vunpack.c.l.b16 %v1039_v45  ;;  %v1152_v35 = vsel %vm6169_vm12, %v4974_v20, %v1151_v54  ;;  %v1153_v4 = vrot.slane %v1151_v54, 4 }
 0x153   : > { %v2493_v55 = vsel %vm2485_vm3, %v2472_v50, %v2218_v52  ;;  %v1049_v21 = vsel %vm6198_vm13, %v1044_v59, %v1048_v43  ;;  %v2050_v7 = vpack.c.b16 %v2040_v63, %v2039_v8  ;;  %v2037_v24 = vunpack.c.l.b16 %v1152_v35 }
 0x154   : > { %v2514_v19 = vsel %vm2506_vm4, %v2493_v55, %v2278_v48  ;;  %v1417_v22 = vshll.u32 %v4996_v53, 16  ;;  %v1990_v12 = vunpack.c.l.b16 %v1049_v21  ;;  %v1155_v49 = vsel %vm6169_vm12, %v1153_v4, %v1154_v56  ;;  %v5049_v55 = vld [vmem:[%s6163_s18 + $0x88] sm:$0xf]  ;;  %v5059_v56 = vld [vmem:[%s6163_s18 + $0x8c] sm:$0x1] }
 0x155   : > { %v2378_v40 = vpop.permute.xlu1 %2377  ;;  %v1416_v6 = vrot.slane %v1414_v11, 4  ;;  %v1423_v13 = vshll.u32 %v4997_v15, 16  ;;  %v2038_v46 = vunpack.c.l.b16 %v1155_v49  ;;  %v1427_v14 = vshrl.u32 %v4997_v15, 16  ;;  %v5068_v49 = vld [vmem:[%s6163_s18 + $0x78] sm:$0xe] }
 0x156   : > { %2069 = vrot.lane.b32.xlu1 %v2050_v7, %s5641_s28  ;;  %v1419_v52 = vrot.slane %v1417_v22, 5  ;;  %v1433_v34 = vshll.u32 %v5007_v10, 16  ;;  %v2000_v36 = vpack.c.b16 %v1990_v12, %v1989_v60  ;;  %v5027_v42 = vrot.slane %v5017_v0, 9 }
 0x157   : > { %v1425_v25 = vrot.slane %v1423_v13, 5  ;;  %v2049_v28 = vpack.c.b16 %v2038_v46, %v2037_v24  ;;  %v1429_v62 = vrot.slane %v1427_v14, 4  ;;  %v1542_v58 = vrot.slane %v4997_v15, 5  ;;  %v5069_v24 = vld [vmem:[%s6163_s18 + $0x84] sm:$0xe] }
 0x158   : > { %v2010_v38 = vpop.permute.xlu2 %2009  ;;  %v1420_v23 = vor.u32 %v1419_v52, %v1416_v6  ;;  %2019 = vrot.lane.b32.xlu0 %v2000_v36, %s5644_s7  ;;  %v1435_v31 = vrot.slane %v1433_v34, 5  ;;  %v1545_v48 = vrot.slane %v5007_v10, 5  ;;  %v5026_v26 = vrot.slane %v5016_v27, 9 }
 0x159   : > { %v2328_v5 = vpop.permute.xlu0 %2327  ;;  %v2406_v61 = vsel %vm2391_vm15, %v5431_v9, %v2010_v38  ;;  %2067 = vrot.lane.b32.xlu2 %v2049_v28, %s5641_s28  ;;  %v1430_v43 = vor.u32 %v1429_v62, %v1425_v25  ;;  %v1535_v44 = vrot.slane %v6745_v2, 5  ;;  %v1543_v33 = vsel %vm6169_vm12, %v5027_v42, %v1542_v58 }
 0x15a   : > { %v2535_v41 = vsel %vm7781_vm5, %v2514_v19, %v2328_v5  ;;  %v1421_v39 = vrot.slane %v1420_v23, 4  ;;  %v1544_v3 = vrot.slane %v1542_v58, 4  ;;  %v1538_v47 = vrot.slane %v6753_v17, 5 }
 0x15b   : > { %v2556_v30 = vsel %vm2548_vm6, %v2535_v41, %v2378_v40  ;;  %v1798_v18 = vshrl.u32 %v5048_v51, 16  ;;  %v1431_v37 = vrot.slane %v1430_v43, 4  ;;  %v2199_v20 = vunpack.c.l.b16 %v1543_v33 }
 0x15c   : > { %5211 = vmatmul.msk.bf16.gmra.mxu0 %vm7782_vm7, %v2556_v30  ;;  %v1426_v50 = vsel %vm6198_vm13, %v1421_v39, %v1425_v25  ;;  %v1536_v53 = vsel %vm6169_vm12, %v5026_v26, %v1535_v44  ;;  %v1546_v2 = vsel %vm6169_vm12, %v1544_v3, %v1545_v48  ;;  %v1537_v29 = vrot.slane %v1535_v44, 4 }
 0x15d   : > { %v2120_v8 = vpop.permute.xlu1 %2119  ;;  %v2149_v45 = vunpack.c.l.b16 %v1426_v50  ;;  %v2197_v54 = vunpack.c.l.b16 %v1536_v53  ;;  %v1436_v17 = vsel %vm6198_vm13, %v1431_v37, %v1435_v31  ;;  %v2200_v19 = vunpack.c.l.b16 %v1546_v2 }
 0x15e   : > { %v1800_v60 = vrot.slane %v1798_v18, 4  ;;  %v1801_v63 = vshll.u32 %v5048_v51, 16  ;;  %v2150_v15 = vunpack.c.l.b16 %v1436_v17  ;;  %v1539_v35 = vsel %vm6169_vm12, %v1537_v29, %v1538_v47  ;;  %v5446_v17 = vld [vmem:[%s6163_s18 + $0x78] sm:$0xff] }
 0x15f   : > { %v1807_v40 = vshll.u32 %v5049_v55, 16  ;;  %v1811_v9 = vshrl.u32 %v5049_v55, 16  ;;  %v2210_v10 = vpack.c.b16 %v2200_v19, %v2199_v20  ;;  %v2198_v11 = vunpack.c.l.b16 %v1539_v35  ;;  %v5432_v19 = vld [vmem:[%s6163_s18 + $0x3c] sm:$0xff] }
 0x160   : > { %v2170_v59 = vpop.permute.xlu2 %2169  ;;  %v1803_v7 = vrot.slane %v1801_v63, 5  ;;  %v2160_v22 = vpack.c.b16 %v2150_v15, %v2149_v45  ;;  %v1817_v38 = vshll.u32 %v5059_v56, 16  ;;  %v5079_v14 = vrot.slane %v5069_v24, 9 }
 0x161   : > { %v2060_v4 = vpop.permute.xlu0 %2059  ;;  %v1809_v0 = vrot.slane %v1807_v40, 5  ;;  %v1813_v12 = vrot.slane %v1811_v9, 4  ;;  %2229 = vrot.lane.b32.xlu1 %v2210_v10, %s5647_s11  ;;  %v2209_v6 = vpack.c.b16 %v2198_v11, %v2197_v54  ;;  %v1926_v34 = vrot.slane %v5049_v55, 5  ;;  %v2720_v10 = vld [vmem:[#allocation3] sm:$0x1] }
 0x162   : > { %v2432_v21 = vsel %vm2422_vm0, %v2406_v61, %v2060_v4  ;;  %v1804_v46 = vor.u32 %v1803_v7, %v1800_v60  ;;  %2179 = vrot.lane.b32.xlu0 %v2160_v22, %s5645_s9  ;;  %v1929_v36 = vrot.slane %v5059_v56, 5  ;;  %v1819_v25 = vrot.slane %v1817_v38, 5  ;;  %v5456_v4 = vld [vmem:[%s6163_s18 + $0x84] sm:$0xff] }
 0x163   : > { %v2453_v13 = vsel %vm2443_vm1, %v2432_v21, %v2120_v8  ;;  %v1814_v52 = vor.u32 %v1813_v12, %v1809_v0  ;;  %2227 = vrot.lane.b32.xlu2 %v2209_v6, %s5647_s11  ;;  %v5078_v42 = vrot.slane %v5068_v49, 9  ;;  %v1919_v27 = vrot.slane %v6776_v16, 5 }
 0x164   : > { %v1805_v61 = vrot.slane %v1804_v46, 4  ;;  %v1927_v41 = vsel %vm6169_vm12, %v5079_v14, %v1926_v34  ;;  %v1928_v23 = vrot.slane %v1926_v34, 4  ;;  %v1922_v62 = vrot.slane %v6790_v57, 5  ;;  %v2752_v46 = vld [vmem:[#allocation3 + $0x8] sm:$0x1]  ;;  %v5433_v14 = vld [vmem:[%s6163_s18 + $0x48] sm:$0xff] }
 0x165   : > { %v2280_v5 = vpop.permute.xlu1 %2279  ;;  %v1815_v28 = vrot.slane %v1814_v52, 4  ;;  %v2359_v30 = vunpack.c.l.b16 %v1927_v41  ;;  %v1920_v31 = vsel %vm6169_vm12, %v5078_v42, %v1919_v27  ;;  %v1921_v58 = vrot.slane %v1919_v27, 4 }
 0x166   : > { %v1810_v51 = vsel %vm6198_vm13, %v1805_v61, %v1809_v0  ;;  %v1930_v43 = vsel %vm6169_vm12, %v1928_v23, %v1929_v36  ;;  %v2357_v26 = vunpack.c.l.b16 %v1920_v31  ;;  %v2474_v57 = vsel %vm2464_vm2, %v2453_v13, %v2170_v59  ;;  %v6944_v23 = vld [vmem:[%s7776_s2] ss:$0 sm:$0xff] }
 0x167   : > { %v1820_v39 = vsel %vm6198_vm13, %v1815_v28, %v1819_v25  ;;  %v2309_v16 = vunpack.c.l.b16 %v1810_v51  ;;  %v2360_v3 = vunpack.c.l.b16 %v1930_v43  ;;  %v1923_v47 = vsel %vm6169_vm12, %v1921_v58, %v1922_v62  ;;  %v2723_v28 = vld [vmem:[#allocation3 + $0xc] sm:$0x1] }
 0x168   : > { %v2330_v48 = vpop.permute.xlu2 %2329  ;;  %v2310_v33 = vunpack.c.l.b16 %v1820_v39  ;;  %v2358_v8 = vunpack.c.l.b16 %v1923_v47  ;;  %v2721_v21 = vsel %vm6917_vm10, 0, %v2720_v10  ;;  %v2753_v38 = vsel %vm6929_vm14, 0, %v2752_v46 }
 0x169   : > { %v2220_v44 = vpop.permute.xlu0 %2219  ;;  %v2370_v37 = vpack.c.b16 %v2360_v3, %v2359_v30  ;;  %2722 = vst [vmem:[#allocation3] sm:$0x1] %v2721_v21  ;;  %v2724_v62 = vsel %vm6917_vm10, 0, %v2723_v28  ;;  %vm2984_vm8 = vcmask 257024  }
 0x16a   : > { %v2495_v18 = vsel %vm2485_vm3, %v2474_v57, %v2220_v44  ;;  %v2320_v50 = vpack.c.b16 %v2310_v33, %v2309_v16  ;;  %v2369_v20 = vpack.c.b16 %v2358_v8, %v2357_v26  ;;  %2754 = vst [vmem:[#allocation3 + $0x8] sm:$0x1] %v2753_v38  ;;  %v2755_v33 = vld [vmem:[#allocation3 + $0x14] sm:$0x1]  ;;  %v5434_v8 = vld [vmem:[%s6163_s18 + $0x54] sm:$0xff] }
 0x16b   : > { %2389 = vrot.lane.b32.xlu1 %v2370_v37, %s5643_s6  ;;  %v2516_v55 = vsel %vm2506_vm4, %v2495_v18, %v2280_v5  ;;  %2725 = vst [vmem:[#allocation3 + $0xc] sm:$0x1] %v2724_v62  ;;  %v2756_v3 = vsel %vm6929_vm14, 0, %v2755_v33 }
 0x16c   : > { %2339 = vrot.lane.b32.xlu0 %v2320_v50, %s5646_s10  ;;  %2387 = vrot.lane.b32.xlu2 %v2369_v20, %s5643_s6  ;;  %v2537_v2 = vsel %vm7781_vm5, %v2516_v55, %v2330_v48  ;;  %2757 = vst [vmem:[#allocation3 + $0x14] sm:$0x1] %v2756_v3 }
 0x16d   : > { %v2012_v53 = vpop.permute.xlu1 %2011 }
 0x16e   : > { %v2409_v60 = vsel %vm2391_vm15, %v5432_v19, %v2012_v53 }
 0x170   : > { %v2062_v45 = vpop.permute.xlu2 %2061 }
 0x171   : > { %v2380_v29 = vpop.permute.xlu0 %2379  ;;  %v2434_v15 = vsel %vm2422_vm0, %v2409_v60, %v2062_v45  ;;  %v2986_v45 = vld [vmem:[#allocation3] sm:$0xf] }
 0x172   : > { %v2558_v54 = vsel %vm2548_vm6, %v2537_v2, %v2380_v29 }
 0x173   : > { %5212 = vmatmul.msk.bf16.gmra.mxu0 %vm7782_vm7, %v2558_v54 }
 0x174   : > { %2129 = vrot.lane.b32.xlu2 %v5446_v17, %s5640_s27 }
 0x175   : > { %v2172_v59 = vpop.permute.xlu1 %2171 }
 0x178   : > { %v2222_v35 = vpop.permute.xlu2 %2221 }
 0x179   : > { %v2122_v63 = vpop.permute.xlu0 %2121 }
 0x17a   : > { %v2455_v56 = vsel %vm2443_vm1, %v2434_v15, %v2122_v63  ;;  %v2726_v15 = vld [vmem:[#allocation3 + $0x18] sm:$0x1] }
 0x17b   : > { %v2476_v9 = vsel %vm2464_vm2, %v2455_v56, %v2172_v59 }
 0x17c   : > { %2289 = vrot.lane.b32.xlu2 %v5456_v4, %s5642_s30  ;;  %v2497_v7 = vsel %vm2485_vm3, %v2476_v9, %v2222_v35  ;;  %v2727_v4 = vsel %vm6917_vm10, 0, %v2726_v15 }
 0x17d   : > { %v2332_v40 = vpop.permute.xlu1 %2331  ;;  %2728 = vst [vmem:[#allocation3 + $0x18] sm:$0x1] %v2727_v4 }
 0x181   : > { %v2282_v24 = vpop.permute.xlu0 %2281 }
 0x182   : > { %v2518_v22 = vsel %vm2506_vm4, %v2497_v7, %v2282_v24  ;;  %v2382_v12 = vpop.permute.xlu2 %2381  ;;  %v2991_v7 = vld [vmem:[#allocation3 + $0x8] sm:$0x1] }
 0x183   : > { %v2539_v0 = vsel %vm7781_vm5, %v2518_v22, %v2332_v40 }
 0x184   : > { %v2560_v49 = vsel %vm2548_vm6, %v2539_v0, %v2382_v12 }
 0x185   : > { %5213 = vmatmul.msk.bf16.gmra.mxu0 %vm7782_vm7, %v2560_v49  ;;  %v2064_v13 = vpop.permute.xlu1 %2063 }
 0x189   : > { %v2014_v52 = vpop.permute.xlu0 %2013 }
 0x18a   : > { %v2124_v34 = vpop.permute.xlu2 %2123  ;;  %v2412_v36 = vsel %vm2391_vm15, %v5433_v14, %v2014_v52 }
 0x18b   : > { %v2436_v61 = vsel %vm2422_vm0, %v2412_v36, %v2064_v13 }
 0x18c   : > { %v2457_v27 = vsel %vm2443_vm1, %v2436_v61, %v2124_v34  ;;  %v2758_v34 = vld [vmem:[#allocation3 + $0x20] sm:$0x1] }
 0x18d   : > { %v2759_v61 = vsel %vm6929_vm14, 0, %v2758_v34 }
 0x18e   : > { %v2224_v5 = vpop.permute.xlu1 %2223  ;;  %2760 = vst [vmem:[#allocation3 + $0x20] sm:$0x1] %v2759_v61 }
 0x191   : > { %v2174_v25 = vpop.permute.xlu0 %2173 }
 0x192   : > { %v2284_v42 = vpop.permute.xlu2 %2283  ;;  %v2478_v41 = vsel %vm2464_vm2, %v2457_v27, %v2174_v25 }
 0x193   : > { %v2499_v51 = vsel %vm2485_vm3, %v2478_v41, %v2224_v5 }
 0x194   : > { %v2520_v48 = vsel %vm2506_vm4, %v2499_v51, %v2284_v42  ;;  %v5435_v51 = vld [vmem:[%s6163_s18 + $0x60] sm:$0xff] }
 0x198   : > { %v2384_v58 = vpop.permute.xlu1 %2383 }
 0x199   : > { %v2627_v30 = vpop.f32.mrf.mxu0  ;;  %v2334_v16 = vpop.permute.xlu0 %2333 }
 0x19a   : > { %v2628_v31 = vadd.f32 %v6944_v23, %v2627_v30  ;;  %v2016_v43 = vpop.permute.xlu2 %2015  ;;  %v2541_v26 = vsel %vm7781_vm5, %v2520_v48, %v2334_v16  ;;  %vm6960_vm5 = vmand %vm2984_vm8, %vm2750_vm11 }
 0x19b   : > { %v2562_v57 = vsel %vm2548_vm6, %v2541_v26, %v2384_v58  ;;  %v2415_v29 = vsel %vm2391_vm15, %v5434_v8, %v2016_v43  ;;  %v2994_v43 = vld [vmem:[#allocation3 + $0xc] sm:$0xf] }
 0x19c   : > { %v2677_v39 = vmax.f32 %v2628_v31, 0.0  ;;  %5214 = vmatmul.msk.bf16.gmra.mxu0 %vm7782_vm7, %v2562_v57  ;;  %vm2782_vm7 = vsmask.f32 4368 }
 0x19d   : > { %vm6972_vm11 = vmor %vm2718_vm9, %vm2782_vm7  ;;  %vm7802_vm7 = vcmask 228352   ;;  %vm7803_vm9 = vcmask 293888  }
 0x19e   : > { %v2697_v44 = vpack.c.bf16 %v2677_v39, %v2677_v39 }
 0x1a0   : > { %v2785_v47 = vshrl.u32 %v2697_v44, 16  ;;  %v2788_v37 = vshll.u32 %v2697_v44, 16  ;;  %v2126_v53 = vpop.permute.xlu1 %2125 }
 0x1a1   : > { %v2629_v18 = vpop.f32.mrf.mxu0  ;;  %v2066_v17 = vpop.permute.xlu0 %2065 }
 0x1a2   : > { %v2787_v50 = vrot.slane %v2785_v47, 7  ;;  %v2630_v20 = vadd.f32 %v6944_v23, %v2629_v18  ;;  %v2176_v19 = vpop.permute.xlu2 %2175  ;;  %v2438_v63 = vsel %vm2422_vm0, %v2415_v29, %v2066_v17  ;;  %v2998_v17 = vld [vmem:[#allocation3 + $0x14] sm:$0x1] }
 0x1a3   : > { %v2459_v9 = vsel %vm2443_vm1, %v2438_v63, %v2126_v53 }
 0x1a4   : > { %v2790_v2 = vor.u32 %v2788_v37, %v2787_v50  ;;  %v2678_v54 = vmax.f32 %v2630_v20, 0.0  ;;  %v2791_v24 = vrot.slane %v2787_v50, 4  ;;  %v2480_v49 = vsel %vm2464_vm2, %v2459_v9, %v2176_v19  ;;  %v2729_v37 = vld [vmem:[#allocation3 + $0x24] sm:$0x1] }
 0x1a5   : > { %v2730_v53 = vsel %vm6917_vm10, 0, %v2729_v37 }
 0x1a6   : > { %v2987_v59 = vsel %vm6960_vm5, %v2790_v2, %v2986_v45  ;;  %v2698_v60 = vpack.c.bf16 %v2678_v54, %v2678_v54  ;;  %2731 = vst [vmem:[#allocation3 + $0x24] sm:$0x1] %v2730_v53 }
 0x1a7   : > { %2988 = vst [vmem:[#allocation3] sm:$0xf] %v2987_v59 }
 0x1a8   : > { %v2793_v35 = vshrl.u32 %v2698_v60, 16  ;;  %v2796_v40 = vshll.u32 %v2698_v60, 16  ;;  %v2286_v10 = vpop.permute.xlu1 %2285 }
 0x1a9   : > { %v2226_v12 = vpop.permute.xlu0 %2225 }
 0x1aa   : > { %v2795_v56 = vrot.slane %v2793_v35, 7  ;;  %v2501_v38 = vsel %vm2485_vm3, %v2480_v49, %v2226_v12 }
 0x1ab   : > { %v2336_v52 = vpop.permute.xlu2 %2335  ;;  %v2522_v36 = vsel %vm2506_vm4, %v2501_v38, %v2286_v10 }
 0x1ac   : > { %v2798_v22 = vor.u32 %v2796_v40, %v2795_v56  ;;  %v2800_v0 = vrot.slane %v2795_v56, 4  ;;  %v2543_v27 = vsel %vm7802_vm7, %v2522_v36, %v2336_v52  ;;  %v3001_v36 = vld [vmem:[#allocation3 + $0x18] sm:$0xf] }
 0x1ae   : > { %v2799_v13 = vsel %vm6972_vm11, %v2791_v24, %v2798_v22  ;;  %v2992_v46 = vsel %vm6917_vm10, %v2800_v0, %v2991_v7  ;;  %v2761_v0 = vld [vmem:[#allocation3 + $0x2c] sm:$0x1] }
 0x1af   : > { %2990 = vst.msk [vmem:[#allocation3 + $0x4] sm:$0xf] %vm2984_vm8, %v2799_v13  ;;  %v2762_v12 = vsel %vm6929_vm14, 0, %v2761_v0 }
 0x1b0   : > { %2993 = vst [vmem:[#allocation3 + $0x8] sm:$0x1] %v2992_v46  ;;  %v2632_v14 = vpop.f32.mrf.mxu0  ;;  %v2018_v25 = vpop.permute.xlu1 %2017 }
 0x1b1   : > { %v2633_v5 = vadd.f32 %v6944_v23, %v2632_v14  ;;  %v2386_v28 = vpop.permute.xlu0 %2385  ;;  %v2418_v26 = vsel %vm2391_vm15, %v5435_v51, %v2018_v25  ;;  %2763 = vst [vmem:[#allocation3 + $0x2c] sm:$0x1] %v2762_v12 }
 0x1b2   : > { %v2564_v62 = vsel %vm2548_vm6, %v2543_v27, %v2386_v28  ;;  %v5436_v28 = vld [vmem:[%s6163_s18 + $0x6c] sm:$0xff] }
 0x1b3   : > { %v2679_v42 = vmax.f32 %v2633_v5, 0.0  ;;  %v2068_v30 = vpop.permute.xlu2 %2067  ;;  %5215 = vmatmul.msk.bf16.gmra.mxu0 %vm7803_vm9, %v2564_v62 }
 0x1b4   : > { %v2440_v8 = vsel %vm2422_vm0, %v2418_v26, %v2068_v30  ;;  %v2732_v26 = vld [vmem:[#allocation3 + $0x30] sm:$0x1] }
 0x1b5   : > { %v2699_v41 = vpack.c.bf16 %v2679_v42, %v2679_v42 }
 0x1b7   : > { %v2802_v31 = vshrl.u32 %v2699_v41, 16  ;;  %v2805_v39 = vshll.u32 %v2699_v41, 16 }
 0x1b8   : > { %v2634_v58 = vpop.f32.mrf.mxu0  ;;  %v2178_v44 = vpop.permute.xlu1 %2177 }
 0x1b9   : > { %v2804_v48 = vrot.slane %v2802_v31, 7  ;;  %v2635_v16 = vadd.f32 %v6944_v23, %v2634_v58  ;;  %v2128_v3 = vpop.permute.xlu0 %2127 }
 0x1ba   : > { %v2461_v50 = vsel %vm2443_vm1, %v2440_v8, %v2128_v3 }
 0x1bb   : > { %v2807_v57 = vor.u32 %v2805_v39, %v2804_v48  ;;  %v2680_v33 = vmax.f32 %v2635_v16, 0.0  ;;  %v2482_v54 = vsel %vm2464_vm2, %v2461_v50, %v2178_v44  ;;  %v2808_v60 = vrot.slane %v2804_v48, 4  ;;  %v3005_v48 = vld [vmem:[#allocation3 + $0x20] sm:$0x1] }
 0x1bd   : > { %v2995_v47 = vsel %vm6960_vm5, %v2807_v57, %v2994_v43  ;;  %v2700_v18 = vpack.c.bf16 %v2680_v33, %v2680_v33  ;;  %v2228_v45 = vpop.permute.xlu2 %2227  ;;  %v2733_v33 = vsel %vm6917_vm10, 0, %v2732_v26 }
 0x1be   : > { %2996 = vst [vmem:[#allocation3 + $0xc] sm:$0xf] %v2995_v47  ;;  %v2503_v4 = vsel %vm2485_vm3, %v2482_v54, %v2228_v45  ;;  %v2764_v54 = vld [vmem:[#allocation3 + $0x38] sm:$0x1] }
 0x1bf   : > { %v2810_v20 = vshrl.u32 %v2700_v18, 16  ;;  %v2813_v29 = vshll.u32 %v2700_v18, 16  ;;  %2734 = vst [vmem:[#allocation3 + $0x30] sm:$0x1] %v2733_v33 }
 0x1c0   : > { %v2338_v19 = vpop.permute.xlu1 %2337 }
 0x1c1   : > { %v2812_v2 = vrot.slane %v2810_v20, 7  ;;  %v2288_v56 = vpop.permute.xlu0 %2287 }
 0x1c2   : > { %v2637_v59 = vpop.f32.mrf.mxu0  ;;  %v2524_v10 = vsel %vm2506_vm4, %v2503_v4, %v2288_v56 }
 0x1c3   : > { %v2815_v63 = vor.u32 %v2813_v29, %v2812_v2  ;;  %v2817_v15 = vrot.slane %v2812_v2, 4  ;;  %v2638_v35 = vadd.f32 %v6944_v23, %v2637_v59  ;;  %v2545_v24 = vsel %vm7802_vm7, %v2524_v10, %v2338_v19  ;;  %v3008_v10 = vld [vmem:[#allocation3 + $0x24] sm:$0xf] }
 0x1c5   : > { %v2816_v40 = vsel %vm6972_vm11, %v2808_v60, %v2815_v63  ;;  %v2999_v9 = vsel %vm6917_vm10, %v2817_v15, %v2998_v17  ;;  %v2681_v7 = vmax.f32 %v2638_v35, 0.0  ;;  %v2765_v17 = vsel %vm6929_vm14, 0, %v2764_v54 }
 0x1c6   : > { %2997 = vst.msk [vmem:[#allocation3 + $0x10] sm:$0xf] %vm2984_vm8, %v2816_v40  ;;  %v2388_v13 = vpop.permute.xlu2 %2387 }
 0x1c7   : > { %3000 = vst [vmem:[#allocation3 + $0x14] sm:$0x1] %v2999_v9  ;;  %v2701_v22 = vpack.c.bf16 %v2681_v7, %v2681_v7  ;;  %v2566_v46 = vsel %vm2548_vm6, %v2545_v24, %v2388_v13 }
 0x1c8   : > { %5216 = vmatmul.msk.bf16.gmra.mxu0 %vm7803_vm9, %v2566_v46  ;;  %v2070_v5 = vpop.permute.xlu1 %2069  ;;  %2766 = vst [vmem:[#allocation3 + $0x38] sm:$0x1] %v2765_v17 }
 0x1c9   : > { %v2819_v49 = vshrl.u32 %v2701_v22, 16  ;;  %v2822_v14 = vshll.u32 %v2701_v22, 16 }
 0x1ca   : > { %v2639_v38 = vpop.f32.mrf.mxu0  ;;  %v2020_v25 = vpop.permute.xlu0 %2019 }
 0x1cb   : > { %v2821_v52 = vrot.slane %v2819_v49, 7  ;;  %v2640_v34 = vadd.f32 %v6944_v23, %v2639_v38  ;;  %v2421_v51 = vsel %vm2391_vm15, %v5436_v28, %v2020_v25  ;;  %vm7804_vm15 = vmmov %vm7802_vm7  ;;  %v2735_v49 = vld [vmem:[#allocation3 + $0x3c] sm:$0x1] }
 0x1cc   : > { %v2442_v44 = vsel %vm2422_vm0, %v2421_v51, %v2070_v5  ;;  %vm7805_vm0 = vmmov %vm7803_vm9  ;;  %v2736_v13 = vsel %vm6917_vm10, 0, %v2735_v49 }
 0x1cd   : > { %v2824_v61 = vor.u32 %v2822_v14, %v2821_v52  ;;  %v2682_v42 = vmax.f32 %v2640_v34, 0.0  ;;  %v2825_v39 = vrot.slane %v2821_v52, 4  ;;  %2737 = vst [vmem:[#allocation3 + $0x3c] sm:$0x1] %v2736_v13  ;;  %v3012_v52 = vld [vmem:[#allocation3 + $0x2c] sm:$0x1] }
 0x1ce   : > { %v2130_v58 = vpop.permute.xlu2 %2129 }
 0x1cf   : > { %v3002_v27 = vsel %vm6960_vm5, %v2824_v61, %v3001_v36  ;;  %v2702_v41 = vpack.c.bf16 %v2682_v42, %v2682_v42  ;;  %v2463_v18 = vsel %vm2443_vm1, %v2442_v44, %v2130_v58 }
 0x1d0   : > { %3003 = vst [vmem:[#allocation3 + $0x18] sm:$0xf] %v3002_v27  ;;  %v2767_v27 = vld [vmem:[#allocation3 + $0x44] sm:$0x1] }
 0x1d1   : > { %v2827_v62 = vshrl.u32 %v2702_v41, 16  ;;  %v2830_v31 = vshll.u32 %v2702_v41, 16  ;;  %v2768_v28 = vsel %vm6929_vm14, 0, %v2767_v27 }
 0x1d2   : > { %2769 = vst [vmem:[#allocation3 + $0x44] sm:$0x1] %v2768_v28 }
 0x1d3   : > { %v2829_v30 = vrot.slane %v2827_v62, 7  ;;  %v2230_v57 = vpop.permute.xlu1 %2229 }
 0x1d4   : > { %v2180_v8 = vpop.permute.xlu0 %2179 }
 0x1d5   : > { %v2832_v16 = vor.u32 %v2830_v31, %v2829_v30  ;;  %v2834_v43 = vrot.slane %v2829_v30, 4  ;;  %v2484_v37 = vsel %vm2464_vm2, %v2463_v18, %v2180_v8  ;;  %v3019_v8 = vld [vmem:[#allocation3 + $0x38] sm:$0x1] }
 0x1d6   : > { %v2505_v45 = vsel %vm2485_vm3, %v2484_v37, %v2230_v57  ;;  %v2290_v2 = vpop.permute.xlu2 %2289 }
 0x1d7   : > { %v2833_v3 = vsel %vm6972_vm11, %v2825_v39, %v2832_v16  ;;  %v3006_v47 = vsel %vm6917_vm10, %v2834_v43, %v3005_v48  ;;  %v2526_v19 = vsel %vm2506_vm4, %v2505_v45, %v2290_v2  ;;  %v3015_v39 = vld [vmem:[#allocation3 + $0x30] sm:$0xf] }
 0x1d8   : > { %3004 = vst.msk [vmem:[#allocation3 + $0x1c] sm:$0xf] %vm2984_vm8, %v2833_v3 }
 0x1d9   : > { %3007 = vst [vmem:[#allocation3 + $0x20] sm:$0x1] %v3006_v47  ;;  %v2642_v50 = vpop.f32.mrf.mxu0  ;;  %v2738_v47 = vld [vmem:[#allocation3 + $0x48] sm:$0x1] }
 0x1da   : > { %v2643_v20 = vadd.f32 %v6944_v23, %v2642_v50  ;;  %v2739_v18 = vsel %vm6917_vm10, 0, %v2738_v47 }
 0x1db   : > { %2740 = vst [vmem:[#allocation3 + $0x48] sm:$0x1] %v2739_v18 }
 0x1dc   : > { %v2683_v53 = vmax.f32 %v2643_v20, 0.0 }
 0x1dd   : > { %v2390_v63 = vpop.permute.xlu1 %2389 }
 0x1de   : > { %v2703_v29 = vpack.c.bf16 %v2683_v53, %v2683_v53  ;;  %v2340_v60 = vpop.permute.xlu0 %2339 }
 0x1df   : > { %v2547_v15 = vsel %vm7804_vm15, %v2526_v19, %v2340_v60 }
 0x1e0   : > { %v2836_v59 = vshrl.u32 %v2703_v29, 16  ;;  %v2839_v56 = vshll.u32 %v2703_v29, 16  ;;  %v2568_v40 = vsel %vm2548_vm6, %v2547_v15, %v2390_v63 }
 0x1e1   : > { %v2644_v35 = vpop.f32.mrf.mxu0  ;;  %5217 = vmatmul.msk.bf16.gmra.mxu0 %vm7805_vm0, %v2568_v40 }
 0x1e2   : > { %v2838_v4 = vrot.slane %v2836_v59, 7  ;;  %v2645_v9 = vadd.f32 %v6944_v23, %v2644_v35  ;;  %v2770_v59 = vld [vmem:[#allocation3 + $0x50] sm:$0x1] }
 0x1e3   : > { %v2771_v63 = vsel %vm6929_vm14, 0, %v2770_v59 }
 0x1e4   : > { %v2841_v7 = vor.u32 %v2839_v56, %v2838_v4  ;;  %v2684_v24 = vmax.f32 %v2645_v9, 0.0  ;;  %v2842_v14 = vrot.slane %v2838_v4, 4  ;;  %2772 = vst [vmem:[#allocation3 + $0x50] sm:$0x1] %v2771_v63  ;;  %v3022_v56 = vld [vmem:[#allocation3 + $0x3c] sm:$0xf] }
 0x1e6   : > { %v3009_v22 = vsel %vm6960_vm5, %v2841_v7, %v3008_v10  ;;  %v2704_v0 = vpack.c.bf16 %v2684_v24, %v2684_v24 }
 0x1e7   : > { %3010 = vst [vmem:[#allocation3 + $0x24] sm:$0xf] %v3009_v22 }
 0x1e8   : > { %v2844_v12 = vshrl.u32 %v2704_v0, 16  ;;  %v2847_v38 = vshll.u32 %v2704_v0, 16 }
 0x1ea   : > { %v2846_v46 = vrot.slane %v2844_v12, 7  ;;  %v3026_v12 = vld [vmem:[#allocation3 + $0x44] sm:$0x1] }
 0x1ec   : > { %v2849_v34 = vor.u32 %v2847_v38, %v2846_v46  ;;  %v2851_v36 = vrot.slane %v2846_v46, 4 }
 0x1ee   : > { %v2850_v5 = vsel %vm6972_vm11, %v2842_v14, %v2849_v34  ;;  %v3013_v61 = vsel %vm6917_vm10, %v2851_v36, %v3012_v52  ;;  %v2741_v14 = vld [vmem:[#allocation3 + $0x54] sm:$0x1] }
 0x1ef   : > { %3011 = vst.msk [vmem:[#allocation3 + $0x28] sm:$0xf] %vm2984_vm8, %v2850_v5  ;;  %v2742_v34 = vsel %vm6917_vm10, 0, %v2741_v14 }
 0x1f0   : > { %3014 = vst [vmem:[#allocation3 + $0x2c] sm:$0x1] %v3013_v61  ;;  %v2647_v25 = vpop.f32.mrf.mxu0 }
 0x1f1   : > { %v2648_v42 = vadd.f32 %v6944_v23, %v2647_v25  ;;  %2743 = vst [vmem:[#allocation3 + $0x54] sm:$0x1] %v2742_v34 }
 0x1f3   : > { %v2685_v41 = vmax.f32 %v2648_v42, 0.0  ;;  %v2773_v42 = vld [vmem:[#allocation3 + $0x5c] sm:$0x1] }
 0x1f4   : > { %v2774_v27 = vsel %vm6929_vm14, 0, %v2773_v42 }
 0x1f5   : > { %v2705_v62 = vpack.c.bf16 %v2685_v41, %v2685_v41  ;;  %2775 = vst [vmem:[#allocation3 + $0x5c] sm:$0x1] %v2774_v27 }
 0x1f7   : > { %v2853_v51 = vshrl.u32 %v2705_v62, 16  ;;  %v2856_v58 = vshll.u32 %v2705_v62, 16 }
 0x1f8   : > { %v2649_v30 = vpop.f32.mrf.mxu0 }
 0x1f9   : > { %v2855_v31 = vrot.slane %v2853_v51, 7  ;;  %v2650_v48 = vadd.f32 %v6944_v23, %v2649_v30 }
 0x1fb   : > { %v2858_v16 = vor.u32 %v2856_v58, %v2855_v31  ;;  %v2686_v43 = vmax.f32 %v2650_v48, 0.0  ;;  %v2859_v50 = vrot.slane %v2855_v31, 4  ;;  %v3029_v31 = vld [vmem:[#allocation3 + $0x48] sm:$0xf] }
 0x1fd   : > { %v3016_v26 = vsel %vm6960_vm5, %v2858_v16, %v3015_v39  ;;  %v2706_v44 = vpack.c.bf16 %v2686_v43, %v2686_v43 }
 0x1fe   : > { %3017 = vst [vmem:[#allocation3 + $0x30] sm:$0xf] %v3016_v26  ;;  %v2744_v26 = vld [vmem:[#allocation3 + $0x60] sm:$0x1] }
 0x1ff   : > { %v2861_v57 = vshrl.u32 %v2706_v44, 16  ;;  %v2864_v3 = vshll.u32 %v2706_v44, 16 }
 0x201   : > { %v2863_v33 = vrot.slane %v2861_v57, 7 }
 0x202   : > { %v2652_v53 = vpop.f32.mrf.mxu0 }
 0x203   : > { %v2866_v37 = vor.u32 %v2864_v3, %v2863_v33  ;;  %v2868_v20 = vrot.slane %v2863_v33, 4  ;;  %v2653_v45 = vadd.f32 %v6944_v23, %v2652_v53  ;;  %v2745_v33 = vsel %vm6917_vm10, 0, %v2744_v26  ;;  %v3033_v3 = vld [vmem:[#allocation3 + $0x50] sm:$0x1] }
 0x204   : > { %2746 = vst [vmem:[#allocation3 + $0x60] sm:$0x1] %v2745_v33 }
 0x205   : > { %v2867_v2 = vsel %vm6972_vm11, %v2859_v50, %v2866_v37  ;;  %v3020_v29 = vsel %vm6917_vm10, %v2868_v20, %v3019_v8  ;;  %v2687_v54 = vmax.f32 %v2653_v45, 0.0  ;;  %v2776_v45 = vld [vmem:[#allocation3 + $0x68] sm:$0x1] }
 0x206   : > { %3018 = vst.msk [vmem:[#allocation3 + $0x34] sm:$0xf] %vm2984_vm8, %v2867_v2  ;;  %v2777_v2 = vsel %vm6929_vm14, 0, %v2776_v45 }
 0x207   : > { %3021 = vst [vmem:[#allocation3 + $0x38] sm:$0x1] %v3020_v29  ;;  %v2707_v17 = vpack.c.bf16 %v2687_v54, %v2687_v54 }
 0x208   : > { %2778 = vst [vmem:[#allocation3 + $0x68] sm:$0x1] %v2777_v2 }
 0x209   : > { %v2870_v19 = vshrl.u32 %v2707_v17, 16  ;;  %v2873_v35 = vshll.u32 %v2707_v17, 16 }
 0x20a   : > { %v2654_v60 = vpop.f32.mrf.mxu0 }
 0x20b   : > { %v2872_v15 = vrot.slane %v2870_v19, 7  ;;  %v2655_v4 = vadd.f32 %v6944_v23, %v2654_v60 }
 0x20d   : > { %v2875_v40 = vor.u32 %v2873_v35, %v2872_v15  ;;  %v2688_v9 = vmax.f32 %v2655_v4, 0.0  ;;  %v2876_v49 = vrot.slane %v2872_v15, 4  ;;  %v3036_v15 = vld [vmem:[#allocation3 + $0x54] sm:$0xf] }
 0x20f   : > { %v3023_v10 = vsel %vm6960_vm5, %v2875_v40, %v3022_v56  ;;  %v2708_v7 = vpack.c.bf16 %v2688_v9, %v2688_v9 }
 0x210   : > { %3024 = vst [vmem:[#allocation3 + $0x3c] sm:$0xf] %v3023_v10  ;;  %v2747_v10 = vld [vmem:[#allocation3 + $0x6c] sm:$0x1] }
 0x211   : > { %v2878_v24 = vshrl.u32 %v2708_v7, 16  ;;  %v2881_v0 = vshll.u32 %v2708_v7, 16 }
 0x213   : > { %v2880_v22 = vrot.slane %v2878_v24, 7 }
 0x215   : > { %v2883_v13 = vor.u32 %v2881_v0, %v2880_v22  ;;  %v2885_v46 = vrot.slane %v2880_v22, 4  ;;  %v2748_v22 = vsel %vm6917_vm10, 0, %v2747_v10  ;;  %v3040_v0 = vld [vmem:[#allocation3 + $0x5c] sm:$0x1] }
 0x216   : > { %2749 = vst [vmem:[#allocation3 + $0x6c] sm:$0x1] %v2748_v22 }
 0x217   : > { %v2884_v38 = vsel %vm6972_vm11, %v2876_v49, %v2883_v13  ;;  %v3027_v52 = vsel %vm6917_vm10, %v2885_v46, %v3026_v12 }
 0x218   : > { %3025 = vst.msk [vmem:[#allocation3 + $0x40] sm:$0xf] %vm2984_vm8, %v2884_v38 }
 0x219   : > { %3028 = vst [vmem:[#allocation3 + $0x44] sm:$0x1] %v3027_v52  ;;  %v2657_v36 = vpop.f32.mrf.mxu0 }
 0x21a   : > { %v2658_v5 = vadd.f32 %v6944_v23, %v2657_v36  ;;  %v2779_v36 = vld [vmem:[#allocation3 + $0x74] sm:$0x1] }
 0x21c   : > { %v2689_v61 = vmax.f32 %v2658_v5, 0.0  ;;  %v2780_v5 = vsel %vm6929_vm14, 0, %v2779_v36 }
 0x21d   : > { %2781 = vst [vmem:[#allocation3 + $0x74] sm:$0x1] %v2780_v5  ;;  %v3050_v2 = vld [vmem:[#allocation3 + $0x6c] sm:$0xf] }
 0x21e   : > { %v2709_v25 = vpack.c.bf16 %v2689_v61, %v2689_v61 }
 0x220   : > { %v2887_v28 = vshrl.u32 %v2709_v25, 16  ;;  %v2890_v51 = vshll.u32 %v2709_v25, 16 }
 0x221   : > { %v2659_v41 = vpop.f32.mrf.mxu0 }
 0x222   : > { %v2889_v62 = vrot.slane %v2887_v28, 7  ;;  %v2660_v30 = vadd.f32 %v6944_v23, %v2659_v41 }
 0x224   : > { %v2892_v58 = vor.u32 %v2890_v51, %v2889_v62  ;;  %v2690_v48 = vmax.f32 %v2660_v30, 0.0  ;;  %v2893_v47 = vrot.slane %v2889_v62, 4  ;;  %v3043_v62 = vld [vmem:[#allocation3 + $0x60] sm:$0xf] }
 0x226   : > { %v3030_v39 = vsel %vm6960_vm5, %v2892_v58, %v3029_v31  ;;  %v2710_v16 = vpack.c.bf16 %v2690_v48, %v2690_v48 }
 0x227   : > { %3031 = vst [vmem:[#allocation3 + $0x48] sm:$0xf] %v3030_v39 }
 0x228   : > { %v2895_v43 = vshrl.u32 %v2710_v16, 16  ;;  %v2898_v57 = vshll.u32 %v2710_v16, 16  ;;  %v3047_v16 = vld [vmem:[#allocation3 + $0x68] sm:$0x1] }
 0x22a   : > { %v2897_v44 = vrot.slane %v2895_v43, 7 }
 0x22c   : > { %v2900_v8 = vor.u32 %v2898_v57, %v2897_v44  ;;  %v2902_v18 = vrot.slane %v2897_v44, 4 }
 0x22e   : > { %v2901_v50 = vsel %vm6972_vm11, %v2893_v47, %v2900_v8  ;;  %v3034_v37 = vsel %vm6917_vm10, %v2902_v18, %v3033_v3 }
 0x22f   : > { %3032 = vst.msk [vmem:[#allocation3 + $0x4c] sm:$0xf] %vm2984_vm8, %v2901_v50 }
 0x230   : > { %3035 = vst [vmem:[#allocation3 + $0x50] sm:$0x1] %v3034_v37  ;;  %v2662_v20 = vpop.f32.mrf.mxu0 }
 0x231   : > { %v2663_v53 = vadd.f32 %v6944_v23, %v2662_v20 }
 0x233   : > { %v2691_v29 = vmax.f32 %v2663_v53, 0.0 }
 0x235   : > { %v2711_v54 = vpack.c.bf16 %v2691_v29, %v2691_v29 }
 0x237   : > { %v2904_v17 = vshrl.u32 %v2711_v54, 16  ;;  %v2907_v60 = vshll.u32 %v2711_v54, 16 }
 0x238   : > { %v2664_v19 = vpop.f32.mrf.mxu0 }
 0x239   : > { %v2906_v59 = vrot.slane %v2904_v17, 7  ;;  %v2665_v63 = vadd.f32 %v6944_v23, %v2664_v19 }
 0x23b   : > { %v2909_v35 = vor.u32 %v2907_v60, %v2906_v59  ;;  %v2692_v4 = vmax.f32 %v2665_v63, 0.0  ;;  %v2910_v12 = vrot.slane %v2906_v59, 4 }
 0x23d   : > { %v3037_v56 = vsel %vm6960_vm5, %v2909_v35, %v3036_v15  ;;  %v2712_v40 = vpack.c.bf16 %v2692_v4, %v2692_v4  ;;  %v3054_v15 = vld [vmem:[#allocation3 + $0x74] sm:$0x1] }
 0x23e   : > { %3038 = vst [vmem:[#allocation3 + $0x54] sm:$0xf] %v3037_v56 }
 0x23f   : > { %v2912_v9 = vshrl.u32 %v2712_v40, 16  ;;  %v2915_v24 = vshll.u32 %v2712_v40, 16 }
 0x241   : > { %v2914_v7 = vrot.slane %v2912_v9, 7 }
 0x243   : > { %v2917_v49 = vor.u32 %v2915_v24, %v2914_v7  ;;  %v2919_v13 = vrot.slane %v2914_v7, 4 }
 0x245   : > { %v2918_v46 = vsel %vm6972_vm11, %v2910_v12, %v2917_v49  ;;  %v3041_v38 = vsel %vm6917_vm10, %v2919_v13, %v3040_v0  ;;  %v2667_v52 = vpop.f32.mrf.mxu0 }
 0x246   : > { %3039 = vst.msk [vmem:[#allocation3 + $0x58] sm:$0xf] %vm2984_vm8, %v2918_v46  ;;  %v2668_v14 = vadd.f32 %v6944_v23, %v2667_v52 }
 0x247   : > { %3042 = vst [vmem:[#allocation3 + $0x5c] sm:$0x1] %v3041_v38 }
 0x248   : > { %v2693_v34 = vmax.f32 %v2668_v14, 0.0 }
 0x24a   : > { %v2713_v61 = vpack.c.bf16 %v2693_v34, %v2693_v34 }
 0x24c   : > { %v2921_v25 = vshrl.u32 %v2713_v61, 16  ;;  %v2924_v28 = vshll.u32 %v2713_v61, 16 }
 0x24d   : > { %v2669_v42 = vpop.f32.mrf.mxu0 }
 0x24e   : > { %v2923_v27 = vrot.slane %v2921_v25, 7  ;;  %v2670_v41 = vadd.f32 %v6944_v23, %v2669_v42 }
 0x250   : > { %v2926_v51 = vor.u32 %v2924_v28, %v2923_v27  ;;  %v2694_v30 = vmax.f32 %v2670_v41, 0.0  ;;  %v2927_v43 = vrot.slane %v2923_v27, 4 }
 0x252   : > { %v3044_v31 = vsel %vm6960_vm5, %v2926_v51, %v3043_v62  ;;  %v2714_v58 = vpack.c.bf16 %v2694_v30, %v2694_v30 }
 0x253   : > { %3045 = vst [vmem:[#allocation3 + $0x60] sm:$0xf] %v3044_v31 }
 0x254   : > { %v2929_v48 = vshrl.u32 %v2714_v58, 16  ;;  %v2932_v6 = vshll.u32 %v2714_v58, 16 }
 0x256   : > { %v2931_v39 = vrot.slane %v2929_v48, 7 }
 0x258   : > { %v2934_v26 = vor.u32 %v2932_v6, %v2931_v39  ;;  %v2936_v44 = vrot.slane %v2931_v39, 4 }
 0x25a   : > { %v2935_v57 = vsel %vm6972_vm11, %v2927_v43, %v2934_v26  ;;  %v3048_v33 = vsel %vm6917_vm10, %v2936_v44, %v3047_v16 }
 0x25b   : > { %3046 = vst.msk [vmem:[#allocation3 + $0x64] sm:$0xf] %vm2984_vm8, %v2935_v57 }
 0x25c   : > { %3049 = vst [vmem:[#allocation3 + $0x68] sm:$0x1] %v3048_v33 }
 0x25e   : > { %v2672_v3 = vpop.f32.mrf.mxu0 }
 0x25f   : > { %v2673_v47 = vadd.f32 %v6944_v23, %v2672_v3 }
 0x261   : > { %v2695_v8 = vmax.f32 %v2673_v47, 0.0 }
 0x263   : > { %v2715_v18 = vpack.c.bf16 %v2695_v8, %v2695_v8 }
 0x265   : > { %v2938_v50 = vshrl.u32 %v2715_v18, 16  ;;  %v2941_v53 = vshll.u32 %v2715_v18, 16 }
 0x266   : > { %v2674_v37 = vpop.f32.mrf.mxu0 }
 0x267   : > { %v2940_v20 = vrot.slane %v2938_v50, 7  ;;  %v2675_v45 = vadd.f32 %v6944_v23, %v2674_v37 }
 0x269   : > { %v2943_v29 = vor.u32 %v2941_v53, %v2940_v20  ;;  %v2696_v54 = vmax.f32 %v2675_v45, 0.0  ;;  %v2944_v35 = vrot.slane %v2940_v20, 4 }
 0x26b   : > { %v3051_v17 = vsel %vm6960_vm5, %v2943_v29, %v3050_v2  ;;  %v2716_v19 = vpack.c.bf16 %v2696_v54, %v2696_v54 }
 0x26c   : > { %3052 = vst [vmem:[#allocation3 + $0x6c] sm:$0xf] %v3051_v17 }
 0x26d   : > { %v2946_v59 = vshrl.u32 %v2716_v19, 16  ;;  %v2949_v63 = vshll.u32 %v2716_v19, 16 }
 0x26f   : > { %v2948_v60 = vrot.slane %v2946_v59, 7 }
 0x271   : > { %v2951_v4 = vor.u32 %v2949_v63, %v2948_v60  ;;  %v2953_v56 = vrot.slane %v2948_v60, 4  ;;  %3059 = sbr.rel (%p4962_p10) target bundleno = 634 (0x27a), region = 48 }
 0x273   : > { %v2952_v40 = vsel %vm6972_vm11, %v2944_v35, %v2951_v4  ;;  %v3055_v23 = vsel %vm6917_vm10, %v2953_v56, %v3054_v15 }
 0x274   : > { %3053 = vst.msk [vmem:[#allocation3 + $0x70] sm:$0xf] %vm2984_vm8, %v2952_v40 }
 0x275   : > { %3056 = vst [vmem:[#allocation3 + $0x74] sm:$0x1] %v3055_v23 }
 0x276   : > { %v5648_v55 = vmov 0   ;;  %vm7806_vm1 = vcmask 253952  }
 0x277   : > { %3060 = vst.msk [vmem:[#allocation3] sm:$0xf] %vm2984_vm8, %v5648_v55 }
 0x278   : > { %3061 = vst.msk [vmem:[#allocation3 + $0x4] sm:$0xf] %vm2984_vm8, %v5648_v55 }
 0x279   : > { %3063 = vst.msk [vmem:[#allocation3 + $0x8] sm:$0x1] %vm7806_vm1, %v5648_v55 }
 0x27a PF: > { %p5219_p11 = scmp.ne.s32.totalorder %s5621_s20, 1 }
 0x27c   : > { %3067 = sbr.rel (%p5219_p11) target bundleno = 645 (0x285), region = 52 }
 0x281   : > { %v5649_v21 = vmov 0   ;;  %vm7807_vm2 = vcmask 253952  }
 0x282   : > { %3069 = vst.msk [vmem:[#allocation3 + $0x6c] sm:$0xf] %vm2984_vm8, %v5649_v21 }
 0x283   : > { %3070 = vst.msk [vmem:[#allocation3 + $0x70] sm:$0xf] %vm2984_vm8, %v5649_v21 }
 0x284   : > { %3072 = vst.msk [vmem:[#allocation3 + $0x74] sm:$0x1] %vm7807_vm2, %v5649_v21 }
 0x285 PF: > { %v7127_v11 = vld [vmem:[#allocation3 + $0x10] sm:$0xf]  ;;  %v7129_v9 = vld [vmem:[#allocation3 + $0x14] sm:$0x1]  ;;  %v3594_v10 = vld [vmem:[#allocation3 + $0xc] sm:$0xe] }
 0x286   : > { %v5228_v7 = vrot.slane %v3594_v10, 9  ;;  %v3628_v24 = vrot.slane %v7127_v11, 5  ;;  %v3631_v22 = vrot.slane %v7129_v9, 5  ;;  %v3683_v0 = vld [vmem:[#allocation3 + $0x18] sm:$0xf]  ;;  %s5650_s18 = smov 96  }
 0x287   : > { %v7133_v12 = vld [vmem:[#allocation3 + $0x1c] sm:$0xf]  ;;  %v3699_v49 = vld [vmem:[#allocation3 + $0x20] sm:$0x1]  ;;  %v3708_v13 = vshrl.u32 %v3683_v0, 16  ;;  %v3711_v52 = vshll.u32 %v3683_v0, 16 }
 0x288   : > { %v3629_v46 = vsel %vm6169_vm12, %v5228_v7, %v3628_v24  ;;  %v3630_v38 = vrot.slane %v3628_v24, 4  ;;  %v3717_v14 = vshll.u32 %v7133_v12, 16  ;;  %v3721_v5 = vshrl.u32 %v7133_v12, 16  ;;  %v3073_v25 = vld [vmem:[#allocation3] sm:$0xf]  ;;  %v5475_v55 = vld [vmem:[#allocation3 + $0x18] sm:$0xff] }
 0x289   : > { %v4171_v34 = vunpack.c.l.b16 %v3629_v46  ;;  %v3710_v36 = vrot.slane %v3708_v13, 4  ;;  %v3727_v61 = vshll.u32 %v3699_v49, 16  ;;  %v3713_v27 = vrot.slane %v3711_v52, 5  ;;  %v7141_v41 = vld [vmem:[#allocation3 + $0x4] sm:$0xf]  ;;  %s5651_s30 = smov 64  }
 0x28a   : > { %v3632_v42 = vsel %vm6169_vm12, %v3630_v38, %v3631_v22  ;;  %v3719_v28 = vrot.slane %v3717_v14, 5  ;;  %v7143_v62 = vld [vmem:[#allocation3 + $0x8] sm:$0x1]  ;;  %v3723_v30 = vrot.slane %v3721_v5, 4  ;;  %v3098_v58 = vshrl.u32 %v3073_v25, 16 }
 0x28b   : > { %v4172_v51 = vunpack.c.l.b16 %v3632_v42  ;;  %v3729_v31 = vrot.slane %v3727_v61, 5  ;;  %v3714_v48 = vor.u32 %v3713_v27, %v3710_v36  ;;  %v3101_v39 = vshll.u32 %v3073_v25, 16  ;;  %v3381_v43 = vld [vmem:[#allocation3 + $0x1c] sm:$0xf]  ;;  %v3395_v3 = vld [vmem:[#allocation3 + $0x20] sm:$0x1] }
 0x28c   : > { %v3107_v6 = vshll.u32 %v7141_v41, 16  ;;  %v3111_v16 = vshrl.u32 %v7141_v41, 16  ;;  %v3724_v44 = vor.u32 %v3723_v30, %v3719_v28  ;;  %v3100_v57 = vrot.slane %v3098_v58, 4  ;;  %v3595_v47 = vld [vmem:[#allocation3 + $0x18] sm:$0xe] }
 0x28d   : > { %v4187_v26 = vpack.c.b16 %v4172_v51, %v4171_v34  ;;  %v3117_v33 = vshll.u32 %v7143_v62, 16  ;;  %v3715_v8 = vrot.slane %v3714_v48, 4  ;;  %v3103_v18 = vrot.slane %v3101_v39, 5  ;;  %v3075_v59 = vld [vmem:[#allocation3 + $0xc] sm:$0xf] }
 0x28e   : > { %v3109_v50 = vrot.slane %v3107_v6, 5  ;;  %v3113_v37 = vrot.slane %v3111_v16, 4  ;;  %v3725_v20 = vrot.slane %v3724_v44, 4  ;;  %v5229_v45 = vrot.slane %v3595_v47, 9  ;;  %v3076_v60 = vld [vmem:[#allocation3 + $0x10] sm:$0xf] }
 0x28f   : > { %4195 = vrot.lane.b32.xlu0 %v4187_v26, %s5643_s6  ;;  %v3119_v53 = vrot.slane %v3117_v33, 5  ;;  %v3635_v2 = vrot.slane %v3381_v43, 5  ;;  %v3720_v29 = vsel %vm6198_vm13, %v3715_v8, %v3719_v28  ;;  %v3104_v54 = vor.u32 %v3103_v18, %v3100_v57  ;;  %v7157_v10 = vld [vmem:[#allocation3 + $0x14] sm:$0x1]  ;;  %v3290_v38 = vld [vmem:[#allocation3 + $0xc] sm:$0xe] }
 0x290   : > { %v3114_v17 = vor.u32 %v3113_v37, %v3109_v50  ;;  %v3638_v19 = vrot.slane %v3395_v3, 5  ;;  %v3730_v63 = vsel %vm6198_vm13, %v3725_v20, %v3729_v31  ;;  %v4259_v15 = vunpack.c.l.b16 %v3720_v29  ;;  %v3289_v5 = vld [vmem:[#allocation3] sm:$0xe]  ;;  %v3383_v16 = vld [vmem:[#allocation3 + $0x28] sm:$0xf] }
 0x291   : > { %v3636_v35 = vsel %vm6169_vm12, %v5229_v45, %v3635_v2  ;;  %v3637_v4 = vrot.slane %v3635_v2, 4  ;;  %v4260_v56 = vunpack.c.l.b16 %v3730_v63  ;;  %v3105_v40 = vrot.slane %v3104_v54, 4  ;;  %v3596_v33 = vld [vmem:[#allocation3 + $0x24] sm:$0xe]  ;;  %v3077_v3 = vld [vmem:[#allocation3 + $0x18] sm:$0xf] }
 0x292   : > { %v3115_v23 = vrot.slane %v3114_v17, 4  ;;  %v3122_v7 = vshrl.u32 %v3075_v59, 16  ;;  %v3125_v24 = vshll.u32 %v3075_v59, 16  ;;  %v3131_v22 = vshll.u32 %v3076_v60, 16  ;;  %v3396_v37 = vld [vmem:[#allocation3 + $0x2c] sm:$0x1] }
 0x293   : > { %v3639_v21 = vsel %vm6169_vm12, %v3637_v4, %v3638_v19  ;;  %v4275_v0 = vpack.c.b16 %v4260_v56, %v4259_v15  ;;  %v3110_v49 = vsel %vm6198_vm13, %v3105_v40, %v3109_v50  ;;  %v4173_v46 = vunpack.c.l.b16 %v3636_v35  ;;  %v7177_v54 = vld [vmem:[#allocation3 + $0x1c] sm:$0xf]  ;;  %v7183_v56 = vld [vmem:[#allocation3 + $0x20] sm:$0x1] }
 0x294   : > { %v3120_v13 = vsel %vm6198_vm13, %v3115_v23, %v3119_v53  ;;  %v4019_v52 = vunpack.c.l.b16 %v3110_v49  ;;  %v4174_v14 = vunpack.c.l.b16 %v3639_v21  ;;  %v3124_v34 = vrot.slane %v3122_v7, 4 }
 0x295   : > { %v3127_v36 = vrot.slane %v3125_v24, 5  ;;  %4283 = vrot.lane.b32.xlu1 %v4275_v0, %s5650_s18  ;;  %v4020_v61 = vunpack.c.l.b16 %v3120_v13  ;;  %v3133_v25 = vrot.slane %v3131_v22, 5  ;;  %v3135_v42 = vshrl.u32 %v3076_v60, 16  ;;  %v3685_v22 = vld [vmem:[#allocation3 + $0x24] sm:$0xf] }
 0x296   : > { %v3141_v27 = vshll.u32 %v7157_v10, 16  ;;  %v5221_v51 = vrot.slane %v3290_v38, 9  ;;  %v3330_v31 = vrot.slane %v3076_v60, 5  ;;  %v5220_v58 = vrot.slane %v3289_v5, 9  ;;  %v5476_v0 = vld [vmem:[#allocation3 + $0x24] sm:$0xff] }
 0x297   : > { %4243 = vrot.lane.b32.xlu0 %v5475_v55, %s5651_s30  ;;  %v3128_v28 = vor.u32 %v3127_v36, %v3124_v34  ;;  %v3137_v30 = vrot.slane %v3135_v42, 4  ;;  %v4188_v48 = vpack.c.b16 %v4174_v14, %v4173_v46  ;;  %v3323_v6 = vrot.slane %v7141_v41, 5 }
 0x298   : > { %v4035_v43 = vpack.c.b16 %v4020_v61, %v4019_v52  ;;  %v3143_v44 = vrot.slane %v3141_v27, 5  ;;  %v3326_v57 = vrot.slane %v7143_v62, 5  ;;  %v3331_v47 = vsel %vm6169_vm12, %v5221_v51, %v3330_v31  ;;  %v7195_v52 = vld [vmem:[#allocation3 + $0x28] sm:$0xf]  ;;  %v5467_v51 = vld [vmem:[#allocation3 + $0xc] sm:$0xff] }
 0x299   : > { %v3129_v39 = vrot.slane %v3128_v28, 4  ;;  %v3138_v26 = vor.u32 %v3137_v30, %v3133_v25  ;;  %v3333_v8 = vrot.slane %v7157_v10, 5  ;;  %v3324_v18 = vsel %vm6169_vm12, %v5220_v58, %v3323_v6  ;;  %v7198_v58 = vld [vmem:[#allocation3 + $0x2c] sm:$0x1] }
 0x29a   : > { %v3325_v50 = vrot.slane %v3323_v6, 4  ;;  %v3332_v53 = vrot.slane %v3330_v31, 4  ;;  %v4059_v45 = vunpack.c.l.b16 %v3324_v18  ;;  %v5230_v2 = vrot.slane %v3596_v33, 9 }
 0x29b   : > { %v3134_v41 = vsel %vm6198_vm13, %v3129_v39, %v3133_v25  ;;  %v3139_v20 = vrot.slane %v3138_v26, 4  ;;  %v3642_v29 = vrot.slane %v3383_v16, 5  ;;  %v3146_v17 = vshrl.u32 %v3077_v3, 16  ;;  %v3291_v25 = vld [vmem:[#allocation3 + $0x18] sm:$0xe] }
 0x29c   : > { %v3327_v62 = vsel %vm6169_vm12, %v3325_v50, %v3326_v57  ;;  %v3645_v60 = vrot.slane %v3396_v37, 5  ;;  %v3149_v63 = vshll.u32 %v3077_v3, 16  ;;  %v4021_v15 = vunpack.c.l.b16 %v3134_v41  ;;  %v3385_v26 = vld [vmem:[#allocation3 + $0x34] sm:$0xf]  ;;  %v3397_v3 = vld [vmem:[#allocation3 + $0x38] sm:$0x1] }
 0x29d   : > { %4043 = vrot.lane.b32.xlu1 %v4035_v43, %s5643_s6  ;;  %v3144_v19 = vsel %vm6198_vm13, %v3139_v20, %v3143_v44  ;;  %v4060_v59 = vunpack.c.l.b16 %v3327_v62  ;;  %v3644_v4 = vrot.slane %v3642_v29, 4  ;;  %v3148_v40 = vrot.slane %v3146_v17, 4  ;;  %v3079_v41 = vld [vmem:[#allocation3 + $0x24] sm:$0xf] }
 0x29e   : > { %v4022_v35 = vunpack.c.l.b16 %v3144_v19  ;;  %v3334_v23 = vsel %vm6169_vm12, %v3332_v53, %v3333_v8  ;;  %v3151_v21 = vrot.slane %v3149_v63, 5  ;;  %v3155_v10 = vshll.u32 %v7177_v54, 16  ;;  %v7211_v63 = vld [vmem:[#allocation3 + $0x28] sm:$0xf] }
 0x29f   : > { %4197 = vrot.lane.b32.xlu0 %v4188_v48, %s5643_s6  ;;  %v4075_v55 = vpack.c.b16 %v4060_v59, %v4059_v45  ;;  %v3643_v7 = vsel %vm6169_vm12, %v5230_v2, %v3642_v29  ;;  %v3159_v24 = vshrl.u32 %v7177_v54, 16  ;;  %v3646_v49 = vsel %vm6169_vm12, %v3644_v4, %v3645_v60 }
 0x2a0   : > { %v3152_v13 = vor.u32 %v3151_v21, %v3148_v40  ;;  %v3157_v46 = vrot.slane %v3155_v10, 5  ;;  %v3165_v38 = vshll.u32 %v7183_v56, 16  ;;  %v4036_v14 = vpack.c.b16 %v4022_v35, %v4021_v15  ;;  %v7219_v10 = vld [vmem:[#allocation3 + $0x2c] sm:$0x1] }
 0x2a1   : > { %4083 = vrot.lane.b32.xlu2 %v4075_v55, %s5651_s30  ;;  %v4061_v34 = vunpack.c.l.b16 %v3331_v47  ;;  %v4062_v36 = vunpack.c.l.b16 %v3334_v23  ;;  %v3161_v5 = vrot.slane %v3159_v24, 4  ;;  %v4175_v61 = vunpack.c.l.b16 %v3643_v7  ;;  %v3597_v47 = vld [vmem:[#allocation3 + $0x30] sm:$0xe] }
 0x2a2   : > { %v3732_v42 = vshrl.u32 %v3685_v22, 16  ;;  %v3735_v27 = vshll.u32 %v3685_v22, 16  ;;  %v4176_v28 = vunpack.c.l.b16 %v3646_v49  ;;  %v3337_v31 = vrot.slane %v7177_v54, 5 }
 0x2a3   : > { %v3162_v30 = vor.u32 %v3161_v5, %v3157_v46  ;;  %v3741_v48 = vshll.u32 %v7195_v52, 16  ;;  %v3153_v39 = vrot.slane %v3152_v13, 4  ;;  %v3167_v6 = vrot.slane %v3165_v38, 5 }
 0x2a4   : > { %v3734_v16 = vrot.slane %v3732_v42, 4  ;;  %v3737_v43 = vrot.slane %v3735_v27, 5  ;;  %v4076_v44 = vpack.c.b16 %v4062_v36, %v4061_v34  ;;  %v5222_v33 = vrot.slane %v3291_v25, 9  ;;  %v3687_v25 = vld [vmem:[#allocation3 + $0x30] sm:$0xf] }
 0x2a5   : > { %4245 = vrot.lane.b32.xlu1 %v5476_v0, %s5651_s30  ;;  %v3163_v57 = vrot.slane %v3162_v30, 4  ;;  %v3743_v18 = vrot.slane %v3741_v48, 5  ;;  %v3745_v50 = vshrl.u32 %v7195_v52, 16  ;;  %v3751_v37 = vshll.u32 %v7198_v58, 16  ;;  %v5477_v48 = vld [vmem:[#allocation3 + $0x30] sm:$0xff] }
 0x2a6   : > { %v3738_v8 = vor.u32 %v3737_v43, %v3734_v16  ;;  %v4189_v20 = vpack.c.b16 %v4176_v28, %v4175_v61  ;;  %v3339_v53 = vrot.slane %v3337_v31, 4  ;;  %v3340_v45 = vrot.slane %v7183_v56, 5 }
 0x2a7   : > { %4045 = vrot.lane.b32.xlu0 %v4036_v14, %s5643_s6  ;;  %v3649_v62 = vrot.slane %v3385_v26, 5  ;;  %v3158_v2 = vsel %vm6198_vm13, %v3153_v39, %v3157_v46  ;;  %v3168_v29 = vsel %vm6198_vm13, %v3163_v57, %v3167_v6  ;;  %v3747_v17 = vrot.slane %v3745_v50, 4 }
 0x2a8   : > { %v3739_v54 = vrot.slane %v3738_v8, 4  ;;  %v5231_v19 = vrot.slane %v3597_v47, 9  ;;  %v3652_v60 = vrot.slane %v3397_v3, 5  ;;  %v3170_v15 = vshrl.u32 %v3079_v41, 16  ;;  %v7238_v8 = vld [vmem:[#allocation3 + $0x38] sm:$0x1] }
 0x2a9   : > { %4131 = vrot.lane.b32.xlu2 %v5467_v51, %s5650_s18  ;;  %v3651_v59 = vrot.slane %v3649_v62, 4  ;;  %v3338_v35 = vsel %vm6169_vm12, %v5222_v33, %v3337_v31  ;;  %v3748_v56 = vor.u32 %v3747_v17, %v3743_v18  ;;  %v3753_v40 = vrot.slane %v3751_v37, 5  ;;  %v3292_v51 = vld [vmem:[#allocation3 + $0x24] sm:$0xe]  ;;  %v7235_v31 = vld [vmem:[#allocation3 + $0x34] sm:$0xf] }
 0x2aa   : > { %v3744_v4 = vsel %vm6198_vm13, %v3739_v54, %v3743_v18  ;;  %v4023_v23 = vunpack.c.l.b16 %v3158_v2  ;;  %v4024_v55 = vunpack.c.l.b16 %v3168_v29  ;;  %v3341_v21 = vsel %vm6169_vm12, %v3339_v53, %v3340_v45  ;;  %v3387_v45 = vld [vmem:[#allocation3 + $0x40] sm:$0xf]  ;;  %v3081_v17 = vld [vmem:[#allocation3 + $0x30] sm:$0xf] }
 0x2ab   : > { %v3173_v7 = vshll.u32 %v3079_v41, 16  ;;  %v3749_v24 = vrot.slane %v3748_v56, 4  ;;  %v3172_v22 = vrot.slane %v3170_v15, 4  ;;  %v3179_v0 = vshll.u32 %v7211_v63, 16  ;;  %v3598_v56 = vld [vmem:[#allocation3 + $0x3c] sm:$0xe] }
 0x2ac   : > { %v3183_v49 = vshrl.u32 %v7211_v63, 16  ;;  %v4261_v13 = vunpack.c.l.b16 %v3744_v4  ;;  %v3650_v46 = vsel %vm6169_vm12, %v5231_v19, %v3649_v62  ;;  %v3653_v38 = vsel %vm6169_vm12, %v3651_v59, %v3652_v60 }
 0x2ad   : > { %4085 = vrot.lane.b32.xlu1 %v4076_v44, %s5651_s30  ;;  %v3175_v14 = vrot.slane %v3173_v7, 5  ;;  %v3754_v34 = vsel %vm6198_vm13, %v3749_v24, %v3753_v40  ;;  %v7231_v36 = vrot.slane %v3179_v0, 5  ;;  %v3189_v61 = vshll.u32 %v7219_v10, 16 }
 0x2ae   : > { %v3185_v5 = vrot.slane %v3183_v49, 4  ;;  %v4063_v42 = vunpack.c.l.b16 %v3338_v35  ;;  %v4064_v27 = vunpack.c.l.b16 %v3341_v21  ;;  %v4262_v28 = vunpack.c.l.b16 %v3754_v34 }
 0x2af   : > { %4199 = vrot.lane.b32.xlu0 %v4189_v20, %s5643_s6  ;;  %v3344_v30 = vrot.slane %v7211_v63, 5  ;;  %v4037_v39 = vpack.c.b16 %v4024_v55, %v4023_v23  ;;  %v4177_v6 = vunpack.c.l.b16 %v3650_v46  ;;  %v3176_v16 = vor.u32 %v3175_v14, %v3172_v22  ;;  %v3398_v63 = vld [vmem:[#allocation3 + $0x44] sm:$0x1]  ;;  %v7251_v23 = vld [vmem:[#allocation3 + $0x34] sm:$0xf]  ;;  %v5468_v55 = vld [vmem:[#allocation3 + $0x18] sm:$0xff] }
 0x2b0   : > { %v3186_v43 = vor.u32 %v3185_v5, %v7231_v36  ;;  %v4276_v26 = vpack.c.b16 %v4262_v28, %v4261_v13  ;;  %v4178_v44 = vunpack.c.l.b16 %v3653_v38  ;;  %v3756_v57 = vshrl.u32 %v3687_v25, 16  ;;  %v3093_v28 = vld [vmem:[#allocation3 + $0x38] sm:$0x1] }
 0x2b1   : > { %v3759_v33 = vshll.u32 %v3687_v25, 16  ;;  %v3191_v3 = vrot.slane %v3189_v61, 5  ;;  %v5223_v47 = vrot.slane %v3292_v51, 9  ;;  %v3765_v18 = vshll.u32 %v7235_v31, 16 }
 0x2b2   : > { %v3769_v50 = vshrl.u32 %v7235_v31, 16  ;;  %4285 = vrot.lane.b32.xlu2 %v4276_v26, %s5650_s18  ;;  %v3346_v37 = vrot.slane %v3344_v30, 4  ;;  %v3347_v41 = vrot.slane %v7219_v10, 5  ;;  %v3758_v20 = vrot.slane %v3756_v57, 4 }
 0x2b3   : > { %v3761_v53 = vrot.slane %v3759_v33, 5  ;;  %v3177_v62 = vrot.slane %v3176_v16, 4  ;;  %v3187_v2 = vrot.slane %v3186_v43, 4  ;;  %v3767_v29 = vrot.slane %v3765_v18, 5  ;;  %v3293_v18 = vld [vmem:[#allocation3 + $0x30] sm:$0xe] }
 0x2b4   : > { %v3771_v54 = vrot.slane %v3769_v50, 4  ;;  %v4077_v19 = vpack.c.b16 %v4064_v27, %v4063_v42  ;;  %v3775_v60 = vshll.u32 %v7238_v8, 16  ;;  %v4190_v15 = vpack.c.b16 %v4178_v44, %v4177_v6  ;;  %v3689_v6 = vld [vmem:[#allocation3 + $0x3c] sm:$0xf]  ;;  %v7275_v44 = vld [vmem:[#allocation3 + $0x40] sm:$0xf] }
 0x2b5   : > { %4247 = vrot.lane.b32.xlu1 %v5477_v48, %s5651_s30  ;;  %v3762_v59 = vor.u32 %v3761_v53, %v3758_v20  ;;  %v7249_v35 = vsel %vm6169_vm12, %v5223_v47, %v3344_v30  ;;  %v3656_v40 = vrot.slane %v3387_v45, 5  ;;  %v7255_v21 = vsel %vm6169_vm12, %v3346_v37, %v3347_v41  ;;  %v7282_v41 = vld [vmem:[#allocation3 + $0x44] sm:$0x1]  ;;  %v5478_v45 = vld [vmem:[#allocation3 + $0x3c] sm:$0xff] }
 0x2b6   : > { %v3772_v4 = vor.u32 %v3771_v54, %v3767_v29  ;;  %v3777_v7 = vrot.slane %v3775_v60, 5  ;;  %v3194_v24 = vshrl.u32 %v3081_v17, 16  ;;  %v3182_v22 = vsel %vm6198_vm13, %v3177_v62, %v7231_v36 }
 0x2b7   : > { %4047 = vrot.lane.b32.xlu0 %v4037_v39, %s5643_s6  ;;  %v3763_v10 = vrot.slane %v3762_v59, 4  ;;  %v3192_v0 = vsel %vm6198_vm13, %v3187_v2, %v3191_v3  ;;  %v3197_v13 = vshll.u32 %v3081_v17, 16  ;;  %v5232_v38 = vrot.slane %v3598_v56, 9  ;;  %v3389_v56 = vld [vmem:[#allocation3 + $0x4c] sm:$0xf] }
 0x2b8   : > { %v3773_v49 = vrot.slane %v3772_v4, 4  ;;  %v3659_v14 = vrot.slane %v3398_v63, 5  ;;  %v3203_v34 = vshll.u32 %v7251_v23, 16  ;;  %v3658_v61 = vrot.slane %v3656_v40, 4 }
 0x2b9   : > { %v3768_v46 = vsel %vm6198_vm13, %v3763_v10, %v3767_v29  ;;  %v3196_v25 = vrot.slane %v3194_v24, 4  ;;  %v3199_v42 = vrot.slane %v3197_v13, 5  ;;  %v3207_v51 = vshrl.u32 %v7251_v23, 16  ;;  %v3083_v10 = vld [vmem:[#allocation3 + $0x3c] sm:$0xf] }
 0x2ba   : > { %v3778_v5 = vsel %vm6198_vm13, %v3773_v49, %v3777_v7  ;;  %4133 = vrot.lane.b32.xlu2 %v5468_v55, %s5650_s18  ;;  %v4263_v36 = vunpack.c.l.b16 %v3768_v46  ;;  %v4025_v30 = vunpack.c.l.b16 %v3182_v22  ;;  %v4026_v48 = vunpack.c.l.b16 %v3192_v0  ;;  %v3399_v13 = vld [vmem:[#allocation3 + $0x50] sm:$0x1]  ;;  %v3599_v46 = vld [vmem:[#allocation3 + $0x48] sm:$0xe] }
 0x2bb   : > { %v4264_v27 = vunpack.c.l.b16 %v3778_v5  ;;  %v7270_v39 = vrot.slane %v3203_v34, 5  ;;  %v4065_v16 = vunpack.c.l.b16 %v7249_v35  ;;  %v4066_v43 = vunpack.c.l.b16 %v7255_v21 }
 0x2bc   : > { %v3209_v26 = vrot.slane %v3207_v51, 4  ;;  %v3657_v57 = vsel %vm6169_vm12, %v5232_v38, %v3656_v40  ;;  %v3660_v33 = vsel %vm6169_vm12, %v3658_v61, %v3659_v14  ;;  %v3200_v3 = vor.u32 %v3199_v42, %v3196_v25  ;;  %v7291_v61 = vld [vmem:[#allocation3 + $0x40] sm:$0xf]  ;;  %v5469_v42 = vld [vmem:[#allocation3 + $0x24] sm:$0xff] }
 0x2bd   : > { %4087 = vrot.lane.b32.xlu1 %v4077_v19, %s5651_s30  ;;  %v3213_v47 = vshll.u32 %v3093_v28, 16  ;;  %v4277_v50 = vpack.c.b16 %v4264_v27, %v4263_v36  ;;  %v3351_v37 = vrot.slane %v7251_v23, 5  ;;  %v3780_v20 = vshrl.u32 %v3689_v6, 16 }
 0x2be   : > { %v3783_v53 = vshll.u32 %v3689_v6, 16  ;;  %v4038_v62 = vpack.c.b16 %v4026_v48, %v4025_v30  ;;  %v3210_v2 = vor.u32 %v3209_v26, %v7270_v39  ;;  %v3789_v29 = vshll.u32 %v7275_v44, 16 }
 0x2bf   : > { %4201 = vrot.lane.b32.xlu0 %v4190_v15, %s5643_s6  ;;  %v3793_v54 = vshrl.u32 %v7275_v44, 16  ;;  %v4179_v17 = vunpack.c.l.b16 %v3657_v57  ;;  %v4180_v19 = vunpack.c.l.b16 %v3660_v33  ;;  %v5224_v59 = vrot.slane %v3293_v18, 9  ;;  %v3691_v33 = vld [vmem:[#allocation3 + $0x48] sm:$0xf] }
 0x2c0   : > { %v3782_v60 = vrot.slane %v3780_v20, 4  ;;  %v3785_v63 = vrot.slane %v3783_v53, 5  ;;  %v3791_v15 = vrot.slane %v3789_v29, 5  ;;  %v3799_v4 = vshll.u32 %v7282_v41, 16 }
 0x2c1   : > { %v3795_v35 = vrot.slane %v3793_v54, 4  ;;  %v3201_v40 = vrot.slane %v3200_v3, 4  ;;  %v3215_v23 = vrot.slane %v3213_v47, 5  ;;  %v3353_v55 = vrot.slane %v3351_v37, 4  ;;  %v3094_v54 = vld [vmem:[#allocation3 + $0x44] sm:$0x1] }
 0x2c2   : > { %4287 = vrot.lane.b32.xlu2 %v4277_v50, %s5650_s18  ;;  %v3354_v21 = vrot.slane %v3093_v28, 5  ;;  %v3211_v7 = vrot.slane %v3210_v2, 4  ;;  %v3786_v24 = vor.u32 %v3785_v63, %v3782_v60  ;;  %v3801_v0 = vrot.slane %v3799_v4, 5  ;;  %v5490_v60 = vld [vmem:[%s7777_s3 + $0x38] sm:$0xff]  ;;  %v7332_v4 = vld [vmem:[#allocation3 + $0x50] sm:$0x1] }
 0x2c3   : > { %v3796_v22 = vor.u32 %v3795_v35, %v3791_v15  ;;  %v4078_v49 = vpack.c.b16 %v4066_v43, %v4065_v16  ;;  %v3663_v38 = vrot.slane %v3389_v56, 5  ;;  %v4191_v14 = vpack.c.b16 %v4180_v19, %v4179_v17  ;;  %v5498_v17 = vld [vmem:[%s7777_s3 + $0x78] sm:$0xff]  ;;  %4625 = vmatpush.bf16.msra.mxu1 %v5490_v60  ;;  %v5488_v60 = vld [vmem:[%s7777_s3 + $0x28] sm:$0xff] }
 0x2c4   : > { %v3787_v34 = vrot.slane %v3786_v24, 4  ;;  %v3218_v25 = vshrl.u32 %v3083_v10, 16  ;;  %v3206_v36 = vsel %vm6198_vm13, %v3201_v40, %v7270_v39  ;;  %v7298_v27 = vsel %vm6169_vm12, %v5224_v59, %v3351_v37  ;;  %v7314_v37 = vld [vmem:[#allocation3 + $0x4c] sm:$0xf]  ;;  %4674 = vmatpush.bf16.msra.mxu2 %v5498_v17 }
 0x2c5   : > { %4249 = vrot.lane.b32.xlu1 %v5478_v45, %s5651_s30  ;;  %v3797_v5 = vrot.slane %v3796_v22, 4  ;;  %v7302_v28 = vsel %vm6169_vm12, %v3353_v55, %v3354_v21  ;;  %v3221_v51 = vshll.u32 %v3083_v10, 16  ;;  %v3216_v30 = vsel %vm6198_vm13, %v3211_v7, %v3215_v23  ;;  %v3294_v23 = vld [vmem:[#allocation3 + $0x3c] sm:$0xe]  ;;  %v5497_v7 = vld [vmem:[%s7777_s3 + $0x70] sm:$0xff] }
 0x2c6   : > { %v3792_v48 = vsel %vm6198_vm13, %v3787_v34, %v3791_v15  ;;  %v5233_v16 = vrot.slane %v3599_v46, 9  ;;  %v3665_v39 = vrot.slane %v3663_v38, 4  ;;  %v3666_v43 = vrot.slane %v3399_v13, 5  ;;  %v5479_v13 = vld [vmem:[#allocation3 + $0x48] sm:$0xff] }
 0x2c7   : > { %4049 = vrot.lane.b32.xlu0 %v4038_v62, %s5643_s6  ;;  %v3802_v6 = vsel %vm6198_vm13, %v3797_v5, %v3801_v0  ;;  %v3227_v26 = vshll.u32 %v7291_v61, 16  ;;  %v3231_v57 = vshrl.u32 %v7291_v61, 16  ;;  %v3422_v3 = vshll.u32 %v7129_v9, 16  ;;  %v3085_v5 = vld [vmem:[#allocation3 + $0x48] sm:$0xf] }
 0x2c8   : > { %v4067_v47 = vunpack.c.l.b16 %v7298_v27  ;;  %v3220_v18 = vrot.slane %v3218_v25, 4  ;;  %v3223_v50 = vrot.slane %v3221_v51, 5  ;;  %v4027_v20 = vunpack.c.l.b16 %v3206_v36  ;;  %v7342_v27 = vld [vmem:[#allocation3 + $0x58] sm:$0xf]  ;;  %4675 = vmatpush.bf16.msra.mxu2 %v5497_v7 }
 0x2c9   : > { %v4028_v53 = vunpack.c.l.b16 %v3216_v30  ;;  %v4265_v45 = vunpack.c.l.b16 %v3792_v48  ;;  %v4266_v62 = vunpack.c.l.b16 %v3802_v6  ;;  %v4068_v2 = vunpack.c.l.b16 %v7302_v28 }
 0x2ca   : > { %4135 = vrot.lane.b32.xlu2 %v5469_v42, %s5650_s18  ;;  %v3664_v29 = vsel %vm6169_vm12, %v5233_v16, %v3663_v38  ;;  %v3804_v19 = vshrl.u32 %v3691_v33, 16  ;;  %v3807_v59 = vshll.u32 %v3691_v33, 16  ;;  %v3667_v63 = vsel %vm6169_vm12, %v3665_v39, %v3666_v43  ;;  %v7346_v43 = vld [vmem:[#allocation3 + $0x4c] sm:$0xf] }
 0x2cb   : > { %v7330_v15 = vrot.slane %v3227_v26, 5  ;;  %v3233_v35 = vrot.slane %v3231_v57, 4  ;;  %v3813_v56 = vshll.u32 %v7314_v37, 16  ;;  %v3224_v40 = vor.u32 %v3223_v50, %v3220_v18  ;;  %v5496_v50 = vld [vmem:[%s7777_s3 + $0x68] sm:$0xff] }
 0x2cc   : > { %v3358_v55 = vrot.slane %v7291_v61, 5  ;;  %v3806_v21 = vrot.slane %v3804_v19, 4  ;;  %v3809_v10 = vrot.slane %v3807_v59, 5  ;;  %v4039_v24 = vpack.c.b16 %v4028_v53, %v4027_v20  ;;  %v5489_v20 = vld [vmem:[%s7777_s3 + $0x30] sm:$0xff]  ;;  %4676 = vmatpush.bf16.msra.mxu2 %v5496_v50  ;;  %v5495_v59 = vld [vmem:[%s7777_s3 + $0x60] sm:$0xff] }
 0x2cd   : > { %4089 = vrot.lane.b32.xlu1 %v4078_v49, %s5651_s30  ;;  %v4278_v22 = vpack.c.b16 %v4266_v62, %v4265_v45  ;;  %v3815_v0 = vrot.slane %v3813_v56, 5  ;;  %v3817_v49 = vshrl.u32 %v7314_v37, 16  ;;  %v4181_v46 = vunpack.c.l.b16 %v3664_v29  ;;  %4626 = vmatpush.bf16.msra.mxu1 %v5489_v20  ;;  %v5470_v56 = vld [vmem:[#allocation3 + $0x30] sm:$0xff] }
 0x2ce   : > { %v4182_v38 = vunpack.c.l.b16 %v3667_v63  ;;  %v3810_v34 = vor.u32 %v3809_v10, %v3806_v21  ;;  %v3234_v61 = vor.u32 %v3233_v35, %v7330_v15  ;;  %v5225_v25 = vrot.slane %v3294_v23, 9  ;;  %v3693_v21 = vld [vmem:[#allocation3 + $0x54] sm:$0xf] }
 0x2cf   : > { %4203 = vrot.lane.b32.xlu0 %v4191_v14, %s5643_s6  ;;  %v3237_v14 = vshll.u32 %v3094_v54, 16  ;;  %v3819_v42 = vrot.slane %v3817_v49, 4  ;;  %v3823_v36 = vshll.u32 %v7332_v4, 16  ;;  %v3416_v28 = vshrl.u32 %v7127_v11, 16  ;;  %v7384_v49 = vld [vmem:[#allocation3 + $0x58] sm:$0xf] }
 0x2d0   : > { %v3225_v51 = vrot.slane %v3224_v40, 4  ;;  %v3360_v30 = vrot.slane %v3358_v55, 4  ;;  %v3361_v48 = vrot.slane %v3094_v54, 5  ;;  %v3811_v6 = vrot.slane %v3810_v34, 4  ;;  %v3600_v54 = vld [vmem:[#allocation3 + $0x54] sm:$0xe]  ;;  %4677 = vmatpush.bf16.msra.mxu2 %v5495_v59 }
 0x2d1   : > { %v3820_v16 = vor.u32 %v3819_v42, %v3815_v0  ;;  %v3825_v39 = vrot.slane %v3823_v36, 5  ;;  %v3242_v26 = vshrl.u32 %v3085_v5, 16  ;;  %v4079_v57 = vpack.c.b16 %v4068_v2, %v4067_v47  ;;  %v7361_v2 = vld [vmem:[#allocation3 + $0x5c] sm:$0x1]  ;;  %4627 = vmatpush.bf16.msra.mxu1 %v5488_v60  ;;  %v5493_v60 = vld [vmem:[%s7777_s3 + $0x50] sm:$0xff] }
 0x2d2   : > { %4289 = vrot.lane.b32.xlu2 %v4278_v22, %s5650_s18  ;;  %v3239_v33 = vrot.slane %v3237_v14, 5  ;;  %v3670_v18 = vrot.slane %v7342_v27, 5  ;;  %v3245_v53 = vshll.u32 %v3085_v5, 16  ;;  %v4192_v45 = vpack.c.b16 %v4182_v38, %v4181_v46 }
 0x2d3   : > { %v3235_v62 = vrot.slane %v3234_v61, 4  ;;  %v7359_v29 = vsel %vm6169_vm12, %v5225_v25, %v3358_v55  ;;  %v3821_v47 = vrot.slane %v3820_v16, 4  ;;  %v3230_v17 = vsel %vm6198_vm13, %v3225_v51, %v7330_v15  ;;  %v3095_v61 = vld [vmem:[#allocation3 + $0x50] sm:$0x1]  ;;  %v3295_v25 = vld [vmem:[#allocation3 + $0x48] sm:$0xe] }
 0x2d4   : > { %v7368_v19 = vsel %vm6169_vm12, %v3360_v30, %v3361_v48  ;;  %v3251_v63 = vshll.u32 %v7346_v43, 16  ;;  %v3255_v35 = vshrl.u32 %v7346_v43, 16  ;;  %v3816_v15 = vsel %vm6198_vm13, %v3811_v6, %v3815_v0  ;;  %v7395_v30 = vld [vmem:[#allocation3 + $0x5c] sm:$0x1] }
 0x2d5   : > { %4251 = vrot.lane.b32.xlu1 %v5479_v13, %s5651_s30  ;;  %v3826_v40 = vsel %vm6198_vm13, %v3821_v47, %v3825_v39  ;;  %v3244_v23 = vrot.slane %v3242_v26, 4  ;;  %v3247_v55 = vrot.slane %v3245_v53, 5  ;;  %v4069_v10 = vunpack.c.l.b16 %v7359_v29  ;;  %v3378_v47 = vld [vmem:[#allocation3 + $0xc] sm:$0xf]  ;;  %v5492_v29 = vld [vmem:[%s7777_s3 + $0x48] sm:$0xff] }
 0x2d6   : > { %v5234_v7 = vrot.slane %v3600_v54, 9  ;;  %v3673_v22 = vrot.slane %v7361_v2, 5  ;;  %v3240_v13 = vsel %vm6198_vm13, %v3235_v62, %v3239_v33  ;;  %v7388_v46 = vunpack.c.l.b16 %v3230_v17  ;;  %v5494_v33 = vld [vmem:[%s7777_s3 + $0x58] sm:$0xff] }
 0x2d7   : > { %4051 = vrot.lane.b32.xlu0 %v4039_v24, %s5643_s6  ;;  %v3672_v24 = vrot.slane %v3670_v18, 4  ;;  %v7390_v0 = vrot.slane %v3251_v63, 5  ;;  %v3257_v38 = vrot.slane %v3255_v35, 4  ;;  %v4070_v14 = vunpack.c.l.b16 %v7368_v19  ;;  %4678 = vmatpush.bf16.msra.mxu2 %v5494_v33 }
 0x2d8   : > { %v4267_v34 = vunpack.c.l.b16 %v3816_v15  ;;  %v4268_v5 = vunpack.c.l.b16 %v3826_v40  ;;  %v3828_v42 = vshrl.u32 %v3693_v21, 16  ;;  %v3248_v36 = vor.u32 %v3247_v55, %v3244_v23  ;;  %v5480_v15 = vld [vmem:[#allocation3 + $0x54] sm:$0xff] }
 0x2d9   : > { %v3365_v51 = vrot.slane %v7346_v43, 5  ;;  %v3831_v48 = vshll.u32 %v3693_v21, 16  ;;  %v3837_v6 = vshll.u32 %v7384_v49, 16  ;;  %v4030_v16 = vunpack.c.l.b16 %v3240_v13  ;;  %v5487_v43 = vld [vmem:[%s7777_s3 + $0x20] sm:$0xff] }
 0x2da   : > { %4137 = vrot.lane.b32.xlu2 %v5470_v56, %s5650_s18  ;;  %v3671_v39 = vsel %vm6169_vm12, %v5234_v7, %v3670_v18  ;;  %v3674_v26 = vsel %vm6169_vm12, %v3672_v24, %v3673_v22  ;;  %v3830_v50 = vrot.slane %v3828_v42, 4  ;;  %v3258_v18 = vor.u32 %v3257_v38, %v7390_v0  ;;  %4628 = vmatpush.bf16.msra.mxu1 %v5487_v43  ;;  %v5486_v7 = vld [vmem:[%s7777_s3 + $0x18] sm:$0xff]  ;;  %v5499_v24 = vld [vmem:[%s7777_s3 + $0x80] sm:$0xff] }
 0x2db   : > { %v3261_v20 = vshll.u32 %v3095_v61, 16  ;;  %v5226_v53 = vrot.slane %v3295_v25, 9  ;;  %v3833_v62 = vrot.slane %v3831_v48, 5  ;;  %v4279_v54 = vpack.c.b16 %v4268_v5, %v4267_v34  ;;  %v3899_v5 = vld [vmem:[#allocation3 + $0x18] sm:$0xe]  ;;  %4679 = vmatpush.bf16.msra.mxu2 %v5493_v60  ;;  %v5471_v60 = vld [vmem:[#allocation3 + $0x3c] sm:$0xff] }
 0x2dc   : > { %v3368_v17 = vrot.slane %v3095_v61, 5  ;;  %v7414_v19 = vrot.slane %v3837_v6, 5  ;;  %v3841_v59 = vshrl.u32 %v7384_v49, 16  ;;  %v3249_v63 = vrot.slane %v3248_v36, 4  ;;  %v7454_v43 = vld [vmem:[#allocation3 + $0x68] sm:$0x1] }
 0x2dd   : > { %4091 = vrot.lane.b32.xlu1 %v4079_v57, %s5651_s30  ;;  %v5500_v57 = vld [vmem:[%s7777_s3 + $0x88] sm:$0xff]  ;;  %v3834_v35 = vor.u32 %v3833_v62, %v3830_v50  ;;  %v3847_v56 = vshll.u32 %v7395_v30, 16  ;;  %v4040_v40 = vpack.c.b16 %v4030_v16, %v7388_v46  ;;  %v3403_v55 = vshrl.u32 %v3378_v47, 16  ;;  %v7452_v50 = vld [vmem:[#allocation3 + $0x64] sm:$0xf] }
 0x2de   : > { %4729 = vmatpush.bf16.msra.mxu3 %v5500_v57  ;;  %v3843_v23 = vrot.slane %v3841_v59, 4  ;;  %v3406_v21 = vshll.u32 %v3378_v47, 16  ;;  %v4183_v22 = vunpack.c.l.b16 %v3671_v39  ;;  %v4184_v13 = vunpack.c.l.b16 %v3674_v26  ;;  %4629 = vmatpush.bf16.msra.mxu1 %v5486_v7  ;;  %v5485_v57 = vld [vmem:[%s7777_s3 + $0x10] sm:$0xff]  ;;  %v5491_v59 = vld [vmem:[%s7777_s3 + $0x40] sm:$0xff] }
 0x2df   : > { %4205 = vrot.lane.b32.xlu0 %v4192_v45, %s5643_s6  ;;  %v3367_v45 = vrot.slane %v3365_v51, 4  ;;  %v3259_v38 = vrot.slane %v3258_v18, 4  ;;  %v3263_v34 = vrot.slane %v3261_v20, 5  ;;  %v7430_v61 = vsel %vm6169_vm12, %v5226_v53, %v3365_v51  ;;  %v3601_v47 = vld [vmem:[#allocation3 + $0x60] sm:$0xe]  ;;  %4680 = vmatpush.bf16.msra.mxu2 %v5492_v29 }
 0x2e0   : > { %v3835_v46 = vrot.slane %v3834_v35, 4  ;;  %v3844_v25 = vor.u32 %v3843_v23, %v7414_v19  ;;  %v3412_v42 = vshll.u32 %v7127_v11, 16  ;;  %v4080_v36 = vpack.c.b16 %v4070_v14, %v4069_v10  ;;  %v7483_v23 = vld [vmem:[#allocation3 + $0x58] sm:$0xf]  ;;  %v3695_v29 = vld [vmem:[#allocation3 + $0x60] sm:$0xf] }
 0x2e1   : > { %v3254_v48 = vsel %vm6198_vm13, %v3249_v63, %v7390_v0  ;;  %v7442_v51 = vsel %vm6169_vm12, %v3367_v45, %v3368_v17  ;;  %v3849_v6 = vrot.slane %v3847_v56, 5  ;;  %v3405_v39 = vrot.slane %v3403_v55, 4 }
 0x2e2   : > { %4291 = vrot.lane.b32.xlu2 %v4279_v54, %s5650_s18  ;;  %4730 = vmatpush.bf16.msra.mxu3 %v5499_v24  ;;  %v3845_v16 = vrot.slane %v3844_v25, 4  ;;  %v3408_v26 = vrot.slane %v3406_v21, 5  ;;  %v5236_v10 = vrot.slane %v3899_v5, 9  ;;  %v4193_v14 = vpack.c.b16 %v4184_v13, %v4183_v22  ;;  %v5572_v54 = vld [vmem:[#allocation3 + $0x20] sm:$0x1] }
 0x2e3   : > { %v3264_v0 = vsel %vm6198_vm13, %v3259_v38, %v3263_v34  ;;  %v4071_v33 = vunpack.c.l.b16 %v7430_v61  ;;  %v3933_v18 = vrot.slane %v7133_v12, 5  ;;  %v3840_v20 = vsel %vm6198_vm13, %v3835_v46, %v7414_v19  ;;  %4630 = vmatpush.bf16.msra.mxu1 %v5485_v57  ;;  %v7486_v22 = vld [vmem:[#allocation3 + $0x5c] sm:$0x1]  ;;  %4681 = vmatpush.bf16.msra.mxu2 %v5491_v59 }
 0x2e4   : > { %v7463_v53 = vrot.slane %v3412_v42, 5  ;;  %v3418_v62 = vrot.slane %v3416_v28, 4  ;;  %v3936_v17 = vrot.slane %v5572_v54, 5  ;;  %v7470_v63 = vunpack.c.l.b16 %v3254_v48  ;;  %v3087_v28 = vld [vmem:[#allocation3 + $0x54] sm:$0xf] }
 0x2e5   : > { %4253 = vrot.lane.b32.xlu1 %v5480_v15, %s5651_s30  ;;  %v4072_v12 = vunpack.c.l.b16 %v7442_v51  ;;  %v3850_v19 = vsel %vm6198_vm13, %v3845_v16, %v3849_v6  ;;  %v3934_v11 = vsel %vm6169_vm12, %v5236_v10, %v3933_v18  ;;  %v7477_v45 = vunpack.c.l.b16 %v3264_v0 }
 0x2e6   : > { %v3409_v35 = vor.u32 %v3408_v26, %v3405_v39  ;;  %v3677_v56 = vrot.slane %v7452_v50, 5  ;;  %v3935_v15 = vrot.slane %v3933_v18, 4  ;;  %v4269_v55 = vunpack.c.l.b16 %v3840_v20  ;;  %v7497_v20 = vld [vmem:[#allocation3 + $0x64] sm:$0xf] }
 0x2e7   : > { %4053 = vrot.lane.b32.xlu0 %v4040_v40, %s5643_s6  ;;  %v5484_v40 = vld [vmem:[%s7777_s3 + $0x8] sm:$0xff]  ;;  %v5235_v21 = vrot.slane %v3601_v47, 9  ;;  %v3680_v7 = vrot.slane %v7454_v43, 5  ;;  %v4299_v24 = vunpack.c.l.b16 %v3934_v11  ;;  %v4270_v13 = vunpack.c.l.b16 %v3850_v19  ;;  %v5481_v11 = vld [vmem:[#allocation3 + $0x60] sm:$0xff] }
 0x2e8   : > { %v3419_v38 = vor.u32 %v3418_v62, %v7463_v53  ;;  %v3937_v34 = vsel %vm6169_vm12, %v3935_v15, %v3936_v17  ;;  %v3266_v5 = vshrl.u32 %v3087_v28, 16  ;;  %4631 = vmatpush.bf16.msra.mxu1 %v5484_v40  ;;  %v3269_v25 = vshll.u32 %v3087_v28, 16  ;;  %v5483_v62 = vld [vmem:[%s7777_s3] sm:$0xff] }
 0x2e9   : > { %v4300_v46 = vunpack.c.l.b16 %v3937_v34  ;;  %v3275_v42 = vshll.u32 %v7483_v23, 16  ;;  %v3279_v48 = vshrl.u32 %v7483_v23, 16  ;;  %v3410_v6 = vrot.slane %v3409_v35, 4 }
 0x2ea   : > { %4139 = vrot.lane.b32.xlu2 %v5471_v60, %s5650_s18  ;;  %v3679_v16 = vrot.slane %v3677_v56, 4  ;;  %v3268_v39 = vrot.slane %v3266_v5, 4  ;;  %v3285_v26 = vshll.u32 %v7486_v22, 16  ;;  %v3271_v0 = vrot.slane %v3269_v25, 5  ;;  %v3380_v5 = vld [vmem:[#allocation3 + $0x18] sm:$0xf] }
 0x2eb   : > { %v4315_v10 = vpack.c.b16 %v4300_v46, %v4299_v24  ;;  %v3277_v57 = vrot.slane %v3275_v42, 5  ;;  %v3281_v18 = vrot.slane %v3279_v48, 4  ;;  %v4280_v47 = vpack.c.b16 %v4270_v13, %v4269_v55  ;;  %v7529_v46 = vld [vmem:[#allocation3 + $0x54] sm:$0xe] }
 0x2ec   : > { %v7506_v54 = vrot.slane %v3422_v3, 5  ;;  %v3272_v17 = vor.u32 %v3271_v0, %v3268_v39  ;;  %v3852_v60 = vshrl.u32 %v3695_v29, 16  ;;  %v3855_v19 = vshll.u32 %v3695_v29, 16  ;;  %4632 = vmatpush.bf16.msra.mxu1 %v5483_v62 }
 0x2ed   : > { %4093 = vrot.lane.b32.xlu1 %v4080_v36, %s5651_s30  ;;  %v4041_v36 = vpack.c.b16 %v7477_v45, %v7470_v63  ;;  %5412 = vmatmul.msk.bf16.vlgmr.msra.gmra.mxu3 %vm2548_vm6, %v4315_v10  ;;  %v3282_v59 = vor.u32 %v3281_v18, %v3277_v57  ;;  %v7511_v28 = vrot.slane %v3419_v38, 4  ;;  %v3681_v63 = vsel %vm6169_vm12, %v3679_v16, %v3680_v7  ;;  %v7515_v45 = vld [vmem:[#allocation3 + $0x68] sm:$0x1] }
 0x2ee   : > { %v3861_v9 = vshll.u32 %v7497_v20, 16  ;;  %v3865_v3 = vshrl.u32 %v7497_v20, 16  ;;  %v3415_v35 = vsel %vm6198_vm13, %v3410_v6, %v7463_v53  ;;  %v3287_v15 = vrot.slane %v3285_v26, 5  ;;  %v5472_v10 = vld [vmem:[#allocation3 + $0x48] sm:$0xff] }
 0x2ef   : > { %4207 = vrot.lane.b32.xlu0 %v4193_v14, %s5643_s6  ;;  %v3678_v14 = vsel %vm6169_vm12, %v5235_v21, %v3677_v56  ;;  %v3273_v56 = vrot.slane %v3272_v17, 4  ;;  %v3854_v40 = vrot.slane %v3852_v60, 4  ;;  %v3283_v55 = vrot.slane %v3282_v59, 4  ;;  %v5573_v60 = vld [vmem:[#allocation3 + $0x1c] sm:$0xf] }
 0x2f0   : > { %v3857_v21 = vrot.slane %v3855_v19, 5  ;;  %v3863_v24 = vrot.slane %v3861_v9, 5  ;;  %v3867_v13 = vrot.slane %v3865_v3, 4  ;;  %v4185_v7 = vunpack.c.l.b16 %v3678_v14 }
 0x2f1   : > { %v4186_v38 = vunpack.c.l.b16 %v3681_v63  ;;  %v3871_v34 = vshll.u32 %v7515_v45, 16  ;;  %v4081_v53 = vpack.c.b16 %v4072_v12, %v4071_v33  ;;  %v3372_v25 = vrot.slane %v7483_v23, 5  ;;  %v3900_v33 = vld [vmem:[#allocation3 + $0x24] sm:$0xe] }
 0x2f2   : > { %4293 = vrot.lane.b32.xlu2 %v4280_v47, %s5650_s18  ;;  %v3858_v42 = vor.u32 %v3857_v21, %v3854_v40  ;;  %v3868_v48 = vor.u32 %v3867_v13, %v3863_v24  ;;  %v3425_v6 = vsel %vm6198_vm13, %v7511_v28, %v7506_v54  ;;  %v7537_v16 = vunpack.c.l.b16 %v3415_v35  ;;  %v7549_v28 = vld [vmem:[#allocation3 + $0x70] sm:$0xf] }
 0x2f3   : > { %v3278_v61 = vsel %vm6198_vm13, %v3273_v56, %v3277_v57  ;;  %v3873_v51 = vrot.slane %v3871_v34, 5  ;;  %v3288_v12 = vsel %vm6198_vm13, %v3283_v55, %v3287_v15  ;;  %v3427_v26 = vshrl.u32 %v3380_v5, 16  ;;  %v7563_v34 = vld [vmem:[#allocation3 + $0x74] sm:$0x1] }
 0x2f4   : > { %v3859_v23 = vrot.slane %v3858_v42, 4  ;;  %v3869_v39 = vrot.slane %v3868_v48, 4  ;;  %v4194_v29 = vpack.c.b16 %v4186_v38, %v4185_v7  ;;  %v5227_v0 = vrot.slane %v7529_v46, 9 }
 0x2f5   : > { %4255 = vrot.lane.b32.xlu1 %v5481_v11, %s5651_s30  ;;  %v3375_v18 = vrot.slane %v7486_v22, 5  ;;  %v3430_v62 = vshll.u32 %v3380_v5, 16  ;;  %v3374_v47 = vrot.slane %v3372_v25, 4  ;;  %v5237_v14 = vrot.slane %v3900_v33, 9 }
 0x2f6   : > { %v3864_v57 = vsel %vm6198_vm13, %v3859_v23, %v3863_v24  ;;  %v3874_v54 = vsel %vm6198_vm13, %v3869_v39, %v3873_v51  ;;  %v4033_v17 = vunpack.c.l.b16 %v3278_v61  ;;  %v4034_v59 = vunpack.c.l.b16 %v3288_v12  ;;  %v5482_v39 = vld [vmem:[#allocation3 + $0x6c] sm:$0xff] }
 0x2f7   : > { %4055 = vrot.lane.b32.xlu0 %v4041_v36, %s5643_s6  ;;  %v3697_v36 = vld [vmem:[#allocation3 + $0x6c] sm:$0xf]  ;;  %v3436_v19 = vshll.u32 %v5573_v60, 16  ;;  %v3440_v11 = vshrl.u32 %v5573_v60, 16  ;;  %v3429_v22 = vrot.slane %v3427_v26, 4  ;;  %v3940_v9 = vrot.slane %v7195_v52, 5 }
 0x2f8   : > { %v3943_v3 = vrot.slane %v7198_v58, 5  ;;  %v3876_v35 = vshrl.u32 %v3697_v36, 16  ;;  %v4271_v56 = vunpack.c.l.b16 %v3864_v57  ;;  %v4272_v15 = vunpack.c.l.b16 %v3874_v54  ;;  %v5574_v57 = vld [vmem:[#allocation3 + $0x20] sm:$0x1]  ;;  %v3901_v60 = vld [vmem:[#allocation3 + $0x30] sm:$0xe] }
 0x2f9   : > { %v3432_v40 = vrot.slane %v3430_v62, 5  ;;  %v3879_v55 = vshll.u32 %v3697_v36, 16  ;;  %v3941_v21 = vsel %vm6169_vm12, %v5237_v14, %v3940_v9  ;;  %v3942_v24 = vrot.slane %v3940_v9, 4 }
 0x2fa   : > { %4141 = vrot.lane.b32.xlu2 %v5472_v10, %s5650_s18  ;;  %v3878_v13 = vrot.slane %v3876_v35, 4  ;;  %v3885_v7 = vshll.u32 %v7549_v28, 16  ;;  %v7561_v52 = vrot.slane %v3436_v19, 5  ;;  %v3442_v58 = vrot.slane %v3440_v11, 4 }
 0x2fb   : > { %v7551_v63 = vpop.permute.xlu2 %4083  ;;  %v4301_v38 = vunpack.c.l.b16 %v3941_v21  ;;  %v3881_v5 = vrot.slane %v3879_v55, 5  ;;  %v4148_v46 = vunpack.c.l.b16 %v3425_v6  ;;  %v3889_v48 = vshrl.u32 %v7549_v28, 16 }
 0x2fc   : > { %v7567_v42 = vrot.slane %v3885_v7, 5  ;;  %v4281_v51 = vpack.c.b16 %v4272_v15, %v4271_v56  ;;  %v3433_v33 = vor.u32 %v3432_v40, %v3429_v22  ;;  %v3373_v26 = vsel %vm6169_vm12, %v5227_v0, %v3372_v25 }
 0x2fd   : > { %4095 = vrot.lane.b32.xlu1 %v4081_v53, %s5651_s30  ;;  %v3944_v53 = vsel %vm6169_vm12, %v3942_v24, %v3943_v3  ;;  %v3882_v23 = vor.u32 %v3881_v5, %v3878_v13  ;;  %v3891_v6 = vrot.slane %v3889_v48, 4  ;;  %v3895_v10 = vshll.u32 %v7563_v34, 16 }
 0x2fe   : > { %v4302_v12 = vunpack.c.l.b16 %v3944_v53  ;;  %v4042_v62 = vpack.c.b16 %v4034_v59, %v4033_v17  ;;  %v3443_v36 = vor.u32 %v3442_v58, %v7561_v52  ;;  %v3446_v54 = vshll.u32 %v5574_v57, 16 }
 0x2ff   : > { %4209 = vrot.lane.b32.xlu0 %v4194_v29, %s5643_s6  ;;  %v3376_v29 = vsel %vm6169_vm12, %v3374_v47, %v3375_v18  ;;  %v4163_v19 = vpack.c.b16 %v4148_v46, %v7537_v16  ;;  %v3892_v11 = vor.u32 %v3891_v6, %v7567_v42  ;;  %v4073_v22 = vunpack.c.l.b16 %v3373_v26  ;;  %v3382_v47 = vld [vmem:[#allocation3 + $0x24] sm:$0xf] }
 0x300   : > { %v4316_v14 = vpack.c.b16 %v4302_v12, %v4301_v38  ;;  %v4074_v9 = vunpack.c.l.b16 %v3376_v29  ;;  %v3434_v0 = vrot.slane %v3433_v33, 4  ;;  %v3883_v18 = vrot.slane %v3882_v23, 4  ;;  %v5473_v38 = vld [vmem:[#allocation3 + $0x54] sm:$0xff] }
 0x301   : > { %v4196_v61 = vpop.permute.xlu0 %4195  ;;  %v3893_v17 = vrot.slane %v3892_v11, 4  ;;  %v3897_v59 = vrot.slane %v3895_v10, 5  ;;  %v5238_v3 = vrot.slane %v3901_v60, 9  ;;  %vm4347_vm3 = vcmask 523264  }
 0x302   : > { %4295 = vrot.lane.b32.xlu2 %v4281_v51, %s5650_s18  ;;  %5413 = vmatmul.msk.bf16.gmra.mxu3 %vm2548_vm6, %v4316_v14  ;;  %v3444_v16 = vrot.slane %v3443_v36, 4  ;;  %v3448_v35 = vrot.slane %v3446_v54, 5  ;;  %v3947_v56 = vrot.slane %v7235_v31, 5  ;;  %vm4364_vm4 = vcmask 785408  }
 0x303   : > { %v4132_v25 = vpop.permute.xlu2 %4131  ;;  %v3451_v40 = vshrl.u32 %v3382_v47, 16  ;;  %v3454_v55 = vshll.u32 %v3382_v47, 16  ;;  %v3950_v21 = vrot.slane %v7238_v8, 5  ;;  %v4391_v24 = vsel %vm2548_vm6, %v4163_v19, %v4196_v61 }
 0x304   : > { %v4082_v7 = vpack.c.b16 %v4074_v9, %v4073_v22  ;;  %v3439_v58 = vsel %vm6198_vm13, %v3434_v0, %v7561_v52  ;;  %v3888_v5 = vsel %vm6198_vm13, %v3883_v18, %v7567_v42  ;;  %v3898_v46 = vsel %vm6198_vm13, %v3893_v17, %v3897_v59  ;;  %v5575_v52 = vld [vmem:[#allocation3 + $0x28] sm:$0xf] }
 0x305   : > { %4257 = vrot.lane.b32.xlu1 %v5482_v39, %s5651_s30  ;;  %v3948_v8 = vsel %vm6169_vm12, %v5238_v3, %v3947_v56  ;;  %v3949_v53 = vrot.slane %v3947_v56, 4  ;;  %v3449_v61 = vsel %vm6198_vm13, %v3444_v16, %v3448_v35  ;;  %v3460_v51 = vshll.u32 %v5575_v52, 16  ;;  %v5459_v39 = vld [vmem:[#allocation3] sm:$0xff]  ;;  %v5576_v16 = vld [vmem:[#allocation3 + $0x2c] sm:$0x1] }
 0x306   : > { %v3464_v33 = vshrl.u32 %v5575_v52, 16  ;;  %v3453_v12 = vrot.slane %v3451_v40, 4  ;;  %v3456_v42 = vrot.slane %v3454_v55, 5  ;;  %v4273_v26 = vunpack.c.l.b16 %v3888_v5  ;;  %v3902_v56 = vld [vmem:[#allocation3 + $0x3c] sm:$0xe] }
 0x307   : > { %4057 = vrot.lane.b32.xlu0 %v4042_v62, %s5643_s6  ;;  %v4284_v15 = vpop.permute.xlu1 %4283  ;;  %v3951_v23 = vsel %vm6169_vm12, %v3949_v53, %v3950_v21  ;;  %v4274_v29 = vunpack.c.l.b16 %v3898_v46  ;;  %v4303_v6 = vunpack.c.l.b16 %v3948_v8  ;;  %v4149_v62 = vunpack.c.l.b16 %v3439_v58  ;;  %v5460_v46 = vld [vmem:[#allocation3 + $0xc] sm:$0xff] }
 0x308   : > { %v4304_v10 = vunpack.c.l.b16 %v3951_v23  ;;  %v4150_v36 = vunpack.c.l.b16 %v3449_v61  ;;  %v3462_v54 = vrot.slane %v3460_v51, 5  ;;  %v3466_v14 = vrot.slane %v3464_v33, 4  ;;  %v5577_v51 = vld [vmem:[#allocation3 + $0x34] sm:$0xf] }
 0x309   : > { %v4244_v13 = vpop.permute.xlu0 %4243  ;;  %v4282_v22 = vpack.c.b16 %v4274_v29, %v4273_v26  ;;  %v3457_v9 = vor.u32 %v3456_v42, %v3453_v12  ;;  %v3954_v17 = vrot.slane %v7275_v44, 5  ;;  %v3470_v35 = vshll.u32 %v5576_v16, 16 }
 0x30a   : > { %v4414_v31 = vsel %vm4347_vm3, %v4391_v24, %v4244_v13  ;;  %4143 = vrot.lane.b32.xlu2 %v5473_v38, %s5650_s18  ;;  %v4317_v0 = vpack.c.b16 %v4304_v10, %v4303_v6  ;;  %v4164_v47 = vpack.c.b16 %v4150_v36, %v4149_v62  ;;  %v3467_v3 = vor.u32 %v3466_v14, %v3462_v54 }
 0x30b   : > { %v4430_v48 = vsel %vm4364_vm4, %v4414_v31, %v4284_v15  ;;  %v3458_v15 = vrot.slane %v3457_v9, 4  ;;  %v5239_v55 = vrot.slane %v3902_v56, 9  ;;  %v3956_v21 = vrot.slane %v3954_v17, 4  ;;  %v5474_v31 = vld [vmem:[#allocation3 + $0x60] sm:$0xff] }
 0x30c   : > { %4682 = vmatmul.bf16.vlgmr.msra.gmra.mxu2 %v4430_v48  ;;  %v4286_v57 = vpop.permute.xlu2 %4285  ;;  %v3468_v44 = vrot.slane %v3467_v3, 4  ;;  %v3472_v13 = vrot.slane %v3470_v35, 5  ;;  %v3484_v33 = vshll.u32 %v5577_v51, 16  ;;  %v3488_v12 = vshrl.u32 %v5577_v51, 16  ;;  %v3386_v3 = vld [vmem:[#allocation3 + $0x3c] sm:$0xf] }
 0x30d   : > { %4097 = vrot.lane.b32.xlu1 %v4082_v7, %s5651_s30  ;;  %v3463_v5 = vsel %vm6198_vm13, %v3458_v15, %v3462_v54  ;;  %v3955_v48 = vsel %vm6169_vm12, %v5239_v55, %v3954_v17  ;;  %v3961_v9 = vrot.slane %v7314_v37, 5  ;;  %v3964_v15 = vrot.slane %v7332_v4, 5  ;;  %s5421_s30 = sshll.u32 (%p5728_p5), %s5625_s21, 3 }
 0x30e   : > { %v3473_v52 = vsel %vm6198_vm13, %v3468_v44, %v3472_v13  ;;  %v4305_v42 = vunpack.c.l.b16 %v3955_v48  ;;  %v4151_v26 = vunpack.c.l.b16 %v3463_v5  ;;  %v3486_v36 = vrot.slane %v3484_v33, 5  ;;  %v5461_v5 = vld [vmem:[#allocation3 + $0x18] sm:$0xff]  ;;  %s4832_s11 = sadd.s32 (%p5728_p5), %s5621_s20, %s5421_s30 }
 0x30f   : > { %v4044_v60 = vpop.permute.xlu1 %4043  ;;  %v4152_v29 = vunpack.c.l.b16 %v3473_v52  ;;  %v3963_v56 = vrot.slane %v3961_v9, 4  ;;  %v3502_v44 = vshll.u32 %v3386_v3, 16  ;;  %s5422_s13 = sshll.u32 (%p5728_p5), %s4832_s11, 3 }
 0x310   : > { %v4325_v19 = vsel %vm2548_vm6, %v5459_v39, %v4044_v60  ;;  %s4834_s17 = scalar_lea.vmem (%p5728_p5), %s7779_s5, %s5422_s13 }
 0x311   : > { %v4198_v11 = vpop.permute.xlu0 %4197  ;;  %v4349_v18 = vsel %vm4347_vm3, %v4325_v19, %v7551_v63  ;;  %v3957_v63 = vrot.slane %v7282_v41, 5  ;;  %v3965_v4 = vsel %vm6169_vm12, %v3963_v56, %v3964_v15 }
 0x312   : > { %v4366_v59 = vsel %vm4364_vm4, %v4349_v18, %v4132_v25  ;;  %4297 = vrot.lane.b32.xlu2 %v4282_v22, %s5650_s18  ;;  %5414 = vmatmul.msk.bf16.gmra.mxu3 %vm2548_vm6, %v4317_v0  ;;  %v4394_v40 = vsel %vm2548_vm6, %v4164_v47, %v4198_v11  ;;  %v3384_v25 = vld [vmem:[#allocation3 + $0x30] sm:$0xf]  ;;  %v4165_v22 = vpack.c.b16 %v4152_v29, %v4151_v26  ;;  %v5578_v47 = vld [vmem:[#allocation3 + $0x38] sm:$0x1]  ;;  %v4308_v33 = vunpack.c.l.b16 %v3965_v4 }
 0x313   : > { %4633 = vmatmul.bf16.vlgmr.msra.gmra.mxu1 %v4366_v59  ;;  %v3475_v8 = vshrl.u32 %v3384_v25, 16  ;;  %v3478_v53 = vshll.u32 %v3384_v25, 16  ;;  %v3958_v41 = vsel %vm6169_vm12, %v3956_v21, %v3957_v63  ;;  %v3494_v17 = vshll.u32 %v5578_v47, 16  ;;  %v3903_v59 = vld [vmem:[#allocation3 + $0x48] sm:$0xe] }
 0x314   : > { %v4134_v24 = vpop.permute.xlu2 %4133  ;;  %v4306_v23 = vunpack.c.l.b16 %v3958_v41  ;;  %v5240_v35 = vrot.slane %v3903_v59, 9  ;;  %v3504_v41 = vrot.slane %v3502_v44, 5  ;;  %v3971_v59 = vrot.slane %v7395_v30, 5  ;;  %v5581_v44 = vld [vmem:[#allocation3 + $0x4c] sm:$0xf] }
 0x315   : > { %v3477_v10 = vrot.slane %v3475_v8, 4  ;;  %v3480_v62 = vrot.slane %v3478_v53, 5  ;;  %v3496_v63 = vrot.slane %v3494_v17, 5 }
 0x316   : > { %v4318_v19 = vpack.c.b16 %v4306_v23, %v4305_v42 }
 0x317   : > { %v4246_v7 = vpop.permute.xlu1 %4245  ;;  %v3481_v0 = vor.u32 %v3480_v62, %v3477_v10 }
 0x318   : > { %v4416_v58 = vsel %vm4347_vm3, %v4394_v40, %v4246_v7  ;;  %v5579_v7 = vld [vmem:[#allocation3 + $0x40] sm:$0xf] }
 0x319   : > { %v4046_v38 = vpop.permute.xlu0 %4045  ;;  %v4433_v61 = vsel %vm4364_vm4, %v4416_v58, %v4286_v57  ;;  %v3490_v57 = vrot.slane %v3488_v12, 4  ;;  %v3482_v55 = vrot.slane %v3481_v0, 4  ;;  %v3508_v58 = vshll.u32 %v5579_v7, 16 }
 0x31a   : > { %4145 = vrot.lane.b32.xlu2 %v5474_v31, %s5650_s18  ;;  %v4328_v39 = vsel %vm2548_vm6, %v5460_v46, %v4046_v38  ;;  %v3512_v38 = vshrl.u32 %v5579_v7, 16  ;;  %v3962_v31 = vsel %vm6169_vm12, %v5240_v35, %v3961_v9 }
 0x31b   : > { %v3491_v18 = vor.u32 %v3490_v57, %v3486_v36  ;;  %v3487_v8 = vsel %vm6198_vm13, %v3482_v55, %v3486_v36  ;;  %v4307_v51 = vunpack.c.l.b16 %v3962_v31  ;;  %v5580_v36 = vld [vmem:[#allocation3 + $0x44] sm:$0x1] }
 0x31c   : > { %4687 = vmatmul.bf16.gmra.mxu2 %v4433_v61  ;;  %v4288_v6 = vpop.permute.xlu2 %4287  ;;  %v3510_v61 = vrot.slane %v3508_v58, 5  ;;  %v3514_v52 = vrot.slane %v3512_v38, 4  ;;  %v4153_v42 = vunpack.c.l.b16 %v3487_v8  ;;  %v3518_v57 = vshll.u32 %v5580_v36, 16 }
 0x31d   : > { %v3492_v21 = vrot.slane %v3491_v18, 4 }
 0x31e   : > { %v3515_v62 = vor.u32 %v3514_v52, %v3510_v61  ;;  %v3520_v0 = vrot.slane %v3518_v57, 5 }
 0x31f   : > { %v4086_v54 = vpop.permute.xlu1 %4085  ;;  %v3497_v53 = vsel %vm6198_vm13, %v3492_v21, %v3496_v63 }
 0x320   : > { %v4351_v14 = vsel %vm4347_vm3, %v4328_v39, %v4086_v54  ;;  %v4154_v23 = vunpack.c.l.b16 %v3497_v53  ;;  %v4319_v54 = vpack.c.b16 %v4308_v33, %v4307_v51  ;;  %v3516_v9 = vrot.slane %v3515_v62, 4 }
 0x321   : > { %v4200_v60 = vpop.permute.xlu0 %4199  ;;  %v4369_v11 = vsel %vm4364_vm4, %v4351_v14, %v4134_v24  ;;  %v3499_v24 = vshrl.u32 %v3386_v3, 16 }
 0x322   : > { %5415 = vmatmul.msk.bf16.gmra.mxu3 %vm2548_vm6, %v4318_v19  ;;  %v4397_v16 = vsel %vm2548_vm6, %v4165_v22, %v4200_v60  ;;  %v4166_v60 = vpack.c.b16 %v4154_v23, %v4153_v42  ;;  %v3968_v19 = vrot.slane %v7384_v49, 5  ;;  %v3521_v55 = vsel %vm6198_vm13, %v3516_v9, %v3520_v0 }
 0x323   : > { %4638 = vmatmul.bf16.gmra.mxu1 %v4369_v11  ;;  %v3501_v48 = vrot.slane %v3499_v24, 4  ;;  %v3904_v11 = vld [vmem:[#allocation3 + $0x54] sm:$0xe]  ;;  %v4156_v31 = vunpack.c.l.b16 %v3521_v55  ;;  %v3975_v42 = vrot.slane %v7497_v20, 5 }
 0x324   : > { %v4136_v40 = vpop.permute.xlu2 %4135  ;;  %v5241_v47 = vrot.slane %v3904_v11, 9  ;;  %v3970_v17 = vrot.slane %v3968_v19, 4 }
 0x325   : > { %v3505_v29 = vor.u32 %v3504_v41, %v3501_v48  ;;  %v3977_v57 = vrot.slane %v3975_v42, 4 }
 0x326   : > { %v3969_v63 = vsel %vm6169_vm12, %v5241_v47, %v3968_v19  ;;  %v3972_v30 = vsel %vm6169_vm12, %v3970_v17, %v3971_v59  ;;  %v3556_v47 = vshll.u32 %v7342_v27, 16  ;;  %v3560_v17 = vshrl.u32 %v7342_v27, 16  ;;  %v5463_v59 = vld [vmem:[#allocation3 + $0x30] sm:$0xff] }
 0x327   : > { %v4248_v37 = vpop.permute.xlu1 %4247  ;;  %v3506_v22 = vrot.slane %v3505_v29, 4  ;;  %v4309_v7 = vunpack.c.l.b16 %v3969_v63  ;;  %v4310_v58 = vunpack.c.l.b16 %v3972_v30 }
 0x328   : > { %v4418_v13 = vsel %vm4347_vm3, %v4397_v16, %v4248_v37  ;;  %v3388_v16 = vld [vmem:[#allocation3 + $0x48] sm:$0xf]  ;;  %v3562_v27 = vrot.slane %v3560_v17, 4 }
 0x329   : > { %v4048_v25 = vpop.permute.xlu0 %4047  ;;  %v4436_v46 = vsel %vm4364_vm4, %v4418_v13, %v4288_v6  ;;  %v3511_v49 = vsel %vm6198_vm13, %v3506_v22, %v3510_v61  ;;  %v3523_v21 = vshrl.u32 %v3388_v16, 16  ;;  %v3526_v24 = vshll.u32 %v3388_v16, 16 }
 0x32a   : > { %v4331_v12 = vsel %vm2548_vm6, %v5461_v5, %v4048_v25  ;;  %v3532_v13 = vshll.u32 %v5581_v44, 16  ;;  %v3536_v25 = vshrl.u32 %v5581_v44, 16  ;;  %v4155_v5 = vunpack.c.l.b16 %v3511_v49 }
 0x32b   : > { %v3528_v8 = vrot.slane %v3526_v24, 5  ;;  %v4320_v51 = vpack.c.b16 %v4310_v58, %v4309_v7 }
 0x32c   : > { %4692 = vmatmul.bf16.gmra.mxu2 %v4436_v46  ;;  %v4290_v39 = vpop.permute.xlu2 %4289  ;;  %v3525_v46 = vrot.slane %v3523_v21, 4  ;;  %v3534_v53 = vrot.slane %v3532_v13, 5  ;;  %v3538_v48 = vrot.slane %v3536_v25, 4 }
 0x32e   : > { %v3529_v23 = vor.u32 %v3528_v8, %v3525_v46  ;;  %v3982_v46 = vrot.slane %v7549_v28, 5  ;;  %v3906_v8 = vld [vmem:[#allocation3 + $0x6c] sm:$0xe] }
 0x32f   : > { %v4088_v26 = vpop.permute.xlu1 %4087 }
 0x330   : > { %v4353_v6 = vsel %vm4347_vm3, %v4331_v12, %v4088_v26  ;;  %v4167_v12 = vpack.c.b16 %v4156_v31, %v4155_v5  ;;  %v5582_v26 = vld [vmem:[#allocation3 + $0x50] sm:$0x1] }
 0x331   : > { %v4202_v10 = vpop.permute.xlu0 %4201  ;;  %v4372_v14 = vsel %vm4364_vm4, %v4353_v6, %v4136_v40  ;;  %v5462_v40 = vld [vmem:[#allocation3 + $0x24] sm:$0xff]  ;;  %v3542_v29 = vshll.u32 %v5582_v26, 16  ;;  %v3905_v6 = vld [vmem:[#allocation3 + $0x60] sm:$0xe] }
 0x332   : > { %5416 = vmatmul.msk.bf16.gmra.mxu3 %vm2548_vm6, %v4319_v54  ;;  %v4400_v18 = vsel %vm2548_vm6, %v4166_v60, %v4202_v10  ;;  %v3390_v10 = vld [vmem:[#allocation3 + $0x54] sm:$0xf]  ;;  %v5242_v36 = vrot.slane %v3905_v6, 9  ;;  %v3978_v54 = vrot.slane %v7515_v45, 5  ;;  %v3530_v60 = vrot.slane %v3529_v23, 4  ;;  %v5464_v26 = vld [vmem:[#allocation3 + $0x3c] sm:$0xff] }
 0x333   : > { %4643 = vmatmul.bf16.gmra.mxu1 %v4372_v14  ;;  %v3544_v11 = vrot.slane %v3542_v29, 5  ;;  %v3547_v22 = vshrl.u32 %v3390_v10, 16  ;;  %v3550_v9 = vshll.u32 %v3390_v10, 16 }
 0x334   : > { %v4138_v3 = vpop.permute.xlu2 %4137  ;;  %v3979_v45 = vsel %vm6169_vm12, %v3977_v57, %v3978_v54  ;;  %v3580_v57 = vshll.u32 %v7452_v50, 16  ;;  %v3584_v54 = vshrl.u32 %v7452_v50, 16 }
 0x335   : > { %v3552_v49 = vrot.slane %v3550_v9, 5  ;;  %v4312_v21 = vunpack.c.l.b16 %v3979_v45 }
 0x337   : > { %v4250_v35 = vpop.permute.xlu1 %4249 }
 0x338   : > { %v4420_v56 = vsel %vm4347_vm3, %v4400_v18, %v4250_v35  ;;  %v3535_v35 = vsel %vm6198_vm13, %v3530_v60, %v3534_v53 }
 0x339   : > { %v4050_v15 = vpop.permute.xlu0 %4049  ;;  %v4439_v37 = vsel %vm4364_vm4, %v4420_v56, %v4290_v39  ;;  %v3539_v39 = vor.u32 %v3538_v48, %v3534_v53  ;;  %v4157_v30 = vunpack.c.l.b16 %v3535_v35 }
 0x33a   : > { %v4334_v38 = vsel %vm2548_vm6, %v5462_v40, %v4050_v15  ;;  %v3549_v15 = vrot.slane %v3547_v22, 4  ;;  %v3558_v40 = vrot.slane %v3556_v47, 5 }
 0x33b   : > { %v3540_v19 = vrot.slane %v3539_v39, 4 }
 0x33c   : > { %4697 = vmatmul.bf16.gmra.mxu2 %v4439_v37  ;;  %v4292_v4 = vpop.permute.xlu2 %4291  ;;  %v3553_v13 = vor.u32 %v3552_v49, %v3549_v15  ;;  %v3563_v58 = vor.u32 %v3562_v27, %v3558_v40 }
 0x33d   : > { %v3545_v56 = vsel %vm6198_vm13, %v3540_v19, %v3544_v11 }
 0x33e   : > { %v4158_v37 = vunpack.c.l.b16 %v3545_v56  ;;  %v3554_v53 = vrot.slane %v3553_v13, 4  ;;  %v3564_v48 = vrot.slane %v3563_v58, 4  ;;  %v3590_v56 = vshll.u32 %v7454_v43, 16 }
 0x33f   : > { %v4090_v41 = vpop.permute.xlu1 %4089 }
 0x340   : > { %v4355_v61 = vsel %vm4347_vm3, %v4334_v38, %v4090_v41  ;;  %v3566_v38 = vshll.u32 %v7361_v2, 16  ;;  %v3559_v28 = vsel %vm6198_vm13, %v3554_v53, %v3558_v40  ;;  %v3592_v27 = vrot.slane %v3590_v56, 5 }
 0x341   : > { %v4204_v52 = vpop.permute.xlu0 %4203  ;;  %v4375_v33 = vsel %vm4364_vm4, %v4355_v61, %v4138_v3  ;;  %v3976_v3 = vsel %vm6169_vm12, %v5242_v36, %v3975_v42  ;;  %v4159_v11 = vunpack.c.l.b16 %v3559_v28  ;;  %v7720_v28 = vld [vmem:[%s7778_s4] ss:$0 sm:$0xff] }
 0x342   : > { %5417 = vmatmul.msk.bf16.gmra.mxu3 %vm2548_vm6, %v4320_v51  ;;  %v4403_v62 = vsel %vm2548_vm6, %v4167_v12, %v4204_v52  ;;  %v4311_v55 = vunpack.c.l.b16 %v3976_v3  ;;  %v3568_v41 = vrot.slane %v3566_v38, 5  ;;  %v5243_v52 = vrot.slane %v3906_v8, 9  ;;  %v3392_v12 = vld [vmem:[#allocation3 + $0x60] sm:$0xf] }
 0x343   : > { %4648 = vmatmul.bf16.gmra.mxu1 %v4375_v33  ;;  %v3984_v51 = vrot.slane %v3982_v46, 4  ;;  %v3985_v33 = vrot.slane %v7563_v34, 5  ;;  %v3571_v6 = vshrl.u32 %v3392_v12, 16  ;;  %v3574_v36 = vshll.u32 %v3392_v12, 16 }
 0x344   : > { %v4140_v14 = vpop.permute.xlu2 %4139  ;;  %v4321_v5 = vpack.c.b16 %v4312_v21, %v4311_v55  ;;  %v3569_v29 = vsel %vm6198_vm13, %v3564_v48, %v3568_v41  ;;  %v3983_v10 = vsel %vm6169_vm12, %v5243_v52, %v3982_v46  ;;  %v5466_v41 = vld [vmem:[#allocation3 + $0x54] sm:$0xff] }
 0x345   : > { %v3986_v34 = vsel %vm6169_vm12, %v3984_v51, %v3985_v33  ;;  %v3573_v22 = vrot.slane %v3571_v6, 4  ;;  %v3576_v9 = vrot.slane %v3574_v36, 5 }
 0x346   : > { %v4314_v60 = vunpack.c.l.b16 %v3986_v34 }
 0x347   : > { %v4252_v20 = vpop.permute.xlu1 %4251 }
 0x348   : > { %v4422_v0 = vsel %vm4347_vm3, %v4403_v62, %v4252_v20  ;;  %v4160_v20 = vunpack.c.l.b16 %v3569_v29 }
 0x349   : > { %v4052_v18 = vpop.permute.xlu0 %4051  ;;  %v4442_v16 = vsel %vm4364_vm4, %v4422_v0, %v4292_v4  ;;  %v4168_v4 = vpack.c.b16 %v4158_v37, %v4157_v30  ;;  %v3582_v0 = vrot.slane %v3580_v57, 5  ;;  %v5465_v30 = vld [vmem:[#allocation3 + $0x48] sm:$0xff] }
 0x34a   : > { %v4337_v63 = vsel %vm2548_vm6, %v5463_v59, %v4052_v18  ;;  %v3586_v18 = vrot.slane %v3584_v54, 4  ;;  %v4169_v50 = vpack.c.b16 %v4160_v20, %v4159_v11 }
 0x34c   : > { %4702 = vmatmul.bf16.gmra.mxu2 %v4442_v16  ;;  %v4294_v24 = vpop.permute.xlu2 %4293  ;;  %v3577_v16 = vor.u32 %v3576_v9, %v3573_v22  ;;  %v3587_v35 = vor.u32 %v3586_v18, %v3582_v0 }
 0x34e   : > { %v3578_v49 = vrot.slane %v3577_v16, 4  ;;  %v3588_v40 = vrot.slane %v3587_v35, 4 }
 0x34f   : > { %v4092_v44 = vpop.permute.xlu1 %4091 }
 0x350   : > { %v4357_v25 = vsel %vm4347_vm3, %v4337_v63, %v4092_v44  ;;  %v3583_v44 = vsel %vm6198_vm13, %v3578_v49, %v3582_v0  ;;  %v3593_v43 = vsel %vm6198_vm13, %v3588_v40, %v3592_v27 }
 0x351   : > { %v4206_v7 = vpop.permute.xlu0 %4205  ;;  %v4378_v31 = vsel %vm4364_vm4, %v4357_v25, %v4140_v14  ;;  %v4313_v14 = vunpack.c.l.b16 %v3983_v10  ;;  %v4161_v25 = vunpack.c.l.b16 %v3583_v44 }
 0x352   : > { %5418 = vmatmul.msk.bf16.gmra.mxu3 %vm2548_vm6, %v4321_v5  ;;  %v4406_v61 = vsel %vm2548_vm6, %v4168_v4, %v4206_v7  ;;  %v4162_v7 = vunpack.c.l.b16 %v3593_v43 }
 0x353   : > { %4653 = vmatmul.bf16.gmra.mxu1 %v4378_v31  ;;  %v4322_v3 = vpack.c.b16 %v4314_v60, %v4313_v14 }
 0x354   : > { %v4142_v2 = vpop.permute.xlu2 %4141  ;;  %v4170_v4 = vpack.c.b16 %v4162_v7, %v4161_v25 }
 0x357   : > { %v4254_v42 = vpop.permute.xlu1 %4253 }
 0x358   : > { %v4424_v23 = vsel %vm4347_vm3, %v4406_v61, %v4254_v42 }
 0x359   : > { %v4054_v39 = vpop.permute.xlu0 %4053  ;;  %v4445_v62 = vsel %vm4364_vm4, %v4424_v23, %v4294_v24 }
 0x35a   : > { %v4340_v19 = vsel %vm2548_vm6, %v5464_v26, %v4054_v39 }
 0x35c   : > { %4707 = vmatmul.bf16.gmra.mxu2 %v4445_v62  ;;  %v4296_v59 = vpop.permute.xlu2 %4295 }
 0x35f   : > { %v4094_v32 = vpop.permute.xlu1 %4093 }
 0x360   : > { %v4359_v47 = vsel %vm4347_vm3, %v4340_v19, %v4094_v32 }
 0x361   : > { %v4208_v17 = vpop.permute.xlu0 %4207  ;;  %v4381_v45 = vsel %vm4364_vm4, %v4359_v47, %v4142_v2 }
 0x362   : > { %5419 = vmatmul.msk.bf16.gmra.mxu3 %vm2548_vm6, %v4322_v3  ;;  %v4409_v15 = vsel %vm2548_vm6, %v4169_v50, %v4208_v17 }
 0x363   : > { %4658 = vmatmul.bf16.gmra.mxu1 %v4381_v45 }
 0x364   : > { %v4144_v24 = vpop.permute.xlu2 %4143 }
 0x367   : > { %v4256_v55 = vpop.permute.xlu1 %4255 }
 0x368   : > { %v4426_v21 = vsel %vm4347_vm3, %v4409_v15, %v4256_v55 }
 0x369   : > { %v4056_v63 = vpop.permute.xlu0 %4055  ;;  %v4448_v37 = vsel %vm4364_vm4, %v4426_v21, %v4296_v59 }
 0x36a   : > { %v4343_v13 = vsel %vm2548_vm6, %v5465_v30, %v4056_v63 }
 0x36c   : > { %4712 = vmatmul.bf16.gmra.mxu2 %v4448_v37  ;;  %v4298_v46 = vpop.permute.xlu2 %4297 }
 0x36f   : > { %v4096_v58 = vpop.permute.xlu1 %4095 }
 0x370   : > { %v4361_v38 = vsel %vm4347_vm3, %v4343_v13, %v4096_v58  ;;  %v4732_v53 = vpop.f32.mrf.mxu3 }
 0x371   : > { %v4210_v5 = vpop.permute.xlu0 %4209  ;;  %v4384_v31 = vsel %vm4364_vm4, %v4361_v38, %v4144_v24 }
 0x372   : > { %v4412_v8 = vsel %vm2548_vm6, %v4170_v4, %v4210_v5 }
 0x373   : > { %4663 = vmatmul.bf16.gmra.mxu1 %v4384_v31 }
 0x374   : > { %v4146_v33 = vpop.permute.xlu2 %4145 }
 0x377   : > { %v4258_v48 = vpop.permute.xlu1 %4257 }
 0x378   : > { %v4428_v1 = vsel %vm4347_vm3, %v4412_v8, %v4258_v48  ;;  %v4734_v42 = vpop.f32.mrf.mxu3 }
 0x379   : > { %v4451_v61 = vsel %vm4364_vm4, %v4428_v1, %v4298_v46  ;;  %v4058_v52 = vpop.permute.xlu0 %4057 }
 0x37a   : > { %v4346_v51 = vsel %vm2548_vm6, %v5466_v41, %v4058_v52 }
 0x37c   : > { %4717 = vmatmul.bf16.gmra.mxu2 %v4451_v61 }
 0x37f   : > { %v4098_v2 = vpop.permute.xlu1 %4097 }
 0x380   : > { %v4363_v12 = vsel %vm4347_vm3, %v4346_v51, %v4098_v2 }
 0x381   : > { %v4387_v23 = vsel %vm4364_vm4, %v4363_v12, %v4146_v33 }
 0x383   : > { %4668 = vmatmul.bf16.gmra.mxu1 %v4387_v23 }
 0x385   : > { %v4737_v39 = vpop.f32.mrf.mxu3 }
 0x38d   : > { %v4739_v34 = vpop.f32.mrf.mxu3 }
 0x38f   : > { %v4683_v26 = vpop.f32.mrf.mxu2 }
 0x390   : > { %v4634_v29 = vpop.f32.mrf.mxu1 }
 0x391   : > { %v4635_v6 = vadd.f32 %v7720_v28, %v4634_v29 }
 0x393   : > { %v4684_v10 = vadd.f32 %v4683_v26, %v4635_v6 }
 0x395   : > { %v4733_v62 = vadd.f32 %v4732_v53, %v4684_v10  ;;  %v4742_v20 = vpop.f32.mrf.mxu3 }
 0x397   : > { %v4685_v36 = vpop.f32.mrf.mxu2  ;;  %v4772_v57 = vmax.f32 %v4733_v62, 0.0 }
 0x398   : > { %v4636_v54 = vpop.f32.mrf.mxu1 }
 0x399   : > { %v4637_v14 = vadd.f32 %v7720_v28, %v4636_v54  ;;  %4788 = vxpose.xlu0.b32.start [1/16] (narrow) %v4772_v57, 32 }
 0x39b   : > { %v4686_v60 = vadd.f32 %v4685_v36, %v4637_v14 }
 0x39d   : > { %v4735_v19 = vadd.f32 %v4734_v42, %v4686_v60  ;;  %v4744_v3 = vpop.f32.mrf.mxu3 }
 0x39f   : > { %v4688_v11 = vpop.f32.mrf.mxu2  ;;  %v4773_v22 = vmax.f32 %v4735_v19, 0.0 }
 0x3a0   : > { %v4639_v9 = vpop.f32.mrf.mxu1 }
 0x3a1   : > { %v4640_v0 = vadd.f32 %v7720_v28, %v4639_v9  ;;  %4789 = vxpose.xlu0.b32.cont [2/16] (narrow) %v4773_v22, 32 }
 0x3a3   : > { %v4689_v18 = vadd.f32 %v4688_v11, %v4640_v0 }
 0x3a5   : > { %v4738_v32 = vadd.f32 %v4737_v39, %v4689_v18  ;;  %v4747_v40 = vpop.f32.mrf.mxu3 }
 0x3a7   : > { %v4690_v47 = vpop.f32.mrf.mxu2  ;;  %v4774_v17 = vmax.f32 %v4738_v32, 0.0 }
 0x3a8   : > { %v4641_v59 = vpop.f32.mrf.mxu1 }
 0x3a9   : > { %v4642_v45 = vadd.f32 %v7720_v28, %v4641_v59  ;;  %4790 = vxpose.xlu0.b32.cont [3/16] (narrow) %v4774_v17, 32 }
 0x3ab   : > { %v4691_v50 = vadd.f32 %v4690_v47, %v4642_v45 }
 0x3ad   : > { %v4740_v16 = vadd.f32 %v4739_v34, %v4691_v50  ;;  %v4749_v44 = vpop.f32.mrf.mxu3 }
 0x3af   : > { %v4693_v35 = vpop.f32.mrf.mxu2  ;;  %v4775_v56 = vmax.f32 %v4740_v16, 0.0 }
 0x3b0   : > { %v4644_v15 = vpop.f32.mrf.mxu1 }
 0x3b1   : > { %v4645_v49 = vadd.f32 %v7720_v28, %v4644_v15  ;;  %4791 = vxpose.xlu0.b32.cont [4/16] (narrow) %v4775_v56, 32 }
 0x3b3   : > { %v4694_v27 = vadd.f32 %v4693_v35, %v4645_v49 }
 0x3b5   : > { %v4743_v55 = vadd.f32 %v4742_v20, %v4694_v27  ;;  %v4752_v4 = vpop.f32.mrf.mxu3 }
 0x3b7   : > { %v4695_v21 = vpop.f32.mrf.mxu2  ;;  %v4776_v63 = vmax.f32 %v4743_v55, 0.0 }
 0x3b8   : > { %v4646_v30 = vpop.f32.mrf.mxu1 }
 0x3b9   : > { %v4647_v37 = vadd.f32 %v7720_v28, %v4646_v30  ;;  %4792 = vxpose.xlu0.b32.cont [5/16] (narrow) %v4776_v63, 32 }
 0x3bb   : > { %v4696_v24 = vadd.f32 %v4695_v21, %v4647_v37 }
 0x3bd   : > { %v4745_v43 = vadd.f32 %v4744_v3, %v4696_v24  ;;  %v4754_v51 = vpop.f32.mrf.mxu3 }
 0x3bf   : > { %v4698_v13 = vpop.f32.mrf.mxu2  ;;  %v4777_v25 = vmax.f32 %v4745_v43, 0.0 }
 0x3c0   : > { %v4649_v7 = vpop.f32.mrf.mxu1 }
 0x3c1   : > { %v4650_v58 = vadd.f32 %v7720_v28, %v4649_v7  ;;  %4793 = vxpose.xlu0.b32.cont [6/16] (narrow) %v4777_v25, 32 }
 0x3c3   : > { %v4699_v38 = vadd.f32 %v4698_v13, %v4650_v58 }
 0x3c5   : > { %v4748_v5 = vadd.f32 %v4747_v40, %v4699_v38  ;;  %v4757_v29 = vpop.f32.mrf.mxu3 }
 0x3c7   : > { %v4700_v31 = vpop.f32.mrf.mxu2  ;;  %v4778_v46 = vmax.f32 %v4748_v5, 0.0 }
 0x3c8   : > { %v4651_v8 = vpop.f32.mrf.mxu1 }
 0x3c9   : > { %v4652_v53 = vadd.f32 %v7720_v28, %v4651_v8  ;;  %4794 = vxpose.xlu0.b32.cont [7/16] (narrow) %v4778_v46, 32 }
 0x3cb   : > { %v4701_v48 = vadd.f32 %v4700_v31, %v4652_v53 }
 0x3cd   : > { %v4750_v1 = vadd.f32 %v4749_v44, %v4701_v48  ;;  %v4759_v14 = vpop.f32.mrf.mxu3 }
 0x3cf   : > { %v4703_v41 = vpop.f32.mrf.mxu2  ;;  %v4779_v61 = vmax.f32 %v4750_v1, 0.0 }
 0x3d0   : > { %v4654_v52 = vpop.f32.mrf.mxu1 }
 0x3d1   : > { %v4655_v33 = vadd.f32 %v7720_v28, %v4654_v52  ;;  %4795 = vxpose.xlu0.b32.cont [8/16] (narrow) %v4779_v61, 32 }
 0x3d3   : > { %v4704_v2 = vadd.f32 %v4703_v41, %v4655_v33 }
 0x3d5   : > { %v4753_v12 = vadd.f32 %v4752_v4, %v4704_v2  ;;  %v4762_v18 = vpop.f32.mrf.mxu3 }
 0x3d7   : > { %v4705_v42 = vpop.f32.mrf.mxu2  ;;  %v4780_v23 = vmax.f32 %v4753_v12, 0.0 }
 0x3d8   : > { %v4656_v39 = vpop.f32.mrf.mxu1 }
 0x3d9   : > { %v4657_v26 = vadd.f32 %v7720_v28, %v4656_v39  ;;  %4796 = vxpose.xlu0.b32.cont [9/16] (narrow) %v4780_v23, 32 }
 0x3db   : > { %v4706_v6 = vadd.f32 %v4705_v42, %v4657_v26 }
 0x3dd   : > { %v4755_v10 = vadd.f32 %v4754_v51, %v4706_v6  ;;  %v4764_v35 = vpop.f32.mrf.mxu3 }
 0x3df   : > { %v4708_v34 = vpop.f32.mrf.mxu2  ;;  %v4781_v62 = vmax.f32 %v4755_v10, 0.0 }
 0x3e0   : > { %v4659_v36 = vpop.f32.mrf.mxu1 }
 0x3e1   : > { %v4660_v57 = vadd.f32 %v7720_v28, %v4659_v36  ;;  %4797 = vxpose.xlu0.b32.cont [10/16] (narrow) %v4781_v62, 32 }
 0x3e3   : > { %v4709_v54 = vadd.f32 %v4708_v34, %v4660_v57 }
 0x3e5   : > { %v4758_v60 = vadd.f32 %v4757_v29, %v4709_v54  ;;  %v4767_v30 = vpop.f32.mrf.mxu3 }
 0x3e7   : > { %v4710_v19 = vpop.f32.mrf.mxu2  ;;  %v4782_v11 = vmax.f32 %v4758_v60, 0.0 }
 0x3e8   : > { %v4661_v20 = vpop.f32.mrf.mxu1 }
 0x3e9   : > { %v4662_v22 = vadd.f32 %v7720_v28, %v4661_v20  ;;  %4798 = vxpose.xlu0.b32.cont [11/16] (narrow) %v4782_v11, 32 }
 0x3eb   : > { %v4711_v9 = vadd.f32 %v4710_v19, %v4662_v22 }
 0x3ed   : > { %v4760_v0 = vadd.f32 %v4759_v14, %v4711_v9  ;;  %v4769_v58 = vpop.f32.mrf.mxu3 }
 0x3ef   : > { %v4713_v32 = vpop.f32.mrf.mxu2  ;;  %v4783_v47 = vmax.f32 %v4760_v0, 0.0 }
 0x3f0   : > { %v4664_v17 = vpop.f32.mrf.mxu1 }
 0x3f1   : > { %v4665_v59 = vadd.f32 %v7720_v28, %v4664_v17  ;;  %4799 = vxpose.xlu0.b32.cont [12/16] (narrow) %v4783_v47, 32 }
 0x3f3   : > { %v4714_v3 = vadd.f32 %v4713_v32, %v4665_v59 }
 0x3f5   : > { %v4763_v45 = vadd.f32 %v4762_v18, %v4714_v3 }
 0x3f7   : > { %v4715_v50 = vpop.f32.mrf.mxu2  ;;  %v4784_v16 = vmax.f32 %v4763_v45, 0.0 }
 0x3f8   : > { %v4666_v56 = vpop.f32.mrf.mxu1 }
 0x3f9   : > { %v4667_v15 = vadd.f32 %v7720_v28, %v4666_v56  ;;  %4800 = vxpose.xlu0.b32.cont [13/16] (narrow) %v4784_v16, 32 }
 0x3fb   : > { %v4716_v49 = vadd.f32 %v4715_v50, %v4667_v15 }
 0x3fd   : > { %v4765_v40 = vadd.f32 %v4764_v35, %v4716_v49 }
 0x3ff   : > { %v4718_v27 = vpop.f32.mrf.mxu2  ;;  %v4785_v55 = vmax.f32 %v4765_v40, 0.0 }
 0x400   : > { %v4669_v21 = vpop.f32.mrf.mxu1 }
 0x401   : > { %v4670_v63 = vadd.f32 %v7720_v28, %v4669_v21  ;;  %4801 = vxpose.xlu0.b32.cont [14/16] (narrow) %v4785_v55, 32 }
 0x403   : > { %v4719_v37 = vadd.f32 %v4718_v27, %v4670_v63 }
 0x405   : > { %v4768_v24 = vadd.f32 %v4767_v30, %v4719_v37 }
 0x407   : > { %v4786_v44 = vmax.f32 %v4768_v24, 0.0  ;;  %v4720_v13 = vpop.f32.mrf.mxu2 }
 0x408   : > { %v4671_v43 = vpop.f32.mrf.mxu1 }
 0x409   : > { %v4672_v25 = vadd.f32 %v7720_v28, %v4671_v43  ;;  %4802 = vxpose.xlu0.b32.cont [15/16] (narrow) %v4786_v44, 32 }
 0x40b   : > { %v4721_v7 = vadd.f32 %v4720_v13, %v4672_v25 }
 0x40d   : > { %v4770_v38 = vadd.f32 %v4769_v58, %v4721_v7 }
 0x40f   : > { %v4787_v5 = vmax.f32 %v4770_v38, 0.0 }
 0x411   : > { %4803 = vxpose.xlu0.b32.end [16/16] (narrow) %v4787_v5, 32 }
 0x43d   : > { %v4804_v31 = vpop.trf.xlu0 }
 0x43e   : > { %4820 = vst [vmem:[%s5749_s16] sm:$0xff] %v4804_v31 }
 0x445   : > { %v4805_v4 = vpop.trf.xlu0  ;;  %v4869_v28 = vld [vmem:[%s5749_s16] sm:$0xff] (%p5728_p5) }
 0x446   : > { %4821 = vst [vmem:[%s5749_s16 + $0x8] sm:$0xff] %v4805_v4 }
 0x447   : > { %4870 = vst [vmem:[%s4834_s17] sm:$0xff] (%p5728_p5), %v4869_v28 }
 0x44d   : > { %v4806_v46 = vpop.trf.xlu0  ;;  %v4871_v53 = vld [vmem:[%s5749_s16 + $0x8] sm:$0xff] (%p5728_p5) }
 0x44e   : > { %4822 = vst [vmem:[%s5749_s16 + $0x10] sm:$0xff] %v4806_v46 }
 0x44f   : > { %4872 = vst [vmem:[%s4834_s17 + $0x10] sm:$0xff] (%p5728_p5), %v4871_v53 }
 0x452   : > { %4830 = sbr.rel (!%p5728_p5) target bundleno = 1119 (0x45f), region = 56 }
 0x455   : > { %v4807_v8 = vpop.trf.xlu0  ;;  %v4873_v48 = vld [vmem:[%s5749_s16 + $0x10] sm:$0xff] (%p5728_p5) }
 0x456   : > { %4823 = vst [vmem:[%s5749_s16 + $0x18] sm:$0xff] %v4807_v8 }
 0x457   : > { %4874 = vst [vmem:[%s4834_s17 + $0x20] sm:$0xff] %v4873_v48 }
 0x45d   : > { %v4875_v1 = vld [vmem:[%s5749_s16 + $0x18] sm:$0xff] }
 0x45e   : > { %4876 = vst [vmem:[%s4834_s17 + $0x30] sm:$0xff] %v4875_v1 }
 0x45f PF: > { %s15_s24 = sadd.s32 1, %s5637_s24   ;;  %s7808_s18 = smov %s5617_s19 }
 0x460   : > { %p12_p12 = scmp.ge.s32.totalorder %s15_s24, 6   ;;  %s7809_s19 = smov %s5739_s8 }
 0x461   : > { %s7810_s20 = smov %s5629_s22  ;;  %s7811_s21 = smov %s5633_s23 }
 0x462   : > { %s7812_s22 = smov %s7815_s25  ;;  %s7813_s23 = smov %s7819_s26 }
 0x463   :  { %14 = sbr.rel (!%p12_p12) target bundleno = 4 (0x4), region = 127 }

</bundles_post_ra>
